<compile_context>
chip_gen: v7x
topology: tpu7x:2x2x1
jax: 0.10.0
libtpu: 0.0.40
codegen_flags: <defaults>
</compile_context>

<pallas_src>
import jax
import jax.numpy as jnp
import numpy as np
from jax.experimental import pallas as pl
from jax.experimental.pallas import tpu as pltpu

# Shapes implied by the module: Linear(65536, .) = 64 ch * 32 * 32 spatial,
# conv is vgg16.features[0] = Conv2d(3, 64, 3, padding=1).
N, CIN, H, W = 2, 3, 32, 32
COUT = 64
KH = KW = 3
CLASS_NUM = 10
HW = H * W                       # 1024
K_PATCH = CIN * KH * KW          # 27   (im2col contraction dim)
FC_K = COUT * HW                 # 65536 (fully-connected contraction dim)
FC_TK = 16384                    # lane-dense FC K tile -> 4 grid steps


# ----------------------------------------------------------------------------
# Kernel 1: conv-as-matmul + bias + ReLU, channel-major output
# ----------------------------------------------------------------------------
def conv_relu_kernel(p_ref, w_ref, b_ref, o_ref):
    # p_ref: (1, K_PATCH, HW)  im2col patches of one sample (HW lane-dense)
    # w_ref: (COUT, K_PATCH)   conv weight as a matrix, cols = (ci, kh, kw)
    # b_ref: (COUT, 1)         conv bias
    # o_ref: (1, COUT, HW)     channel-major activation (== NCHW-flat)
    y = jnp.dot(w_ref[...], p_ref[0], preferred_element_type=jnp.float32)  # (COUT, HW)
    o_ref[0] = jnp.maximum(y + b_ref[...], 0.0)


# ----------------------------------------------------------------------------
# Kernel 2: fully-connected layer; weight streamed lane-dense along FC_K
# ----------------------------------------------------------------------------
def fc_kernel(a_ref, w_ref, bias_ref, o_ref, acc_ref):
    # a_ref:    (N, FC_TK)          NCHW-flat activation tile
    # w_ref:    (CLASS_NUM, FC_TK)  native fc weight tile (lane-dense along FC_K)
    # bias_ref: (1, CLASS_NUM)
    k = pl.program_id(0)

    @pl.when(k == 0)
    def _():
        acc_ref[...] = jnp.zeros_like(acc_ref)

    # out[n, j] += sum_k a[n, k] * w[j, k]  (contract last dims of both operands)
    acc_ref[...] += jax.lax.dot_general(
        a_ref[...], w_ref[...],
        dimension_numbers=(((1,), (1,)), ((), ())),
        preferred_element_type=jnp.float32)

    @pl.when(k == pl.num_programs(0) - 1)
    def _():
        o_ref[...] = acc_ref[...] + bias_ref[...]


# ----------------------------------------------------------------------------
# Wrapper (glue: im2col only; all reshapes below are layout-free)
# ----------------------------------------------------------------------------
def net_one_forward(x, conv_w, conv_b, fc_w, fc_b):
    # x: (N, CIN, H, W) float32 NCHW
    # im2col as (N, K_PATCH, HW): k index = ci*9 + kh*3 + kw, spatial = h*W + w.
    # TODO(synk): the im2col slices/stack is XLA glue (~220 KB); could be folded
    # into the conv kernel via shifted ref slices if it ever matters.
    x_pad = jnp.pad(x, ((0, 0), (0, 0), (1, 1), (1, 1)))
    slices = [x_pad[:, :, kh:kh + H, kw:kw + W]
              for kh in range(KH) for kw in range(KW)]            # each (N,CIN,H,W)
    patches = jnp.stack(slices, axis=2).reshape(N, K_PATCH, HW)   # (N, 27, 1024)

    # PyTorch conv weight (COUT, CIN, KH, KW) -> (COUT, K_PATCH); same (ci,kh,kw) order.
    w_mat = conv_w.reshape(COUT, K_PATCH)

    y = pl.pallas_call(
        conv_relu_kernel,
        out_shape=jax.ShapeDtypeStruct((N, COUT, HW), jnp.float32),
        grid_spec=pltpu.PrefetchScalarGridSpec(
            num_scalar_prefetch=0,
            grid=(N,),                              # 2 blocks: sharded on v7x megacore
            in_specs=[pl.BlockSpec((1, K_PATCH, HW), lambda n: (n, 0, 0)),
                      pl.BlockSpec((COUT, K_PATCH), lambda n: (0, 0)),
                      pl.BlockSpec((COUT, 1), lambda n: (0, 0))],
            out_specs=pl.BlockSpec((1, COUT, HW), lambda n: (n, 0, 0))),
        compiler_params=pltpu.CompilerParams(
            dimension_semantics=("parallel",)),
    )(patches, w_mat, conv_b.reshape(COUT, 1))       # (N, COUT, HW), channel-major

    # x_internal in PyTorch layout and the NCHW-flat FC activation are both
    # free reshapes of the same buffer (no transpose, no weight permutation).
    x_internal = y.reshape(N, COUT, H, W)
    a = y.reshape(N, FC_K)

    out = pl.pallas_call(
        fc_kernel,
        out_shape=jax.ShapeDtypeStruct((N, CLASS_NUM), jnp.float32),
        grid_spec=pltpu.PrefetchScalarGridSpec(
            num_scalar_prefetch=0,
            grid=(FC_K // FC_TK,),
            in_specs=[pl.BlockSpec((N, FC_TK), lambda k: (0, k)),
                      pl.BlockSpec((CLASS_NUM, FC_TK), lambda k: (0, k)),
                      pl.BlockSpec((1, CLASS_NUM), lambda k: (0, 0))],
            out_specs=pl.BlockSpec((N, CLASS_NUM), lambda k: (0, 0)),
            scratch_shapes=[pltpu.VMEM((N, CLASS_NUM), jnp.float32)]),
        compiler_params=pltpu.CompilerParams(
            dimension_semantics=("arbitrary",)),
    )(a, fc_w, fc_b.reshape(1, CLASS_NUM))

    return out, x_internal


# ----------------------------------------------------------------------------
# Pure-JAX reference (matches the PyTorch forward semantics)
# ----------------------------------------------------------------------------
def reference_forward(x, conv_w, conv_b, fc_w, fc_b):
    y = jax.lax.conv_general_dilated(
        x, conv_w, window_strides=(1, 1), padding=((1, 1), (1, 1)),
        dimension_numbers=("NCHW", "OIHW", "NCHW"),
        precision=jax.lax.Precision.HIGHEST)
    y = y + conv_b.reshape(1, COUT, 1, 1)
    x_internal = jnp.maximum(y, 0.0)
    out = jnp.dot(x_internal.reshape(N, -1), fc_w.T,
                  precision=jax.lax.Precision.HIGHEST) + fc_b
    return out, x_internal


if __name__ == "__main__":
    key = jax.random.PRNGKey(0)
    kx, kw1, kb1, kw2, kb2 = jax.random.split(key, 5)
    x = jax.random.normal(kx, (N, CIN, H, W), jnp.float32)
    conv_w = jax.random.normal(kw1, (COUT, CIN, KH, KW), jnp.float32) * 0.05
    conv_b = jax.random.normal(kb1, (COUT,), jnp.float32) * 0.05
    fc_w = jax.random.normal(kw2, (CLASS_NUM, FC_K), jnp.float32) * 0.01
    fc_b = jax.random.normal(kb2, (CLASS_NUM,), jnp.float32) * 0.01

    out, x_internal = jax.jit(net_one_forward)(x, conv_w, conv_b, fc_w, fc_b)
    jax.block_until_ready((out, x_internal))

    assert out.shape == (N, CLASS_NUM)
    assert x_internal.shape == (N, COUT, H, W)

    ref_out, ref_internal = reference_forward(x, conv_w, conv_b, fc_w, fc_b)
    # All-f32 path: tolerances tightened vs the original 2e-2 so real
    # regressions (layout bugs, accidental bf16 demotion) are visible.
    np.testing.assert_allclose(np.asarray(x_internal), np.asarray(ref_internal),
                               rtol=1e-4, atol=1e-4)
    np.testing.assert_allclose(np.asarray(out), np.asarray(ref_out),
                               rtol=1e-3, atol=1e-3)
    print("KERNEL_OK")
</pallas_src>

<mosaic_0001>
module attributes {stable_mosaic.version = 11 : i64} {
  func.func @conv_relu_kernel(%arg0: i32, %arg1: memref<1x27x1024xf32, #tpu.memory_space<vmem>>, %arg2: memref<64x27xf32, #tpu.memory_space<vmem>>, %arg3: memref<64x1xf32, #tpu.memory_space<vmem>>, %arg4: memref<1x64x1024xf32, #tpu.memory_space<vmem>>) attributes {dimension_semantics = [#tpu.dimension_semantics<parallel>], iteration_bounds = array<i64: 2>, scalar_prefetch = 0 : i64, scratch_operands = 0 : i64, tpu.core_type = #tpu.core_type<tc>, window_params = [{transform_indices = @transform_0, window_bounds = array<i64: 1, 27, 1024>}, {pipeline_mode = #tpu.pipeline_mode<synchronous>, transform_indices = @transform_1, window_bounds = array<i64: 64, 27>}, {pipeline_mode = #tpu.pipeline_mode<synchronous>, transform_indices = @transform_2, window_bounds = array<i64: 64, 1>}, {transform_indices = @transform_3, window_bounds = array<i64: 1, 64, 1024>}]} {
    %c0 = arith.constant 0 : index
    %c0_0 = arith.constant 0 : index
    %0 = vector.load %arg2[%c0, %c0_0] : memref<64x27xf32, #tpu.memory_space<vmem>>, vector<64x27xf32>
    %c0_1 = arith.constant 0 : index
    %c0_2 = arith.constant 0 : index
    %c0_3 = arith.constant 0 : index
    %1 = vector.load %arg1[%c0_1, %c0_2, %c0_3] : memref<1x27x1024xf32, #tpu.memory_space<vmem>>, vector<1x27x1024xf32>
    %2 = vector.shape_cast %1 : vector<1x27x1024xf32> to vector<27x1024xf32>
    %cst = arith.constant dense<0.000000e+00> : vector<64x1024xf32>
    %3 = tpu.matmul %0, %2, %cst {dimension_numbers = #tpu.dot_dimension_numbers<[1], [0], [0], [1], [0, 0, 1, 1], [], []>} : vector<64x27xf32>, vector<27x1024xf32>, vector<64x1024xf32> -> vector<64x1024xf32>
    %c0_4 = arith.constant 0 : index
    %c0_5 = arith.constant 0 : index
    %4 = vector.load %arg3[%c0_4, %c0_5] : memref<64x1xf32, #tpu.memory_space<vmem>>, vector<64x1xf32>
    %5 = vector.broadcast %4 : vector<64x1xf32> to vector<64x1024xf32>
    %6 = arith.addf %3, %5 : vector<64x1024xf32>
    %cst_6 = arith.constant 0.000000e+00 : f32
    %7 = vector.broadcast %cst_6 : f32 to vector<64x1024xf32>
    %8 = arith.maximumf %6, %7 : vector<64x1024xf32>
    %c0_7 = arith.constant 0 : index
    %c0_8 = arith.constant 0 : index
    %c0_9 = arith.constant 0 : index
    %9 = vector.load %arg4[%c0_7, %c0_8, %c0_9] : memref<1x64x1024xf32, #tpu.memory_space<vmem>>, vector<1x64x1024xf32>
    %10 = vector.shape_cast %9 : vector<1x64x1024xf32> to vector<64x1024xf32>
    %11 = vector.shape_cast %8 : vector<64x1024xf32> to vector<1x64x1024xf32>
    tpu.vector_store %arg4[%c0_7, %c0_8, %c0_9], %11 {strides = array<i32>} : memref<1x64x1024xf32, #tpu.memory_space<vmem>>, vector<1x64x1024xf32>,
    return
  }
  func.func @transform_0(%arg0: i32) -> (i32, i32, i32) {
    %c0_i32 = arith.constant 0 : i32
    %c0_i32_0 = arith.constant 0 : i32
    %c0_i32_1 = arith.constant 0 : i32
    return %arg0, %c0_i32, %c0_i32_0 : i32, i32, i32
  }
  func.func @transform_1(%arg0: i32) -> (i32, i32) {
    %c0_i32 = arith.constant 0 : i32
    %c0_i32_0 = arith.constant 0 : i32
    %c0_i32_1 = arith.constant 0 : i32
    return %c0_i32, %c0_i32_0 : i32, i32
  }
  func.func @transform_2(%arg0: i32) -> (i32, i32) {
    %c0_i32 = arith.constant 0 : i32
    %c0_i32_0 = arith.constant 0 : i32
    %c0_i32_1 = arith.constant 0 : i32
    return %c0_i32, %c0_i32_0 : i32, i32
  }
  func.func @transform_3(%arg0: i32) -> (i32, i32, i32) {
    %c0_i32 = arith.constant 0 : i32
    %c0_i32_0 = arith.constant 0 : i32
    %c0_i32_1 = arith.constant 0 : i32
    return %arg0, %c0_i32, %c0_i32_0 : i32, i32, i32
  }
}

module attributes {stable_mosaic.version = 11 : i64} {
  func.func @fc_kernel(%arg0: i32, %arg1: memref<2x16384xf32, #tpu.memory_space<vmem>>, %arg2: memref<10x16384xf32, #tpu.memory_space<vmem>>, %arg3: memref<1x10xf32, #tpu.memory_space<vmem>>, %arg4: memref<2x10xf32, #tpu.memory_space<vmem>>, %arg5: memref<2x10xf32, #tpu.memory_space<vmem>>) attributes {dimension_semantics = [#tpu.dimension_semantics<arbitrary>], iteration_bounds = array<i64: 4>, scalar_prefetch = 0 : i64, scratch_operands = 1 : i64, tpu.core_type = #tpu.core_type<tc>, window_params = [{transform_indices = @transform_0, window_bounds = array<i64: 2, 16384>}, {transform_indices = @transform_1, window_bounds = array<i64: 10, 16384>}, {pipeline_mode = #tpu.pipeline_mode<synchronous>, transform_indices = @transform_2, window_bounds = array<i64: 1, 10>}, {pipeline_mode = #tpu.pipeline_mode<synchronous>, transform_indices = @transform_3, window_bounds = array<i64: 2, 10>}]} {
    %c0_i32 = arith.constant 0 : i32
    %0 = arith.cmpi eq, %arg0, %c0_i32 : i32
    %1 = arith.extui %0 : i1 to i32
    %c0_i32_0 = arith.constant 0 : i32
    %2 = arith.cmpi ne, %1, %c0_i32_0 : i32
    scf.if %2 {
      %cst_9 = arith.constant 0.000000e+00 : f32
      %12 = vector.broadcast %cst_9 : f32 to vector<2x10xf32>
      %c0_10 = arith.constant 0 : index
      %c0_11 = arith.constant 0 : index
      %13 = vector.load %arg5[%c0_10, %c0_11] : memref<2x10xf32, #tpu.memory_space<vmem>>, vector<2x10xf32>
      tpu.vector_store %arg5[%c0_10, %c0_11], %12 {strides = array<i32>} : memref<2x10xf32, #tpu.memory_space<vmem>>, vector<2x10xf32>,
    } else {
    }
    %c0 = arith.constant 0 : index
    %c0_1 = arith.constant 0 : index
    %3 = vector.load %arg5[%c0, %c0_1] : memref<2x10xf32, #tpu.memory_space<vmem>>, vector<2x10xf32>
    %c0_2 = arith.constant 0 : index
    %c0_3 = arith.constant 0 : index
    %4 = vector.load %arg1[%c0_2, %c0_3] : memref<2x16384xf32, #tpu.memory_space<vmem>>, vector<2x16384xf32>
    %c0_4 = arith.constant 0 : index
    %c0_5 = arith.constant 0 : index
    %5 = vector.load %arg2[%c0_4, %c0_5] : memref<10x16384xf32, #tpu.memory_space<vmem>>, vector<10x16384xf32>
    %cst = arith.constant dense<0.000000e+00> : vector<2x10xf32>
    %6 = tpu.matmul %4, %5, %cst {dimension_numbers = #tpu.dot_dimension_numbers<[1], [1], [0], [0], [0, 0, 1, 0], [], []>} : vector<2x16384xf32>, vector<10x16384xf32>, vector<2x10xf32> -> vector<2x10xf32>
    %7 = arith.addf %3, %6 : vector<2x10xf32>
    %c0_6 = arith.constant 0 : index
    %c0_7 = arith.constant 0 : index
    %8 = vector.load %arg5[%c0_6, %c0_7] : memref<2x10xf32, #tpu.memory_space<vmem>>, vector<2x10xf32>
    tpu.vector_store %arg5[%c0_6, %c0_7], %7 {strides = array<i32>} : memref<2x10xf32, #tpu.memory_space<vmem>>, vector<2x10xf32>,
    %c3_i32 = arith.constant 3 : i32
    %9 = arith.cmpi eq, %arg0, %c3_i32 : i32
    %10 = arith.extui %9 : i1 to i32
    %c0_i32_8 = arith.constant 0 : i32
    %11 = arith.cmpi ne, %10, %c0_i32_8 : i32
    scf.if %11 {
      %c0_9 = arith.constant 0 : index
      %c0_10 = arith.constant 0 : index
      %12 = vector.load %arg5[%c0_9, %c0_10] : memref<2x10xf32, #tpu.memory_space<vmem>>, vector<2x10xf32>
      %c0_11 = arith.constant 0 : index
      %c0_12 = arith.constant 0 : index
      %13 = vector.load %arg3[%c0_11, %c0_12] : memref<1x10xf32, #tpu.memory_space<vmem>>, vector<1x10xf32>
      %14 = vector.broadcast %13 : vector<1x10xf32> to vector<2x10xf32>
      %15 = arith.addf %12, %14 : vector<2x10xf32>
      %c0_13 = arith.constant 0 : index
      %c0_14 = arith.constant 0 : index
      %16 = vector.load %arg4[%c0_13, %c0_14] : memref<2x10xf32, #tpu.memory_space<vmem>>, vector<2x10xf32>
      tpu.vector_store %arg4[%c0_13, %c0_14], %15 {strides = array<i32>} : memref<2x10xf32, #tpu.memory_space<vmem>>, vector<2x10xf32>,
    } else {
    }
    return
  }
  func.func @transform_0(%arg0: i32) -> (i32, i32) {
    %c0_i32 = arith.constant 0 : i32
    %c0_i32_0 = arith.constant 0 : i32
    return %c0_i32, %arg0 : i32, i32
  }
  func.func @transform_1(%arg0: i32) -> (i32, i32) {
    %c0_i32 = arith.constant 0 : i32
    %c0_i32_0 = arith.constant 0 : i32
    return %c0_i32, %arg0 : i32, i32
  }
  func.func @transform_2(%arg0: i32) -> (i32, i32) {
    %c0_i32 = arith.constant 0 : i32
    %c0_i32_0 = arith.constant 0 : i32
    %c0_i32_1 = arith.constant 0 : i32
    return %c0_i32, %c0_i32_0 : i32, i32
  }
  func.func @transform_3(%arg0: i32) -> (i32, i32) {
    %c0_i32 = arith.constant 0 : i32
    %c0_i32_0 = arith.constant 0 : i32
    %c0_i32_1 = arith.constant 0 : i32
    return %c0_i32, %c0_i32_0 : i32, i32
  }
}

</mosaic_0001>

<bundles_post_ra>
// kernel: net_one_forward.2
= control target key start
LH: loop header
LB: loop body
LE: loop exit
PB: predicated region body
PF: predicated region fallthrough
CT: control target
= control target key end

     0   :  { %s1081_s12 = smov 0   ;;  %s1420_s0 = inlined_call_operand.vmem [shape: f32[2,27,1024], index: 0, kind: input, shape index: {}]   ;;  %s1421_s1 = inlined_call_operand.vmem [shape: f32[64,27], index: 1, kind: input, shape index: {}]   ;;  %s1422_s2 = inlined_call_operand.vmem [shape: f32[64,1], index: 2, kind: input, shape index: {}]   ;;  %s1423_s3 = inlined_call_operand.vmem [shape: f32[2,64,1024], index: 3, kind: output, shape index: {}]  }
   0x1 LB: > { %s944_s13 = sadd.s32 4294967295, %s1056_s12   ;;  %p948_p0 = scmp.ge.s32.totalorder %s1056_s12, 1  ;;  %s1056_s12 = sphi %s1081_s12, %s13_s12  }
   0x2   : > { %p137_p1 = scmp.lt.s32.totalorder %s1056_s12, 3 }
   0x4   : > { %p138_p2 = pnand %p948_p0, %p137_p1 }
   0x5   : > { %p161_p3 = scmp.lt.s32.totalorder (!%p138_p2), %s944_s13, 1  ;;  %v1058_v0 = vmov (!%p138_p2), 0.0   ;;  %vm284_vm0 = vcmask (!%p138_p2), 1042432   ;;  %v1059_v1 = vmov (!%p138_p2), 0   ;;  %v211_v2 = vld [vmem:[%s1422_s2] sm:$0xff] (!%p138_p2)  ;;  %v213_v3 = vld [vmem:[%s1422_s2 + $0x10] sm:$0xff] (!%p138_p2) }
   0x6   : > { %141 = sbr.rel (%p138_p2) target bundleno = 307 (0x133), region = 32  ;;  %373 = vmatprep.mubr.f32.mxu0 (!%p138_p2), %v1058_v0  ;;  %486 = vmatprep.mubr.f32.mxu1 (!%p138_p2), %v1058_v0  ;;  %vm1060_vm1 = vmmov (!%p138_p2), 1   ;;  %v212_v5 = vld [vmem:[%s1422_s2 + $0x8] sm:$0xff] (!%p138_p2)  ;;  %v214_v6 = vld [vmem:[%s1422_s2 + $0x18] sm:$0xff] (!%p138_p2)  ;;  %v215_v19 = vld [vmem:[%s1422_s2 + $0x20] sm:$0xff] (!%p138_p2)  ;;  %vm259_vm3 = vcmask (!%p138_p2), 220160  }
   0x7   : > { %1048 = vset.pattern.permute.xlu0 (!%p138_p2), %v1059_v1  ;;  %1049 = vset.pattern.permute.xlu1 (!%p138_p2), %v1059_v1  ;;  %vm1105_vm2 = vmpackc.low (!%p138_p2), %vm284_vm0, %vm1060_vm1  ;;  %v216_v20 = vld [vmem:[%s1422_s2 + $0x28] sm:$0xff] (!%p138_p2)  ;;  %v1146_v35 = vld [vmem:[%s1421_s1] sm:$0xff] (!%p138_p2) }
   0x8   : > { %221 = vperm.xlu0 (!%p138_p2), %1048, %v211_v2   ;;  %231 = vperm.xlu1 (!%p138_p2), %1049, %v213_v3   ;;  %v217_v40 = vld [vmem:[%s1422_s2 + $0x30] sm:$0xff] (!%p138_p2)  ;;  %v172_v57 = vld [vmem:[%s1421_s1 + $0x8] sm:$0xff] (!%p138_p2)  ;;  %v218_v60 = vld [vmem:[%s1422_s2 + $0x38] sm:$0xff] (!%p138_p2) }
   0x9   : > { %v173_v61 = vld [vmem:[%s1421_s1 + $0x10] sm:$0xff] (!%p138_p2)  ;;  %v174_v62 = vld [vmem:[%s1421_s1 + $0x18] sm:$0xff] (!%p138_p2)  ;;  %v175_v63 = vld [vmem:[%s1421_s1 + $0x20] sm:$0xff] (!%p138_p2) }
   0xa   : > { %v176_v1 = vld [vmem:[%s1421_s1 + $0x28] sm:$0xff] (!%p138_p2)  ;;  %v177_v2 = vld [vmem:[%s1421_s1 + $0x30] sm:$0xff] (!%p138_p2)  ;;  %v178_v3 = vld [vmem:[%s1421_s1 + $0x38] sm:$0xff] (!%p138_p2) }
   0xc   : > { %226 = vperm.xlu0 (!%p138_p2), %1048, %v212_v5   ;;  %236 = vperm.xlu1 (!%p138_p2), %1049, %v214_v6  }
   0xd   : > { %s1427_s13 = smov (!%p161_p3, %s944_s13), 1 }
   0xe   : > { %s995_s16 = sshll.u32 %s1427_s13, 8  ;;  %s996_s25 = sshll.u32 %s1427_s13, 9 }
   0xf   : > { %s1103_s21 = scalar_lea.vmem %s1420_s0, %s995_s16  ;;  %s1274_s28 = scalar_lea.vmem %s1423_s3, %s996_s25 }
  0x10   : > { %v180_v7 = vld [vmem:[%s1103_s21 + $0x8] sm:$0xff]  ;;  %v182_v9 = vld [vmem:[%s1103_s21 + $0x18] sm:$0xff]  ;;  %v179_v12 = vld [vmem:[%s1103_s21] sm:$0xff]  ;;  %241 = vperm.xlu0 %1048, %v215_v19   ;;  %246 = vperm.xlu1 %1049, %v216_v20  }
  0x11   : > { %v188_v8 = vld [vmem:[%s1103_s21 + $0x48] sm:$0xff]  ;;  %v190_v11 = vld [vmem:[%s1103_s21 + $0x58] sm:$0xff]  ;;  %v187_v13 = vld [vmem:[%s1103_s21 + $0x40] sm:$0xff] }
  0x12   : > { %v997_v10 = vpack.c.bf16 %v188_v8, %v180_v7  ;;  %v1007_v14 = vpack.c.bf16 %v190_v11, %v182_v9  ;;  %v999_v15 = vpack.c.bf16 %v187_v13, %v179_v12  ;;  %v181_v16 = vld [vmem:[%s1103_s21 + $0x10] sm:$0xff]  ;;  %v196_v18 = vld [vmem:[%s1103_s21 + $0x88] sm:$0xff]  ;;  %v198_v23 = vld [vmem:[%s1103_s21 + $0x98] sm:$0xff] }
  0x13   : > { %v189_v17 = vld [vmem:[%s1103_s21 + $0x50] sm:$0xff]  ;;  %v204_v22 = vld [vmem:[%s1103_s21 + $0xc8] sm:$0x7]  ;;  %v206_v24 = vld [vmem:[%s1103_s21 + $0xd8] sm:$0x7] }
  0x14   : > { %998 = vmatprep.subr.bf16.mxu0 %v997_v10  ;;  %v1009_v21 = vpack.c.bf16 %v189_v17, %v181_v16  ;;  %1008 = vmatprep.subr.bf16.mxu1 %v1007_v14  ;;  %v1001_v25 = vpack.c.bf16 %v204_v22, %v196_v18  ;;  %v1011_v26 = vpack.c.bf16 %v206_v24, %v198_v23  ;;  %v195_v27 = vld [vmem:[%s1103_s21 + $0x80] sm:$0xff]  ;;  %v197_v29 = vld [vmem:[%s1103_s21 + $0x90] sm:$0xff]  ;;  %v184_v32 = vld [vmem:[%s1103_s21 + $0x28] sm:$0xff] }
  0x15   : > { %1000 = vmatpush1.bf16.msra.mxu0 %v999_v15  ;;  %v203_v28 = vld [vmem:[%s1103_s21 + $0xc0] sm:$0x7]  ;;  %v205_v31 = vld [vmem:[%s1103_s21 + $0xd0] sm:$0x7]  ;;  %v192_v33 = vld [vmem:[%s1103_s21 + $0x68] sm:$0xff]  ;;  %251 = vperm.xlu0 %1048, %v217_v40  }
  0x16   : > { %1010 = vmatpush1.bf16.msra.mxu1 %v1009_v21  ;;  %v1004_v30 = vpack.c.bf16 %v203_v28, %v195_v27  ;;  %1003 = vmatprep.subr.msk.bf16.mxu0 %vm1105_vm2, %v1001_v25  ;;  %v1014_v34 = vpack.c.bf16 %v205_v31, %v197_v29  ;;  %v1017_v36 = vpack.c.bf16 %v192_v33, %v184_v32  ;;  %v186_v37 = vld [vmem:[%s1103_s21 + $0x38] sm:$0xff]  ;;  %v183_v39 = vld [vmem:[%s1103_s21 + $0x20] sm:$0xff]  ;;  %v185_v43 = vld [vmem:[%s1103_s21 + $0x30] sm:$0xff] }
  0x17   : > { %1013 = vmatprep.subr.msk.bf16.mxu1 %vm1105_vm2, %v1011_v26  ;;  %v194_v38 = vld [vmem:[%s1103_s21 + $0x78] sm:$0xff]  ;;  %v191_v42 = vld [vmem:[%s1103_s21 + $0x60] sm:$0xff]  ;;  %v193_v44 = vld [vmem:[%s1103_s21 + $0x70] sm:$0xff]  ;;  %256 = vperm.xlu1 %1049, %v218_v60  }
  0x18   : > { %v1027_v41 = vpack.c.bf16 %v194_v38, %v186_v37  ;;  %v1019_v45 = vpack.c.bf16 %v191_v42, %v183_v39  ;;  %v200_v46 = vld [vmem:[%s1103_s21 + $0xa8] sm:$0xff]  ;;  %v202_v48 = vld [vmem:[%s1103_s21 + $0xb8] sm:$0xff]  ;;  %v1029_v49 = vpack.c.bf16 %v193_v44, %v185_v43  ;;  %v199_v52 = vld [vmem:[%s1103_s21 + $0xa0] sm:$0xff] }
  0x19   : > { %1006 = vmatpush1.bf16.msk.msra.mxu0 %vm1105_vm2, %v1004_v30  ;;  %v208_v47 = vld [vmem:[%s1103_s21 + $0xe8] sm:$0x7]  ;;  %v210_v50 = vld [vmem:[%s1103_s21 + $0xf8] sm:$0x7]  ;;  %v207_v53 = vld [vmem:[%s1103_s21 + $0xe0] sm:$0x7] }
  0x1a   : > { %1016 = vmatpush1.bf16.msk.msra.mxu1 %vm1105_vm2, %v1014_v34  ;;  %1018 = vmatprep.subr.bf16.mxu0 %v1017_v36  ;;  %v1021_v51 = vpack.c.bf16 %v208_v47, %v200_v46  ;;  %v1031_v54 = vpack.c.bf16 %v210_v50, %v202_v48  ;;  %v201_v55 = vld [vmem:[%s1103_s21 + $0xb0] sm:$0xff]  ;;  %v1024_v58 = vpack.c.bf16 %v207_v53, %v199_v52 }
  0x1b   : > { %1028 = vmatprep.subr.bf16.mxu1 %v1027_v41  ;;  %v209_v56 = vld [vmem:[%s1103_s21 + $0xf0] sm:$0x7] }
  0x1c   : > { %955 = vmatmul.mubr.msk.f32.vlgmr.msra.gmra.mrb[0].mxu0 %vm259_vm3, %v1146_v35  ;;  %v1034_v59 = vpack.c.bf16 %v209_v56, %v201_v55 }
  0x1d   : > { %965 = vmatmul.mubr.msk.f32.vlgmr.msra.gmra.mrb[0].mxu1 %vm259_vm3, %v1146_v35  ;;  %1020 = vmatpush1.bf16.msra.mxu0 %v1019_v45 }
  0x1e   : > { %1030 = vmatpush1.bf16.msra.mxu1 %v1029_v49  ;;  %379 = vmatprep.mubr.f32.mxu0 %v1058_v0 }
  0x1f   : > { %492 = vmatprep.mubr.f32.mxu1 %v1058_v0  ;;  %1023 = vmatprep.subr.msk.bf16.mxu0 %vm1105_vm2, %v1021_v51 }
  0x20   : > { %956 = vmatmul.mubr.msk.f32.gmra.mrb[2].mxu0 %vm259_vm3, %v172_v57  ;;  %1033 = vmatprep.subr.msk.bf16.mxu1 %vm1105_vm2, %v1031_v54 }
  0x21   : > { %966 = vmatmul.mubr.msk.f32.gmra.mrb[2].mxu1 %vm259_vm3, %v172_v57  ;;  %385 = vmatprep.mubr.f32.mxu0 %v1058_v0 }
  0x22   : > { %498 = vmatprep.mubr.f32.mxu1 %v1058_v0  ;;  %1026 = vmatpush1.bf16.msk.msra.mxu0 %vm1105_vm2, %v1024_v58 }
  0x23   : > { %1036 = vmatpush1.bf16.msk.msra.mxu1 %vm1105_vm2, %v1034_v59 }
  0x24   : > { %957 = vmatmul.mubr.msk.f32.gmra.mrb[4].mxu0 %vm259_vm3, %v173_v61 }
  0x25   : > { %967 = vmatmul.mubr.msk.f32.gmra.mrb[4].mxu1 %vm259_vm3, %v173_v61  ;;  %391 = vmatprep.mubr.f32.mxu0 %v1058_v0 }
  0x26   : > { %504 = vmatprep.mubr.f32.mxu1 %v1058_v0 }
  0x28   : > { %958 = vmatmul.mubr.msk.f32.gmra.mrb[6].mxu0 %vm259_vm3, %v174_v62 }
  0x29   : > { %968 = vmatmul.mubr.msk.f32.gmra.mrb[6].mxu1 %vm259_vm3, %v174_v62  ;;  %397 = vmatprep.mubr.f32.mxu0 %v1058_v0 }
  0x2a   : > { %510 = vmatprep.mubr.f32.mxu1 %v1058_v0 }
  0x2c   : > { %959 = vmatmul.mubr.msk.f32.gmra.mrb[8].mxu0 %vm259_vm3, %v175_v63 }
  0x2d   : > { %969 = vmatmul.mubr.msk.f32.gmra.mrb[8].mxu1 %vm259_vm3, %v175_v63  ;;  %403 = vmatprep.mubr.f32.mxu0 %v1058_v0 }
  0x2e   : > { %516 = vmatprep.mubr.f32.mxu1 %v1058_v0 }
  0x30   : > { %960 = vmatmul.mubr.msk.f32.gmra.mrb[10].mxu0 %vm259_vm3, %v176_v1 }
  0x31   : > { %970 = vmatmul.mubr.msk.f32.gmra.mrb[10].mxu1 %vm259_vm3, %v176_v1  ;;  %409 = vmatprep.mubr.f32.mxu0 %v1058_v0 }
  0x32   : > { %522 = vmatprep.mubr.f32.mxu1 %v1058_v0 }
  0x34   : > { %961 = vmatmul.mubr.msk.f32.gmra.mrb[12].mxu0 %vm259_vm3, %v177_v2 }
  0x35   : > { %971 = vmatmul.mubr.msk.f32.gmra.mrb[12].mxu1 %vm259_vm3, %v177_v2  ;;  %415 = vmatprep.mubr.f32.mxu0 %v1058_v0 }
  0x36   : > { %528 = vmatprep.mubr.f32.mxu1 %v1058_v0 }
  0x38   : > { %962 = vmatmul.mubr.msk.f32.gmra.mrb[14].mxu0 %vm259_vm3, %v178_v3 }
  0x39   : > { %972 = vmatmul.mubr.msk.f32.gmra.mrb[14].mxu1 %vm259_vm3, %v178_v3  ;;  %599 = vmatprep.mubr.f32.mxu0 %v1058_v0 }
  0x3a   : > { %712 = vmatprep.mubr.f32.mxu1 %v1058_v0 }
  0x3c   : > { %975 = vmatmul.mubr.msk.f32.vlgmr.msra.gmra.mrb[16].mxu0 %vm259_vm3, %v1146_v35 }
  0x3d   : > { %985 = vmatmul.mubr.msk.f32.vlgmr.msra.gmra.mrb[16].mxu1 %vm259_vm3, %v1146_v35  ;;  %605 = vmatprep.mubr.f32.mxu0 %v1058_v0 }
  0x3e   : > { %718 = vmatprep.mubr.f32.mxu1 %v1058_v0 }
  0x40   : > { %976 = vmatmul.mubr.msk.f32.gmra.mrb[18].mxu0 %vm259_vm3, %v172_v57 }
  0x41   : > { %986 = vmatmul.mubr.msk.f32.gmra.mrb[18].mxu1 %vm259_vm3, %v172_v57  ;;  %611 = vmatprep.mubr.f32.mxu0 %v1058_v0 }
  0x42   : > { %724 = vmatprep.mubr.f32.mxu1 %v1058_v0 }
  0x44   : > { %977 = vmatmul.mubr.msk.f32.gmra.mrb[20].mxu0 %vm259_vm3, %v173_v61 }
  0x45   : > { %987 = vmatmul.mubr.msk.f32.gmra.mrb[20].mxu1 %vm259_vm3, %v173_v61  ;;  %617 = vmatprep.mubr.f32.mxu0 %v1058_v0 }
  0x46   : > { %730 = vmatprep.mubr.f32.mxu1 %v1058_v0 }
  0x48   : > { %978 = vmatmul.mubr.msk.f32.gmra.mrb[22].mxu0 %vm259_vm3, %v174_v62 }
  0x49   : > { %988 = vmatmul.mubr.msk.f32.gmra.mrb[22].mxu1 %vm259_vm3, %v174_v62  ;;  %623 = vmatprep.mubr.f32.mxu0 %v1058_v0 }
  0x4a   : > { %736 = vmatprep.mubr.f32.mxu1 %v1058_v0 }
  0x4c   : > { %979 = vmatmul.mubr.msk.f32.gmra.mrb[24].mxu0 %vm259_vm3, %v175_v63 }
  0x4d   : > { %989 = vmatmul.mubr.msk.f32.gmra.mrb[24].mxu1 %vm259_vm3, %v175_v63  ;;  %629 = vmatprep.mubr.f32.mxu0 %v1058_v0 }
  0x4e   : > { %742 = vmatprep.mubr.f32.mxu1 %v1058_v0 }
  0x50   : > { %980 = vmatmul.mubr.msk.f32.gmra.mrb[26].mxu0 %vm259_vm3, %v176_v1 }
  0x51   : > { %990 = vmatmul.mubr.msk.f32.gmra.mrb[26].mxu1 %vm259_vm3, %v176_v1  ;;  %635 = vmatprep.mubr.f32.mxu0 %v1058_v0 }
  0x52   : > { %748 = vmatprep.mubr.f32.mxu1 %v1058_v0 }
  0x54   : > { %981 = vmatmul.mubr.msk.f32.gmra.mrb[28].mxu0 %vm259_vm3, %v177_v2 }
  0x55   : > { %991 = vmatmul.mubr.msk.f32.gmra.mrb[28].mxu1 %vm259_vm3, %v177_v2  ;;  %641 = vmatprep.mubr.f32.mxu0 %v1058_v0 }
  0x56   : > { %754 = vmatprep.mubr.f32.mxu1 %v1058_v0 }
  0x58   : > { %982 = vmatmul.mubr.msk.f32.gmra.mrb[30].mxu0 %vm259_vm3, %v178_v3 }
  0x59   : > { %992 = vmatmul.mubr.msk.f32.gmra.mrb[30].mxu1 %vm259_vm3, %v178_v3 }
  0x87   : > { %v1267_v4 = vpop.permute.xlu0 %221  ;;  %v1281_v17 = vpop.permute.xlu1 %231 }
  0x8b   : > { %v1278_v11 = vpop.permute.xlu0 %226  ;;  %v1297_v37 = vpop.permute.xlu1 %236 }
  0x8f   : > { %v1307_v50 = vpop.permute.xlu0 %241  ;;  %v1317_v63 = vpop.permute.xlu1 %246 }
  0xef   : > { %v375_v5 = vpop.f32.mrb[0].mxu0 }
  0xf0   : > { %v488_v6 = vpop.f32.mrb[0].mxu1  ;;  %v376_v7 = vadd.f32 %v375_v5, %v1267_v4  ;;  %v377_v8 = vpop.f32.mrb[1].mxu0 }
  0xf1   : > { %v489_v0 = vadd.f32 %v488_v6, %v1267_v4  ;;  %v378_v9 = vadd.f32 %v377_v8, %v1267_v4  ;;  %v490_v10 = vpop.f32.mrb[1].mxu1 }
  0xf2   : > { %v761_v12 = vmax.f32 %v376_v7, 0.0  ;;  %v491_v13 = vadd.f32 %v490_v10, %v1267_v4 }
  0xf3   : > { %v763_v14 = vmax.f32 %v489_v0, 0.0  ;;  %v762_v15 = vmax.f32 %v378_v9, 0.0  ;;  %v381_v16 = vpop.f32.mrb[2].mxu0 }
  0xf4   : > { %825 = vst [vmem:[%s1274_s28] sm:$0xff] %v761_v12  ;;  %v764_v18 = vmax.f32 %v491_v13, 0.0  ;;  %v494_v19 = vpop.f32.mrb[2].mxu1  ;;  %v382_v20 = vadd.f32 %v381_v16, %v1278_v11  ;;  %v383_v21 = vpop.f32.mrb[3].mxu0 }
  0xf5   : > { %827 = vst [vmem:[%s1274_s28 + $0x10] sm:$0xff] %v763_v14  ;;  %826 = vst [vmem:[%s1274_s28 + $0x8] sm:$0xff] %v762_v15  ;;  %v495_v22 = vadd.f32 %v494_v19, %v1278_v11  ;;  %v384_v23 = vadd.f32 %v383_v21, %v1278_v11  ;;  %v496_v24 = vpop.f32.mrb[3].mxu1  ;;  %v1327_v14 = vpop.permute.xlu0 %251 }
  0xf6   : > { %828 = vst [vmem:[%s1274_s28 + $0x18] sm:$0xff] %v764_v18  ;;  %v769_v25 = vmax.f32 %v382_v20, 0.0  ;;  %v497_v26 = vadd.f32 %v496_v24, %v1278_v11 }
  0xf7   : > { %v771_v27 = vmax.f32 %v495_v22, 0.0  ;;  %v770_v28 = vmax.f32 %v384_v23, 0.0  ;;  %v387_v29 = vpop.f32.mrb[4].mxu0 }
  0xf8   : > { %833 = vst [vmem:[%s1274_s28 + $0x40] sm:$0xff] %v769_v25  ;;  %v772_v30 = vmax.f32 %v497_v26, 0.0  ;;  %v500_v31 = vpop.f32.mrb[4].mxu1  ;;  %v388_v32 = vadd.f32 %v387_v29, %v1281_v17  ;;  %v389_v33 = vpop.f32.mrb[5].mxu0 }
  0xf9   : > { %835 = vst [vmem:[%s1274_s28 + $0x50] sm:$0xff] %v771_v27  ;;  %834 = vst [vmem:[%s1274_s28 + $0x48] sm:$0xff] %v770_v28  ;;  %v501_v34 = vadd.f32 %v500_v31, %v1281_v17  ;;  %v390_v35 = vadd.f32 %v389_v33, %v1281_v17  ;;  %v502_v36 = vpop.f32.mrb[5].mxu1  ;;  %v1337_v28 = vpop.permute.xlu1 %256 }
  0xfa   : > { %836 = vst [vmem:[%s1274_s28 + $0x58] sm:$0xff] %v772_v30  ;;  %v777_v38 = vmax.f32 %v388_v32, 0.0  ;;  %v503_v39 = vadd.f32 %v502_v36, %v1281_v17 }
  0xfb   : > { %v779_v40 = vmax.f32 %v501_v34, 0.0  ;;  %v778_v41 = vmax.f32 %v390_v35, 0.0  ;;  %v393_v42 = vpop.f32.mrb[6].mxu0 }
  0xfc   : > { %841 = vst [vmem:[%s1274_s28 + $0x80] sm:$0xff] %v777_v38  ;;  %v780_v43 = vmax.f32 %v503_v39, 0.0  ;;  %v506_v44 = vpop.f32.mrb[6].mxu1  ;;  %v394_v45 = vadd.f32 %v393_v42, %v1297_v37  ;;  %v395_v46 = vpop.f32.mrb[7].mxu0 }
  0xfd   : > { %843 = vst [vmem:[%s1274_s28 + $0x90] sm:$0xff] %v779_v40  ;;  %842 = vst [vmem:[%s1274_s28 + $0x88] sm:$0xff] %v778_v41  ;;  %v507_v47 = vadd.f32 %v506_v44, %v1297_v37  ;;  %v396_v48 = vadd.f32 %v395_v46, %v1297_v37  ;;  %v508_v49 = vpop.f32.mrb[7].mxu1 }
  0xfe   : > { %844 = vst [vmem:[%s1274_s28 + $0x98] sm:$0xff] %v780_v43  ;;  %v785_v51 = vmax.f32 %v394_v45, 0.0  ;;  %v509_v52 = vadd.f32 %v508_v49, %v1297_v37 }
  0xff   : > { %v787_v53 = vmax.f32 %v507_v47, 0.0  ;;  %v786_v54 = vmax.f32 %v396_v48, 0.0  ;;  %v399_v55 = vpop.f32.mrb[8].mxu0 }
 0x100   : > { %849 = vst [vmem:[%s1274_s28 + $0xc0] sm:$0xff] %v785_v51  ;;  %v788_v56 = vmax.f32 %v509_v52, 0.0  ;;  %v512_v57 = vpop.f32.mrb[8].mxu1  ;;  %v400_v58 = vadd.f32 %v399_v55, %v1307_v50  ;;  %v401_v59 = vpop.f32.mrb[9].mxu0 }
 0x101   : > { %851 = vst [vmem:[%s1274_s28 + $0xd0] sm:$0xff] %v787_v53  ;;  %850 = vst [vmem:[%s1274_s28 + $0xc8] sm:$0xff] %v786_v54  ;;  %v513_v60 = vadd.f32 %v512_v57, %v1307_v50  ;;  %v402_v61 = vadd.f32 %v401_v59, %v1307_v50  ;;  %v514_v62 = vpop.f32.mrb[9].mxu1 }
 0x102   : > { %852 = vst [vmem:[%s1274_s28 + $0xd8] sm:$0xff] %v788_v56  ;;  %v793_v1 = vmax.f32 %v400_v58, 0.0  ;;  %v515_v2 = vadd.f32 %v514_v62, %v1307_v50 }
 0x103   : > { %v795_v3 = vmax.f32 %v513_v60, 0.0  ;;  %v794_v5 = vmax.f32 %v402_v61, 0.0  ;;  %v405_v6 = vpop.f32.mrb[10].mxu0 }
 0x104   : > { %857 = vst [vmem:[%s1274_s28 + $0x100] sm:$0xff] %v793_v1  ;;  %v796_v7 = vmax.f32 %v515_v2, 0.0  ;;  %v518_v8 = vpop.f32.mrb[10].mxu1  ;;  %v406_v0 = vadd.f32 %v405_v6, %v1317_v63  ;;  %v407_v9 = vpop.f32.mrb[11].mxu0 }
 0x105   : > { %859 = vst [vmem:[%s1274_s28 + $0x110] sm:$0xff] %v795_v3  ;;  %858 = vst [vmem:[%s1274_s28 + $0x108] sm:$0xff] %v794_v5  ;;  %v519_v10 = vadd.f32 %v518_v8, %v1317_v63  ;;  %v408_v12 = vadd.f32 %v407_v9, %v1317_v63  ;;  %v520_v13 = vpop.f32.mrb[11].mxu1 }
 0x106   : > { %860 = vst [vmem:[%s1274_s28 + $0x118] sm:$0xff] %v796_v7  ;;  %v801_v15 = vmax.f32 %v406_v0, 0.0  ;;  %v521_v16 = vadd.f32 %v520_v13, %v1317_v63 }
 0x107   : > { %v803_v18 = vmax.f32 %v519_v10, 0.0  ;;  %v802_v19 = vmax.f32 %v408_v12, 0.0  ;;  %v411_v20 = vpop.f32.mrb[12].mxu0 }
 0x108   : > { %865 = vst [vmem:[%s1274_s28 + $0x140] sm:$0xff] %v801_v15  ;;  %v804_v21 = vmax.f32 %v521_v16, 0.0  ;;  %v524_v22 = vpop.f32.mrb[12].mxu1  ;;  %v412_v23 = vadd.f32 %v411_v20, %v1327_v14  ;;  %v413_v24 = vpop.f32.mrb[13].mxu0 }
 0x109   : > { %867 = vst [vmem:[%s1274_s28 + $0x150] sm:$0xff] %v803_v18  ;;  %866 = vst [vmem:[%s1274_s28 + $0x148] sm:$0xff] %v802_v19  ;;  %v525_v25 = vadd.f32 %v524_v22, %v1327_v14  ;;  %v414_v26 = vadd.f32 %v413_v24, %v1327_v14  ;;  %v526_v27 = vpop.f32.mrb[13].mxu1 }
 0x10a   : > { %868 = vst [vmem:[%s1274_s28 + $0x158] sm:$0xff] %v804_v21  ;;  %v809_v29 = vmax.f32 %v412_v23, 0.0  ;;  %v527_v30 = vadd.f32 %v526_v27, %v1327_v14 }
 0x10b   : > { %v811_v31 = vmax.f32 %v525_v25, 0.0  ;;  %v810_v32 = vmax.f32 %v414_v26, 0.0  ;;  %v417_v33 = vpop.f32.mrb[14].mxu0 }
 0x10c   : > { %873 = vst [vmem:[%s1274_s28 + $0x180] sm:$0xff] %v809_v29  ;;  %v812_v34 = vmax.f32 %v527_v30, 0.0  ;;  %v530_v35 = vpop.f32.mrb[14].mxu1  ;;  %v418_v36 = vadd.f32 %v417_v33, %v1337_v28  ;;  %v419_v38 = vpop.f32.mrb[15].mxu0 }
 0x10d   : > { %875 = vst [vmem:[%s1274_s28 + $0x190] sm:$0xff] %v811_v31  ;;  %874 = vst [vmem:[%s1274_s28 + $0x188] sm:$0xff] %v810_v32  ;;  %v531_v39 = vadd.f32 %v530_v35, %v1337_v28  ;;  %v420_v40 = vadd.f32 %v419_v38, %v1337_v28  ;;  %v532_v41 = vpop.f32.mrb[15].mxu1 }
 0x10e   : > { %876 = vst [vmem:[%s1274_s28 + $0x198] sm:$0xff] %v812_v34  ;;  %v817_v42 = vmax.f32 %v418_v36, 0.0  ;;  %v533_v43 = vadd.f32 %v532_v41, %v1337_v28 }
 0x10f   : > { %v819_v44 = vmax.f32 %v531_v39, 0.0  ;;  %v818_v45 = vmax.f32 %v420_v40, 0.0  ;;  %v601_v46 = vpop.f32.mrb[16].mxu0 }
 0x110   : > { %881 = vst [vmem:[%s1274_s28 + $0x1c0] sm:$0xff] %v817_v42  ;;  %v820_v47 = vmax.f32 %v533_v43, 0.0  ;;  %v602_v48 = vadd.f32 %v601_v46, %v1267_v4  ;;  %v714_v49 = vpop.f32.mrb[16].mxu1  ;;  %v603_v51 = vpop.f32.mrb[17].mxu0 }
 0x111   : > { %883 = vst [vmem:[%s1274_s28 + $0x1d0] sm:$0xff] %v819_v44  ;;  %882 = vst [vmem:[%s1274_s28 + $0x1c8] sm:$0xff] %v818_v45  ;;  %v715_v52 = vadd.f32 %v714_v49, %v1267_v4  ;;  %v604_v53 = vadd.f32 %v603_v51, %v1267_v4  ;;  %v716_v54 = vpop.f32.mrb[17].mxu1 }
 0x112   : > { %884 = vst [vmem:[%s1274_s28 + $0x1d8] sm:$0xff] %v820_v47  ;;  %v765_v55 = vmax.f32 %v602_v48, 0.0  ;;  %v717_v56 = vadd.f32 %v716_v54, %v1267_v4 }
 0x113   : > { %v767_v57 = vmax.f32 %v715_v52, 0.0  ;;  %v766_v58 = vmax.f32 %v604_v53, 0.0  ;;  %v607_v59 = vpop.f32.mrb[18].mxu0 }
 0x114   : > { %829 = vst [vmem:[%s1274_s28 + $0x20] sm:$0xff] %v765_v55  ;;  %v768_v60 = vmax.f32 %v717_v56, 0.0  ;;  %v608_v61 = vadd.f32 %v607_v59, %v1278_v11  ;;  %v720_v62 = vpop.f32.mrb[18].mxu1  ;;  %v609_v1 = vpop.f32.mrb[19].mxu0 }
 0x115   : > { %831 = vst [vmem:[%s1274_s28 + $0x30] sm:$0xff] %v767_v57  ;;  %830 = vst [vmem:[%s1274_s28 + $0x28] sm:$0xff] %v766_v58  ;;  %v721_v2 = vadd.f32 %v720_v62, %v1278_v11  ;;  %v610_v3 = vadd.f32 %v609_v1, %v1278_v11  ;;  %v722_v5 = vpop.f32.mrb[19].mxu1 }
 0x116   : > { %832 = vst [vmem:[%s1274_s28 + $0x38] sm:$0xff] %v768_v60  ;;  %v773_v4 = vmax.f32 %v608_v61, 0.0  ;;  %v723_v6 = vadd.f32 %v722_v5, %v1278_v11 }
 0x117   : > { %v775_v7 = vmax.f32 %v721_v2, 0.0  ;;  %v774_v8 = vmax.f32 %v610_v3, 0.0  ;;  %v613_v0 = vpop.f32.mrb[20].mxu0 }
 0x118   : > { %837 = vst [vmem:[%s1274_s28 + $0x60] sm:$0xff] %v773_v4  ;;  %v776_v9 = vmax.f32 %v723_v6, 0.0  ;;  %v614_v10 = vadd.f32 %v613_v0, %v1281_v17  ;;  %v726_v12 = vpop.f32.mrb[20].mxu1  ;;  %v615_v13 = vpop.f32.mrb[21].mxu0 }
 0x119   : > { %839 = vst [vmem:[%s1274_s28 + $0x70] sm:$0xff] %v775_v7  ;;  %838 = vst [vmem:[%s1274_s28 + $0x68] sm:$0xff] %v774_v8  ;;  %v727_v15 = vadd.f32 %v726_v12, %v1281_v17  ;;  %v616_v16 = vadd.f32 %v615_v13, %v1281_v17  ;;  %v728_v18 = vpop.f32.mrb[21].mxu1 }
 0x11a   : > { %840 = vst [vmem:[%s1274_s28 + $0x78] sm:$0xff] %v776_v9  ;;  %v781_v11 = vmax.f32 %v614_v10, 0.0  ;;  %v729_v19 = vadd.f32 %v728_v18, %v1281_v17 }
 0x11b   : > { %v783_v20 = vmax.f32 %v727_v15, 0.0  ;;  %v782_v21 = vmax.f32 %v616_v16, 0.0  ;;  %v619_v22 = vpop.f32.mrb[22].mxu0 }
 0x11c   : > { %845 = vst [vmem:[%s1274_s28 + $0xa0] sm:$0xff] %v781_v11  ;;  %v784_v23 = vmax.f32 %v729_v19, 0.0  ;;  %v620_v24 = vadd.f32 %v619_v22, %v1297_v37  ;;  %v732_v25 = vpop.f32.mrb[22].mxu1  ;;  %v621_v26 = vpop.f32.mrb[23].mxu0 }
 0x11d   : > { %847 = vst [vmem:[%s1274_s28 + $0xb0] sm:$0xff] %v783_v20  ;;  %846 = vst [vmem:[%s1274_s28 + $0xa8] sm:$0xff] %v782_v21  ;;  %v733_v27 = vadd.f32 %v732_v25, %v1297_v37  ;;  %v622_v29 = vadd.f32 %v621_v26, %v1297_v37  ;;  %v734_v30 = vpop.f32.mrb[23].mxu1 }
 0x11e   : > { %848 = vst [vmem:[%s1274_s28 + $0xb8] sm:$0xff] %v784_v23  ;;  %v789_v17 = vmax.f32 %v620_v24, 0.0  ;;  %v735_v31 = vadd.f32 %v734_v30, %v1297_v37 }
 0x11f   : > { %v791_v32 = vmax.f32 %v733_v27, 0.0  ;;  %v790_v33 = vmax.f32 %v622_v29, 0.0  ;;  %v625_v34 = vpop.f32.mrb[24].mxu0 }
 0x120   : > { %853 = vst [vmem:[%s1274_s28 + $0xe0] sm:$0xff] %v789_v17  ;;  %v792_v35 = vmax.f32 %v735_v31, 0.0  ;;  %v626_v36 = vadd.f32 %v625_v34, %v1307_v50  ;;  %v738_v38 = vpop.f32.mrb[24].mxu1  ;;  %v627_v39 = vpop.f32.mrb[25].mxu0 }
 0x121   : > { %855 = vst [vmem:[%s1274_s28 + $0xf0] sm:$0xff] %v791_v32  ;;  %854 = vst [vmem:[%s1274_s28 + $0xe8] sm:$0xff] %v790_v33  ;;  %v739_v40 = vadd.f32 %v738_v38, %v1307_v50  ;;  %v628_v41 = vadd.f32 %v627_v39, %v1307_v50  ;;  %v740_v42 = vpop.f32.mrb[25].mxu1 }
 0x122   : > { %856 = vst [vmem:[%s1274_s28 + $0xf8] sm:$0xff] %v792_v35  ;;  %v797_v37 = vmax.f32 %v626_v36, 0.0  ;;  %v741_v43 = vadd.f32 %v740_v42, %v1307_v50 }
 0x123   : > { %v799_v44 = vmax.f32 %v739_v40, 0.0  ;;  %v798_v45 = vmax.f32 %v628_v41, 0.0  ;;  %v631_v46 = vpop.f32.mrb[26].mxu0 }
 0x124   : > { %861 = vst [vmem:[%s1274_s28 + $0x120] sm:$0xff] %v797_v37  ;;  %v800_v47 = vmax.f32 %v741_v43, 0.0  ;;  %v632_v48 = vadd.f32 %v631_v46, %v1317_v63  ;;  %v744_v49 = vpop.f32.mrb[26].mxu1  ;;  %v633_v51 = vpop.f32.mrb[27].mxu0 }
 0x125   : > { %863 = vst [vmem:[%s1274_s28 + $0x130] sm:$0xff] %v799_v44  ;;  %862 = vst [vmem:[%s1274_s28 + $0x128] sm:$0xff] %v798_v45  ;;  %v745_v52 = vadd.f32 %v744_v49, %v1317_v63  ;;  %v634_v53 = vadd.f32 %v633_v51, %v1317_v63  ;;  %v746_v54 = vpop.f32.mrb[27].mxu1 }
 0x126   : > { %864 = vst [vmem:[%s1274_s28 + $0x138] sm:$0xff] %v800_v47  ;;  %v805_v50 = vmax.f32 %v632_v48, 0.0  ;;  %v747_v55 = vadd.f32 %v746_v54, %v1317_v63 }
 0x127   : > { %v807_v56 = vmax.f32 %v745_v52, 0.0  ;;  %v806_v57 = vmax.f32 %v634_v53, 0.0  ;;  %v637_v58 = vpop.f32.mrb[28].mxu0 }
 0x128   : > { %869 = vst [vmem:[%s1274_s28 + $0x160] sm:$0xff] %v805_v50  ;;  %v808_v59 = vmax.f32 %v747_v55, 0.0  ;;  %v638_v60 = vadd.f32 %v637_v58, %v1327_v14  ;;  %v750_v61 = vpop.f32.mrb[28].mxu1  ;;  %v639_v62 = vpop.f32.mrb[29].mxu0 }
 0x129   : > { %871 = vst [vmem:[%s1274_s28 + $0x170] sm:$0xff] %v807_v56  ;;  %870 = vst [vmem:[%s1274_s28 + $0x168] sm:$0xff] %v806_v57  ;;  %v751_v1 = vadd.f32 %v750_v61, %v1327_v14  ;;  %v640_v2 = vadd.f32 %v639_v62, %v1327_v14  ;;  %v752_v3 = vpop.f32.mrb[29].mxu1 }
 0x12a   : > { %872 = vst [vmem:[%s1274_s28 + $0x178] sm:$0xff] %v808_v59  ;;  %v813_v63 = vmax.f32 %v638_v60, 0.0  ;;  %v753_v5 = vadd.f32 %v752_v3, %v1327_v14 }
 0x12b   : > { %v815_v4 = vmax.f32 %v751_v1, 0.0  ;;  %v814_v6 = vmax.f32 %v640_v2, 0.0  ;;  %v643_v7 = vpop.f32.mrb[30].mxu0 }
 0x12c   : > { %877 = vst [vmem:[%s1274_s28 + $0x1a0] sm:$0xff] %v813_v63  ;;  %v816_v8 = vmax.f32 %v753_v5, 0.0  ;;  %v644_v0 = vadd.f32 %v643_v7, %v1337_v28  ;;  %v756_v9 = vpop.f32.mrb[30].mxu1  ;;  %v645_v10 = vpop.f32.mrb[31].mxu0 }
 0x12d   : > { %879 = vst [vmem:[%s1274_s28 + $0x1b0] sm:$0xff] %v815_v4  ;;  %878 = vst [vmem:[%s1274_s28 + $0x1a8] sm:$0xff] %v814_v6  ;;  %v757_v12 = vadd.f32 %v756_v9, %v1337_v28  ;;  %v646_v13 = vadd.f32 %v645_v10, %v1337_v28  ;;  %v758_v14 = vpop.f32.mrb[31].mxu1 }
 0x12e   : > { %880 = vst [vmem:[%s1274_s28 + $0x1b8] sm:$0xff] %v816_v8  ;;  %v821_v15 = vmax.f32 %v644_v0, 0.0  ;;  %v759_v16 = vadd.f32 %v758_v14, %v1337_v28 }
 0x12f   : > { %v823_v18 = vmax.f32 %v757_v12, 0.0  ;;  %v822_v11 = vmax.f32 %v646_v13, 0.0 }
 0x130   : > { %885 = vst [vmem:[%s1274_s28 + $0x1e0] sm:$0xff] %v821_v15  ;;  %v824_v19 = vmax.f32 %v759_v16, 0.0 }
 0x131   : > { %887 = vst [vmem:[%s1274_s28 + $0x1f0] sm:$0xff] %v823_v18  ;;  %886 = vst [vmem:[%s1274_s28 + $0x1e8] sm:$0xff] %v822_v11 }
 0x132   : > { %888 = vst [vmem:[%s1274_s28 + $0x1f8] sm:$0xff] %v824_v19 }
 0x133 PF: > { %s13_s12 = sadd.s32 1, %s1056_s12  }
 0x134   : > { %p10_p4 = scmp.ge.s32.totalorder %s13_s12, 4  }
 0x136   :  { %12 = sbr.rel (!%p10_p4) target bundleno = 1 (0x1), region = 62 }

// kernel: net_one_forward.3
= control target key start
LH: loop header
LB: loop body
LE: loop exit
PB: predicated region body
PF: predicated region fallthrough
CT: control target
= control target key end

     0   :  { %8 = vsyncpa [#allocation5], 0  ;;  %s6686_s12 = smov 0   ;;  %s6688_s13 = smov 0   ;;  %s7641_s0 = inlined_call_operand.vmem [shape: f32[2,65536], index: 0, kind: input, shape index: {}]   ;;  %s7642_s1 = inlined_call_operand.vmem [shape: f32[10,65536], index: 1, kind: input, shape index: {}]   ;;  %s7643_s2 = inlined_call_operand.vmem [shape: f32[1,10], index: 2, kind: input, shape index: {}]   ;;  %s7644_s3 = inlined_call_operand.hbm [shape: f32[2,10], index: 3, kind: output, shape index: {}]  }
   0x1   :  { %s6690_s14 = smov 0  }
   0x2 LB: > { %s6702_s15 = sadd.s32 4294967295, %s6661_s14   ;;  %s6705_s16 = sadd.s32 1, %s6661_s14   ;;  %s6661_s14 = sphi %s6690_s14, %s7647_s14   ;;  %s6657_s13 = sphi %s6688_s13, %s7646_s13   ;;  %s6653_s12 = sphi %s6686_s12, %s7645_s12  }
   0x3   : > { %s44_s17 = ssub.s32 %s6661_s14, %s6705_s16  ;;  %s47_s18 = sadd.s32 1, %s6657_s13 }
   0x4   : > { %p45_p0 = scmp.eq.s32.totalorder %s44_s17, 0  ;;  %p54_p1 = scmp.ne.s32.totalorder %s6657_s13, %s6653_s12 }
   0x5   : > { %p55_p2 = scmp.eq.s32.totalorder %s6661_s14, 0  ;;  %p6272_p4 = scmp.ge.s32.totalorder %s6661_s14, 4 }
   0x6   : > { %s6714_s19 = scalar_select %p45_p0, %s6657_s13, %s47_s18  }
   0x7   : > { %p56_p3 = por %p55_p2, %p54_p1  ;;  %125 = sbr.rel (%p6272_p4) target bundleno = 146 (0x92), region = 20 }
   0xe   : > { %137 = sbr.rel (!%p56_p3) target bundleno = 146 (0x92), region = 28  ;;  %s139_s20 = sand.u32 (%p56_p3), 1, %s6657_s13  }
   0xf   : > { %s6287_s21 = sshll.u32 (%p56_p3), %s6661_s14, 10  ;;  %s6273_s22 = sshll.u32 (%p56_p3), %s139_s20, 11 }
  0x10   : > { %s6722_s25 = scalar_lea.vmem (%p56_p3), %s7642_s1, %s6287_s21  ;;  %s6727_s26 = scalar_lea.vmem (%p56_p3), [#allocation3], %s6273_s22 }
  0x11   : > { %v157_v0 = vld [vmem:[%s6722_s25] sm:$0xff] (%p56_p3)  ;;  %v159_v1 = vld [vmem:[%s6722_s25 + $0x8] sm:$0xff] (%p56_p3)  ;;  %v161_v2 = vld [vmem:[%s6722_s25 + $0x10] sm:$0xff] (%p56_p3) }
  0x12   : > { %158 = vst [vmem:[%s6727_s26] sm:$0xff] (%p56_p3), %v157_v0  ;;  %160 = vst [vmem:[%s6727_s26 + $0x8] sm:$0xff] (%p56_p3), %v159_v1  ;;  %v163_v3 = vld [vmem:[%s6722_s25 + $0x18] sm:$0xff] (%p56_p3)  ;;  %v165_v4 = vld [vmem:[%s6722_s25 + $0x20] sm:$0xff] (%p56_p3) }
  0x13   : > { %162 = vst [vmem:[%s6727_s26 + $0x10] sm:$0xff] (%p56_p3), %v161_v2  ;;  %v167_v5 = vld [vmem:[%s6722_s25 + $0x28] sm:$0xff] (%p56_p3)  ;;  %164 = vst [vmem:[%s6727_s26 + $0x18] sm:$0xff] (%p56_p3), %v163_v3  ;;  %v169_v6 = vld [vmem:[%s6722_s25 + $0x30] sm:$0xff] (%p56_p3) }
  0x14   : > { %166 = vst [vmem:[%s6727_s26 + $0x20] sm:$0xff] (%p56_p3), %v165_v4  ;;  %168 = vst [vmem:[%s6727_s26 + $0x28] sm:$0xff] (%p56_p3), %v167_v5  ;;  %v171_v7 = vld [vmem:[%s6722_s25 + $0x38] sm:$0xff] (%p56_p3)  ;;  %v173_v8 = vld [vmem:[%s6722_s25 + $0x40] sm:$0xff] (%p56_p3) }
  0x15   : > { %170 = vst [vmem:[%s6727_s26 + $0x30] sm:$0xff] %v169_v6  ;;  %172 = vst [vmem:[%s6727_s26 + $0x38] sm:$0xff] %v171_v7  ;;  %v175_v9 = vld [vmem:[%s6722_s25 + $0x48] sm:$0xff]  ;;  %v177_v10 = vld [vmem:[%s6722_s25 + $0x50] sm:$0xff] }
  0x16   : > { %174 = vst [vmem:[%s6727_s26 + $0x40] sm:$0xff] %v173_v8  ;;  %v179_v11 = vld [vmem:[%s6722_s25 + $0x58] sm:$0xff]  ;;  %176 = vst [vmem:[%s6727_s26 + $0x48] sm:$0xff] %v175_v9  ;;  %v181_v12 = vld [vmem:[%s6722_s25 + $0x60] sm:$0xff] }
  0x17   : > { %178 = vst [vmem:[%s6727_s26 + $0x50] sm:$0xff] %v177_v10  ;;  %180 = vst [vmem:[%s6727_s26 + $0x58] sm:$0xff] %v179_v11  ;;  %v183_v13 = vld [vmem:[%s6722_s25 + $0x68] sm:$0xff]  ;;  %v185_v14 = vld [vmem:[%s6722_s25 + $0x70] sm:$0xff] }
  0x18   : > { %182 = vst [vmem:[%s6727_s26 + $0x60] sm:$0xff] %v181_v12  ;;  %184 = vst [vmem:[%s6727_s26 + $0x68] sm:$0xff] %v183_v13  ;;  %v187_v15 = vld [vmem:[%s6722_s25 + $0x78] sm:$0xff]  ;;  %v189_v16 = vld [vmem:[%s6722_s25 + $0x80] sm:$0xff] }
  0x19   : > { %186 = vst [vmem:[%s6727_s26 + $0x70] sm:$0xff] %v185_v14  ;;  %v191_v17 = vld [vmem:[%s6722_s25 + $0x88] sm:$0xff]  ;;  %188 = vst [vmem:[%s6727_s26 + $0x78] sm:$0xff] %v187_v15  ;;  %v193_v18 = vld [vmem:[%s6722_s25 + $0x90] sm:$0xff] }
  0x1a   : > { %190 = vst [vmem:[%s6727_s26 + $0x80] sm:$0xff] %v189_v16  ;;  %192 = vst [vmem:[%s6727_s26 + $0x88] sm:$0xff] %v191_v17  ;;  %v195_v19 = vld [vmem:[%s6722_s25 + $0x98] sm:$0xff]  ;;  %v197_v20 = vld [vmem:[%s6722_s25 + $0xa0] sm:$0xff] }
  0x1b   : > { %194 = vst [vmem:[%s6727_s26 + $0x90] sm:$0xff] %v193_v18  ;;  %196 = vst [vmem:[%s6727_s26 + $0x98] sm:$0xff] %v195_v19  ;;  %v199_v21 = vld [vmem:[%s6722_s25 + $0xa8] sm:$0xff]  ;;  %v201_v22 = vld [vmem:[%s6722_s25 + $0xb0] sm:$0xff] }
  0x1c   : > { %198 = vst [vmem:[%s6727_s26 + $0xa0] sm:$0xff] %v197_v20  ;;  %v203_v23 = vld [vmem:[%s6722_s25 + $0xb8] sm:$0xff]  ;;  %200 = vst [vmem:[%s6727_s26 + $0xa8] sm:$0xff] %v199_v21  ;;  %v205_v24 = vld [vmem:[%s6722_s25 + $0xc0] sm:$0xff] }
  0x1d   : > { %202 = vst [vmem:[%s6727_s26 + $0xb0] sm:$0xff] %v201_v22  ;;  %204 = vst [vmem:[%s6727_s26 + $0xb8] sm:$0xff] %v203_v23  ;;  %v207_v25 = vld [vmem:[%s6722_s25 + $0xc8] sm:$0xff]  ;;  %v209_v26 = vld [vmem:[%s6722_s25 + $0xd0] sm:$0xff] }
  0x1e   : > { %206 = vst [vmem:[%s6727_s26 + $0xc0] sm:$0xff] %v205_v24  ;;  %208 = vst [vmem:[%s6727_s26 + $0xc8] sm:$0xff] %v207_v25  ;;  %v211_v27 = vld [vmem:[%s6722_s25 + $0xd8] sm:$0xff]  ;;  %v213_v28 = vld [vmem:[%s6722_s25 + $0xe0] sm:$0xff] }
  0x1f   : > { %210 = vst [vmem:[%s6727_s26 + $0xd0] sm:$0xff] %v209_v26  ;;  %v215_v29 = vld [vmem:[%s6722_s25 + $0xe8] sm:$0xff]  ;;  %212 = vst [vmem:[%s6727_s26 + $0xd8] sm:$0xff] %v211_v27  ;;  %v217_v30 = vld [vmem:[%s6722_s25 + $0xf0] sm:$0xff] }
  0x20   : > { %214 = vst [vmem:[%s6727_s26 + $0xe0] sm:$0xff] %v213_v28  ;;  %216 = vst [vmem:[%s6727_s26 + $0xe8] sm:$0xff] %v215_v29  ;;  %v219_v31 = vld [vmem:[%s6722_s25 + $0xf8] sm:$0xff]  ;;  %v221_v32 = vld [vmem:[%s6722_s25 + $0x100] sm:$0xff] }
  0x21   : > { %218 = vst [vmem:[%s6727_s26 + $0xf0] sm:$0xff] %v217_v30  ;;  %220 = vst [vmem:[%s6727_s26 + $0xf8] sm:$0xff] %v219_v31  ;;  %v223_v33 = vld [vmem:[%s6722_s25 + $0x108] sm:$0xff]  ;;  %v225_v34 = vld [vmem:[%s6722_s25 + $0x110] sm:$0xff] }
  0x22   : > { %222 = vst [vmem:[%s6727_s26 + $0x100] sm:$0xff] %v221_v32  ;;  %v227_v35 = vld [vmem:[%s6722_s25 + $0x118] sm:$0xff]  ;;  %224 = vst [vmem:[%s6727_s26 + $0x108] sm:$0xff] %v223_v33  ;;  %v229_v36 = vld [vmem:[%s6722_s25 + $0x120] sm:$0xff] }
  0x23   : > { %226 = vst [vmem:[%s6727_s26 + $0x110] sm:$0xff] %v225_v34  ;;  %228 = vst [vmem:[%s6727_s26 + $0x118] sm:$0xff] %v227_v35  ;;  %v231_v37 = vld [vmem:[%s6722_s25 + $0x128] sm:$0xff]  ;;  %v233_v38 = vld [vmem:[%s6722_s25 + $0x130] sm:$0xff] }
  0x24   : > { %230 = vst [vmem:[%s6727_s26 + $0x120] sm:$0xff] %v229_v36  ;;  %232 = vst [vmem:[%s6727_s26 + $0x128] sm:$0xff] %v231_v37  ;;  %v235_v39 = vld [vmem:[%s6722_s25 + $0x138] sm:$0xff]  ;;  %v237_v40 = vld [vmem:[%s6722_s25 + $0x140] sm:$0xff] }
  0x25   : > { %234 = vst [vmem:[%s6727_s26 + $0x130] sm:$0xff] %v233_v38  ;;  %v239_v41 = vld [vmem:[%s6722_s25 + $0x148] sm:$0xff]  ;;  %236 = vst [vmem:[%s6727_s26 + $0x138] sm:$0xff] %v235_v39  ;;  %v241_v42 = vld [vmem:[%s6722_s25 + $0x150] sm:$0xff] }
  0x26   : > { %238 = vst [vmem:[%s6727_s26 + $0x140] sm:$0xff] %v237_v40  ;;  %240 = vst [vmem:[%s6727_s26 + $0x148] sm:$0xff] %v239_v41  ;;  %v243_v43 = vld [vmem:[%s6722_s25 + $0x158] sm:$0xff]  ;;  %v245_v44 = vld [vmem:[%s6722_s25 + $0x160] sm:$0xff] }
  0x27   : > { %242 = vst [vmem:[%s6727_s26 + $0x150] sm:$0xff] %v241_v42  ;;  %244 = vst [vmem:[%s6727_s26 + $0x158] sm:$0xff] %v243_v43  ;;  %v247_v45 = vld [vmem:[%s6722_s25 + $0x168] sm:$0xff]  ;;  %v249_v46 = vld [vmem:[%s6722_s25 + $0x170] sm:$0xff] }
  0x28   : > { %246 = vst [vmem:[%s6727_s26 + $0x160] sm:$0xff] %v245_v44  ;;  %v251_v47 = vld [vmem:[%s6722_s25 + $0x178] sm:$0xff]  ;;  %248 = vst [vmem:[%s6727_s26 + $0x168] sm:$0xff] %v247_v45  ;;  %v253_v48 = vld [vmem:[%s6722_s25 + $0x180] sm:$0xff] }
  0x29   : > { %250 = vst [vmem:[%s6727_s26 + $0x170] sm:$0xff] %v249_v46  ;;  %252 = vst [vmem:[%s6727_s26 + $0x178] sm:$0xff] %v251_v47  ;;  %v255_v49 = vld [vmem:[%s6722_s25 + $0x188] sm:$0xff]  ;;  %v257_v50 = vld [vmem:[%s6722_s25 + $0x190] sm:$0xff] }
  0x2a   : > { %254 = vst [vmem:[%s6727_s26 + $0x180] sm:$0xff] %v253_v48  ;;  %256 = vst [vmem:[%s6727_s26 + $0x188] sm:$0xff] %v255_v49  ;;  %v259_v51 = vld [vmem:[%s6722_s25 + $0x198] sm:$0xff]  ;;  %v261_v52 = vld [vmem:[%s6722_s25 + $0x1a0] sm:$0xff] }
  0x2b   : > { %258 = vst [vmem:[%s6727_s26 + $0x190] sm:$0xff] %v257_v50  ;;  %v263_v53 = vld [vmem:[%s6722_s25 + $0x1a8] sm:$0xff]  ;;  %260 = vst [vmem:[%s6727_s26 + $0x198] sm:$0xff] %v259_v51  ;;  %v265_v54 = vld [vmem:[%s6722_s25 + $0x1b0] sm:$0xff] }
  0x2c   : > { %262 = vst [vmem:[%s6727_s26 + $0x1a0] sm:$0xff] %v261_v52  ;;  %264 = vst [vmem:[%s6727_s26 + $0x1a8] sm:$0xff] %v263_v53  ;;  %v267_v55 = vld [vmem:[%s6722_s25 + $0x1b8] sm:$0xff]  ;;  %v269_v56 = vld [vmem:[%s6722_s25 + $0x1c0] sm:$0xff] }
  0x2d   : > { %266 = vst [vmem:[%s6727_s26 + $0x1b0] sm:$0xff] %v265_v54  ;;  %268 = vst [vmem:[%s6727_s26 + $0x1b8] sm:$0xff] %v267_v55  ;;  %v271_v57 = vld [vmem:[%s6722_s25 + $0x1c8] sm:$0xff]  ;;  %v273_v58 = vld [vmem:[%s6722_s25 + $0x1d0] sm:$0xff] }
  0x2e   : > { %270 = vst [vmem:[%s6727_s26 + $0x1c0] sm:$0xff] %v269_v56  ;;  %v275_v59 = vld [vmem:[%s6722_s25 + $0x1d8] sm:$0xff]  ;;  %272 = vst [vmem:[%s6727_s26 + $0x1c8] sm:$0xff] %v271_v57  ;;  %v277_v60 = vld [vmem:[%s6722_s25 + $0x1e0] sm:$0xff] }
  0x2f   : > { %274 = vst [vmem:[%s6727_s26 + $0x1d0] sm:$0xff] %v273_v58  ;;  %276 = vst [vmem:[%s6727_s26 + $0x1d8] sm:$0xff] %v275_v59  ;;  %v279_v61 = vld [vmem:[%s6722_s25 + $0x1e8] sm:$0xff]  ;;  %v281_v62 = vld [vmem:[%s6722_s25 + $0x1f0] sm:$0xff] }
  0x30   : > { %278 = vst [vmem:[%s6727_s26 + $0x1e0] sm:$0xff] %v277_v60  ;;  %280 = vst [vmem:[%s6727_s26 + $0x1e8] sm:$0xff] %v279_v61  ;;  %v283_v63 = vld [vmem:[%s6722_s25 + $0x1f8] sm:$0xff]  ;;  %v285_v0 = vld [vmem:[%s6722_s25 + $0x200] sm:$0xff] }
  0x31   : > { %282 = vst [vmem:[%s6727_s26 + $0x1f0] sm:$0xff] %v281_v62  ;;  %v287_v1 = vld [vmem:[%s6722_s25 + $0x208] sm:$0xff]  ;;  %284 = vst [vmem:[%s6727_s26 + $0x1f8] sm:$0xff] %v283_v63  ;;  %v289_v2 = vld [vmem:[%s6722_s25 + $0x210] sm:$0xff] }
  0x32   : > { %286 = vst [vmem:[%s6727_s26 + $0x200] sm:$0xff] %v285_v0  ;;  %288 = vst [vmem:[%s6727_s26 + $0x208] sm:$0xff] %v287_v1  ;;  %v291_v3 = vld [vmem:[%s6722_s25 + $0x218] sm:$0xff]  ;;  %v293_v4 = vld [vmem:[%s6722_s25 + $0x220] sm:$0xff] }
  0x33   : > { %290 = vst [vmem:[%s6727_s26 + $0x210] sm:$0xff] %v289_v2  ;;  %292 = vst [vmem:[%s6727_s26 + $0x218] sm:$0xff] %v291_v3  ;;  %v295_v5 = vld [vmem:[%s6722_s25 + $0x228] sm:$0xff]  ;;  %v297_v6 = vld [vmem:[%s6722_s25 + $0x230] sm:$0xff] }
  0x34   : > { %294 = vst [vmem:[%s6727_s26 + $0x220] sm:$0xff] %v293_v4  ;;  %v299_v7 = vld [vmem:[%s6722_s25 + $0x238] sm:$0xff]  ;;  %296 = vst [vmem:[%s6727_s26 + $0x228] sm:$0xff] %v295_v5  ;;  %v301_v8 = vld [vmem:[%s6722_s25 + $0x240] sm:$0xff] }
  0x35   : > { %298 = vst [vmem:[%s6727_s26 + $0x230] sm:$0xff] %v297_v6  ;;  %300 = vst [vmem:[%s6727_s26 + $0x238] sm:$0xff] %v299_v7  ;;  %v303_v9 = vld [vmem:[%s6722_s25 + $0x248] sm:$0xff]  ;;  %v305_v10 = vld [vmem:[%s6722_s25 + $0x250] sm:$0xff] }
  0x36   : > { %302 = vst [vmem:[%s6727_s26 + $0x240] sm:$0xff] %v301_v8  ;;  %304 = vst [vmem:[%s6727_s26 + $0x248] sm:$0xff] %v303_v9  ;;  %v307_v11 = vld [vmem:[%s6722_s25 + $0x258] sm:$0xff]  ;;  %v309_v12 = vld [vmem:[%s6722_s25 + $0x260] sm:$0xff] }
  0x37   : > { %306 = vst [vmem:[%s6727_s26 + $0x250] sm:$0xff] %v305_v10  ;;  %v311_v13 = vld [vmem:[%s6722_s25 + $0x268] sm:$0xff]  ;;  %308 = vst [vmem:[%s6727_s26 + $0x258] sm:$0xff] %v307_v11  ;;  %v313_v14 = vld [vmem:[%s6722_s25 + $0x270] sm:$0xff] }
  0x38   : > { %310 = vst [vmem:[%s6727_s26 + $0x260] sm:$0xff] %v309_v12  ;;  %312 = vst [vmem:[%s6727_s26 + $0x268] sm:$0xff] %v311_v13  ;;  %v315_v15 = vld [vmem:[%s6722_s25 + $0x278] sm:$0xff]  ;;  %v317_v16 = vld [vmem:[%s6722_s25 + $0x280] sm:$0xff] }
  0x39   : > { %314 = vst [vmem:[%s6727_s26 + $0x270] sm:$0xff] %v313_v14  ;;  %316 = vst [vmem:[%s6727_s26 + $0x278] sm:$0xff] %v315_v15  ;;  %v319_v17 = vld [vmem:[%s6722_s25 + $0x288] sm:$0xff]  ;;  %v321_v18 = vld [vmem:[%s6722_s25 + $0x290] sm:$0xff] }
  0x3a   : > { %318 = vst [vmem:[%s6727_s26 + $0x280] sm:$0xff] %v317_v16  ;;  %v323_v19 = vld [vmem:[%s6722_s25 + $0x298] sm:$0xff]  ;;  %320 = vst [vmem:[%s6727_s26 + $0x288] sm:$0xff] %v319_v17  ;;  %v325_v20 = vld [vmem:[%s6722_s25 + $0x2a0] sm:$0xff] }
  0x3b   : > { %322 = vst [vmem:[%s6727_s26 + $0x290] sm:$0xff] %v321_v18  ;;  %324 = vst [vmem:[%s6727_s26 + $0x298] sm:$0xff] %v323_v19  ;;  %v327_v21 = vld [vmem:[%s6722_s25 + $0x2a8] sm:$0xff]  ;;  %v329_v22 = vld [vmem:[%s6722_s25 + $0x2b0] sm:$0xff] }
  0x3c   : > { %326 = vst [vmem:[%s6727_s26 + $0x2a0] sm:$0xff] %v325_v20  ;;  %328 = vst [vmem:[%s6727_s26 + $0x2a8] sm:$0xff] %v327_v21  ;;  %v331_v23 = vld [vmem:[%s6722_s25 + $0x2b8] sm:$0xff]  ;;  %v333_v24 = vld [vmem:[%s6722_s25 + $0x2c0] sm:$0xff] }
  0x3d   : > { %330 = vst [vmem:[%s6727_s26 + $0x2b0] sm:$0xff] %v329_v22  ;;  %v335_v25 = vld [vmem:[%s6722_s25 + $0x2c8] sm:$0xff]  ;;  %332 = vst [vmem:[%s6727_s26 + $0x2b8] sm:$0xff] %v331_v23  ;;  %v337_v26 = vld [vmem:[%s6722_s25 + $0x2d0] sm:$0xff] }
  0x3e   : > { %334 = vst [vmem:[%s6727_s26 + $0x2c0] sm:$0xff] %v333_v24  ;;  %336 = vst [vmem:[%s6727_s26 + $0x2c8] sm:$0xff] %v335_v25  ;;  %v339_v27 = vld [vmem:[%s6722_s25 + $0x2d8] sm:$0xff]  ;;  %v341_v28 = vld [vmem:[%s6722_s25 + $0x2e0] sm:$0xff] }
  0x3f   : > { %338 = vst [vmem:[%s6727_s26 + $0x2d0] sm:$0xff] %v337_v26  ;;  %340 = vst [vmem:[%s6727_s26 + $0x2d8] sm:$0xff] %v339_v27  ;;  %v343_v29 = vld [vmem:[%s6722_s25 + $0x2e8] sm:$0xff]  ;;  %v345_v30 = vld [vmem:[%s6722_s25 + $0x2f0] sm:$0xff] }
  0x40   : > { %342 = vst [vmem:[%s6727_s26 + $0x2e0] sm:$0xff] %v341_v28  ;;  %v347_v31 = vld [vmem:[%s6722_s25 + $0x2f8] sm:$0xff]  ;;  %344 = vst [vmem:[%s6727_s26 + $0x2e8] sm:$0xff] %v343_v29  ;;  %v349_v32 = vld [vmem:[%s6722_s25 + $0x300] sm:$0xff] }
  0x41   : > { %346 = vst [vmem:[%s6727_s26 + $0x2f0] sm:$0xff] %v345_v30  ;;  %348 = vst [vmem:[%s6727_s26 + $0x2f8] sm:$0xff] %v347_v31  ;;  %v351_v33 = vld [vmem:[%s6722_s25 + $0x308] sm:$0xff]  ;;  %v353_v34 = vld [vmem:[%s6722_s25 + $0x310] sm:$0xff] }
  0x42   : > { %350 = vst [vmem:[%s6727_s26 + $0x300] sm:$0xff] %v349_v32  ;;  %352 = vst [vmem:[%s6727_s26 + $0x308] sm:$0xff] %v351_v33  ;;  %v355_v35 = vld [vmem:[%s6722_s25 + $0x318] sm:$0xff]  ;;  %v357_v36 = vld [vmem:[%s6722_s25 + $0x320] sm:$0xff] }
  0x43   : > { %354 = vst [vmem:[%s6727_s26 + $0x310] sm:$0xff] %v353_v34  ;;  %v359_v37 = vld [vmem:[%s6722_s25 + $0x328] sm:$0xff]  ;;  %356 = vst [vmem:[%s6727_s26 + $0x318] sm:$0xff] %v355_v35  ;;  %v361_v38 = vld [vmem:[%s6722_s25 + $0x330] sm:$0xff] }
  0x44   : > { %358 = vst [vmem:[%s6727_s26 + $0x320] sm:$0xff] %v357_v36  ;;  %360 = vst [vmem:[%s6727_s26 + $0x328] sm:$0xff] %v359_v37  ;;  %v363_v39 = vld [vmem:[%s6722_s25 + $0x338] sm:$0xff]  ;;  %v365_v40 = vld [vmem:[%s6722_s25 + $0x340] sm:$0xff] }
  0x45   : > { %362 = vst [vmem:[%s6727_s26 + $0x330] sm:$0xff] %v361_v38  ;;  %364 = vst [vmem:[%s6727_s26 + $0x338] sm:$0xff] %v363_v39  ;;  %v367_v41 = vld [vmem:[%s6722_s25 + $0x348] sm:$0xff]  ;;  %v369_v42 = vld [vmem:[%s6722_s25 + $0x350] sm:$0xff] }
  0x46   : > { %366 = vst [vmem:[%s6727_s26 + $0x340] sm:$0xff] %v365_v40  ;;  %v371_v43 = vld [vmem:[%s6722_s25 + $0x358] sm:$0xff]  ;;  %368 = vst [vmem:[%s6727_s26 + $0x348] sm:$0xff] %v367_v41  ;;  %v373_v44 = vld [vmem:[%s6722_s25 + $0x360] sm:$0xff] }
  0x47   : > { %370 = vst [vmem:[%s6727_s26 + $0x350] sm:$0xff] %v369_v42  ;;  %372 = vst [vmem:[%s6727_s26 + $0x358] sm:$0xff] %v371_v43  ;;  %v375_v45 = vld [vmem:[%s6722_s25 + $0x368] sm:$0xff]  ;;  %v377_v46 = vld [vmem:[%s6722_s25 + $0x370] sm:$0xff] }
  0x48   : > { %374 = vst [vmem:[%s6727_s26 + $0x360] sm:$0xff] %v373_v44  ;;  %376 = vst [vmem:[%s6727_s26 + $0x368] sm:$0xff] %v375_v45  ;;  %v379_v47 = vld [vmem:[%s6722_s25 + $0x378] sm:$0xff]  ;;  %v381_v48 = vld [vmem:[%s6722_s25 + $0x380] sm:$0xff] }
  0x49   : > { %378 = vst [vmem:[%s6727_s26 + $0x370] sm:$0xff] %v377_v46  ;;  %v383_v49 = vld [vmem:[%s6722_s25 + $0x388] sm:$0xff]  ;;  %380 = vst [vmem:[%s6727_s26 + $0x378] sm:$0xff] %v379_v47  ;;  %v385_v50 = vld [vmem:[%s6722_s25 + $0x390] sm:$0xff] }
  0x4a   : > { %382 = vst [vmem:[%s6727_s26 + $0x380] sm:$0xff] %v381_v48  ;;  %384 = vst [vmem:[%s6727_s26 + $0x388] sm:$0xff] %v383_v49  ;;  %v387_v51 = vld [vmem:[%s6722_s25 + $0x398] sm:$0xff]  ;;  %v389_v52 = vld [vmem:[%s6722_s25 + $0x3a0] sm:$0xff] }
  0x4b   : > { %386 = vst [vmem:[%s6727_s26 + $0x390] sm:$0xff] %v385_v50  ;;  %388 = vst [vmem:[%s6727_s26 + $0x398] sm:$0xff] %v387_v51  ;;  %v391_v53 = vld [vmem:[%s6722_s25 + $0x3a8] sm:$0xff]  ;;  %v393_v54 = vld [vmem:[%s6722_s25 + $0x3b0] sm:$0xff] }
  0x4c   : > { %390 = vst [vmem:[%s6727_s26 + $0x3a0] sm:$0xff] %v389_v52  ;;  %v395_v55 = vld [vmem:[%s6722_s25 + $0x3b8] sm:$0xff]  ;;  %392 = vst [vmem:[%s6727_s26 + $0x3a8] sm:$0xff] %v391_v53  ;;  %v397_v56 = vld [vmem:[%s6722_s25 + $0x3c0] sm:$0xff] }
  0x4d   : > { %394 = vst [vmem:[%s6727_s26 + $0x3b0] sm:$0xff] %v393_v54  ;;  %396 = vst [vmem:[%s6727_s26 + $0x3b8] sm:$0xff] %v395_v55  ;;  %v399_v57 = vld [vmem:[%s6722_s25 + $0x3c8] sm:$0xff]  ;;  %v401_v58 = vld [vmem:[%s6722_s25 + $0x3d0] sm:$0xff] }
  0x4e   : > { %398 = vst [vmem:[%s6727_s26 + $0x3c0] sm:$0xff] %v397_v56  ;;  %400 = vst [vmem:[%s6727_s26 + $0x3c8] sm:$0xff] %v399_v57  ;;  %v403_v59 = vld [vmem:[%s6722_s25 + $0x3d8] sm:$0xff]  ;;  %v405_v60 = vld [vmem:[%s6722_s25 + $0x3e0] sm:$0xff] }
  0x4f   : > { %402 = vst [vmem:[%s6727_s26 + $0x3d0] sm:$0xff] %v401_v58  ;;  %v407_v61 = vld [vmem:[%s6722_s25 + $0x3e8] sm:$0xff]  ;;  %404 = vst [vmem:[%s6727_s26 + $0x3d8] sm:$0xff] %v403_v59  ;;  %v409_v62 = vld [vmem:[%s6722_s25 + $0x3f0] sm:$0xff] }
  0x50   : > { %406 = vst [vmem:[%s6727_s26 + $0x3e0] sm:$0xff] %v405_v60  ;;  %408 = vst [vmem:[%s6727_s26 + $0x3e8] sm:$0xff] %v407_v61  ;;  %v411_v63 = vld [vmem:[%s6722_s25 + $0x3f8] sm:$0xff]  ;;  %v413_v0 = vld [vmem:[%s6722_s25 + $0x1000] sm:$0xff] }
  0x51   : > { %410 = vst [vmem:[%s6727_s26 + $0x3f0] sm:$0xff] %v409_v62  ;;  %412 = vst [vmem:[%s6727_s26 + $0x3f8] sm:$0xff] %v411_v63  ;;  %v415_v1 = vld [vmem:[%s6722_s25 + $0x1008] sm:$0xff]  ;;  %v417_v2 = vld [vmem:[%s6722_s25 + $0x1010] sm:$0xff] }
  0x52   : > { %414 = vst [vmem:[%s6727_s26 + $0x400] sm:$0xff] %v413_v0  ;;  %v419_v3 = vld [vmem:[%s6722_s25 + $0x1018] sm:$0xff]  ;;  %416 = vst [vmem:[%s6727_s26 + $0x408] sm:$0xff] %v415_v1  ;;  %v421_v4 = vld [vmem:[%s6722_s25 + $0x1020] sm:$0xff] }
  0x53   : > { %418 = vst [vmem:[%s6727_s26 + $0x410] sm:$0xff] %v417_v2  ;;  %420 = vst [vmem:[%s6727_s26 + $0x418] sm:$0xff] %v419_v3  ;;  %v423_v5 = vld [vmem:[%s6722_s25 + $0x1028] sm:$0xff]  ;;  %v425_v6 = vld [vmem:[%s6722_s25 + $0x1030] sm:$0xff] }
  0x54   : > { %422 = vst [vmem:[%s6727_s26 + $0x420] sm:$0xff] %v421_v4  ;;  %424 = vst [vmem:[%s6727_s26 + $0x428] sm:$0xff] %v423_v5  ;;  %v427_v7 = vld [vmem:[%s6722_s25 + $0x1038] sm:$0xff]  ;;  %v429_v8 = vld [vmem:[%s6722_s25 + $0x1040] sm:$0xff] }
  0x55   : > { %426 = vst [vmem:[%s6727_s26 + $0x430] sm:$0xff] %v425_v6  ;;  %v431_v9 = vld [vmem:[%s6722_s25 + $0x1048] sm:$0xff]  ;;  %428 = vst [vmem:[%s6727_s26 + $0x438] sm:$0xff] %v427_v7  ;;  %v433_v10 = vld [vmem:[%s6722_s25 + $0x1050] sm:$0xff] }
  0x56   : > { %430 = vst [vmem:[%s6727_s26 + $0x440] sm:$0xff] %v429_v8  ;;  %432 = vst [vmem:[%s6727_s26 + $0x448] sm:$0xff] %v431_v9  ;;  %v435_v11 = vld [vmem:[%s6722_s25 + $0x1058] sm:$0xff]  ;;  %v437_v12 = vld [vmem:[%s6722_s25 + $0x1060] sm:$0xff] }
  0x57   : > { %434 = vst [vmem:[%s6727_s26 + $0x450] sm:$0xff] %v433_v10  ;;  %436 = vst [vmem:[%s6727_s26 + $0x458] sm:$0xff] %v435_v11  ;;  %v439_v13 = vld [vmem:[%s6722_s25 + $0x1068] sm:$0xff]  ;;  %v441_v14 = vld [vmem:[%s6722_s25 + $0x1070] sm:$0xff] }
  0x58   : > { %438 = vst [vmem:[%s6727_s26 + $0x460] sm:$0xff] %v437_v12  ;;  %v443_v15 = vld [vmem:[%s6722_s25 + $0x1078] sm:$0xff]  ;;  %440 = vst [vmem:[%s6727_s26 + $0x468] sm:$0xff] %v439_v13  ;;  %v445_v16 = vld [vmem:[%s6722_s25 + $0x1080] sm:$0xff] }
  0x59   : > { %442 = vst [vmem:[%s6727_s26 + $0x470] sm:$0xff] %v441_v14  ;;  %444 = vst [vmem:[%s6727_s26 + $0x478] sm:$0xff] %v443_v15  ;;  %v447_v17 = vld [vmem:[%s6722_s25 + $0x1088] sm:$0xff]  ;;  %v449_v18 = vld [vmem:[%s6722_s25 + $0x1090] sm:$0xff] }
  0x5a   : > { %446 = vst [vmem:[%s6727_s26 + $0x480] sm:$0xff] %v445_v16  ;;  %448 = vst [vmem:[%s6727_s26 + $0x488] sm:$0xff] %v447_v17  ;;  %v451_v19 = vld [vmem:[%s6722_s25 + $0x1098] sm:$0xff]  ;;  %v453_v20 = vld [vmem:[%s6722_s25 + $0x10a0] sm:$0xff] }
  0x5b   : > { %450 = vst [vmem:[%s6727_s26 + $0x490] sm:$0xff] %v449_v18  ;;  %v455_v21 = vld [vmem:[%s6722_s25 + $0x10a8] sm:$0xff]  ;;  %452 = vst [vmem:[%s6727_s26 + $0x498] sm:$0xff] %v451_v19  ;;  %v457_v22 = vld [vmem:[%s6722_s25 + $0x10b0] sm:$0xff] }
  0x5c   : > { %454 = vst [vmem:[%s6727_s26 + $0x4a0] sm:$0xff] %v453_v20  ;;  %456 = vst [vmem:[%s6727_s26 + $0x4a8] sm:$0xff] %v455_v21  ;;  %v459_v23 = vld [vmem:[%s6722_s25 + $0x10b8] sm:$0xff]  ;;  %v461_v24 = vld [vmem:[%s6722_s25 + $0x10c0] sm:$0xff] }
  0x5d   : > { %458 = vst [vmem:[%s6727_s26 + $0x4b0] sm:$0xff] %v457_v22  ;;  %460 = vst [vmem:[%s6727_s26 + $0x4b8] sm:$0xff] %v459_v23  ;;  %v463_v25 = vld [vmem:[%s6722_s25 + $0x10c8] sm:$0xff]  ;;  %v465_v26 = vld [vmem:[%s6722_s25 + $0x10d0] sm:$0xff] }
  0x5e   : > { %462 = vst [vmem:[%s6727_s26 + $0x4c0] sm:$0xff] %v461_v24  ;;  %v467_v27 = vld [vmem:[%s6722_s25 + $0x10d8] sm:$0xff]  ;;  %464 = vst [vmem:[%s6727_s26 + $0x4c8] sm:$0xff] %v463_v25  ;;  %v469_v28 = vld [vmem:[%s6722_s25 + $0x10e0] sm:$0xff] }
  0x5f   : > { %466 = vst [vmem:[%s6727_s26 + $0x4d0] sm:$0xff] %v465_v26  ;;  %468 = vst [vmem:[%s6727_s26 + $0x4d8] sm:$0xff] %v467_v27  ;;  %v471_v29 = vld [vmem:[%s6722_s25 + $0x10e8] sm:$0xff]  ;;  %v473_v30 = vld [vmem:[%s6722_s25 + $0x10f0] sm:$0xff] }
  0x60   : > { %470 = vst [vmem:[%s6727_s26 + $0x4e0] sm:$0xff] %v469_v28  ;;  %472 = vst [vmem:[%s6727_s26 + $0x4e8] sm:$0xff] %v471_v29  ;;  %v475_v31 = vld [vmem:[%s6722_s25 + $0x10f8] sm:$0xff]  ;;  %v477_v32 = vld [vmem:[%s6722_s25 + $0x1100] sm:$0xff] }
  0x61   : > { %474 = vst [vmem:[%s6727_s26 + $0x4f0] sm:$0xff] %v473_v30  ;;  %v479_v33 = vld [vmem:[%s6722_s25 + $0x1108] sm:$0xff]  ;;  %476 = vst [vmem:[%s6727_s26 + $0x4f8] sm:$0xff] %v475_v31  ;;  %v481_v34 = vld [vmem:[%s6722_s25 + $0x1110] sm:$0xff] }
  0x62   : > { %478 = vst [vmem:[%s6727_s26 + $0x500] sm:$0xff] %v477_v32  ;;  %480 = vst [vmem:[%s6727_s26 + $0x508] sm:$0xff] %v479_v33  ;;  %v483_v35 = vld [vmem:[%s6722_s25 + $0x1118] sm:$0xff]  ;;  %v485_v36 = vld [vmem:[%s6722_s25 + $0x1120] sm:$0xff] }
  0x63   : > { %482 = vst [vmem:[%s6727_s26 + $0x510] sm:$0xff] %v481_v34  ;;  %484 = vst [vmem:[%s6727_s26 + $0x518] sm:$0xff] %v483_v35  ;;  %v487_v37 = vld [vmem:[%s6722_s25 + $0x1128] sm:$0xff]  ;;  %v489_v38 = vld [vmem:[%s6722_s25 + $0x1130] sm:$0xff] }
  0x64   : > { %486 = vst [vmem:[%s6727_s26 + $0x520] sm:$0xff] %v485_v36  ;;  %v491_v39 = vld [vmem:[%s6722_s25 + $0x1138] sm:$0xff]  ;;  %488 = vst [vmem:[%s6727_s26 + $0x528] sm:$0xff] %v487_v37  ;;  %v493_v40 = vld [vmem:[%s6722_s25 + $0x1140] sm:$0xff] }
  0x65   : > { %490 = vst [vmem:[%s6727_s26 + $0x530] sm:$0xff] %v489_v38  ;;  %492 = vst [vmem:[%s6727_s26 + $0x538] sm:$0xff] %v491_v39  ;;  %v495_v41 = vld [vmem:[%s6722_s25 + $0x1148] sm:$0xff]  ;;  %v497_v42 = vld [vmem:[%s6722_s25 + $0x1150] sm:$0xff] }
  0x66   : > { %494 = vst [vmem:[%s6727_s26 + $0x540] sm:$0xff] %v493_v40  ;;  %496 = vst [vmem:[%s6727_s26 + $0x548] sm:$0xff] %v495_v41  ;;  %v499_v43 = vld [vmem:[%s6722_s25 + $0x1158] sm:$0xff]  ;;  %v501_v44 = vld [vmem:[%s6722_s25 + $0x1160] sm:$0xff] }
  0x67   : > { %498 = vst [vmem:[%s6727_s26 + $0x550] sm:$0xff] %v497_v42  ;;  %v503_v45 = vld [vmem:[%s6722_s25 + $0x1168] sm:$0xff]  ;;  %500 = vst [vmem:[%s6727_s26 + $0x558] sm:$0xff] %v499_v43  ;;  %v505_v46 = vld [vmem:[%s6722_s25 + $0x1170] sm:$0xff] }
  0x68   : > { %502 = vst [vmem:[%s6727_s26 + $0x560] sm:$0xff] %v501_v44  ;;  %504 = vst [vmem:[%s6727_s26 + $0x568] sm:$0xff] %v503_v45  ;;  %v507_v47 = vld [vmem:[%s6722_s25 + $0x1178] sm:$0xff]  ;;  %v509_v48 = vld [vmem:[%s6722_s25 + $0x1180] sm:$0xff] }
  0x69   : > { %506 = vst [vmem:[%s6727_s26 + $0x570] sm:$0xff] %v505_v46  ;;  %508 = vst [vmem:[%s6727_s26 + $0x578] sm:$0xff] %v507_v47  ;;  %v511_v49 = vld [vmem:[%s6722_s25 + $0x1188] sm:$0xff]  ;;  %v513_v50 = vld [vmem:[%s6722_s25 + $0x1190] sm:$0xff] }
  0x6a   : > { %510 = vst [vmem:[%s6727_s26 + $0x580] sm:$0xff] %v509_v48  ;;  %v515_v51 = vld [vmem:[%s6722_s25 + $0x1198] sm:$0xff]  ;;  %512 = vst [vmem:[%s6727_s26 + $0x588] sm:$0xff] %v511_v49  ;;  %v517_v52 = vld [vmem:[%s6722_s25 + $0x11a0] sm:$0xff] }
  0x6b   : > { %514 = vst [vmem:[%s6727_s26 + $0x590] sm:$0xff] %v513_v50  ;;  %516 = vst [vmem:[%s6727_s26 + $0x598] sm:$0xff] %v515_v51  ;;  %v519_v53 = vld [vmem:[%s6722_s25 + $0x11a8] sm:$0xff]  ;;  %v521_v54 = vld [vmem:[%s6722_s25 + $0x11b0] sm:$0xff] }
  0x6c   : > { %518 = vst [vmem:[%s6727_s26 + $0x5a0] sm:$0xff] %v517_v52  ;;  %520 = vst [vmem:[%s6727_s26 + $0x5a8] sm:$0xff] %v519_v53  ;;  %v523_v55 = vld [vmem:[%s6722_s25 + $0x11b8] sm:$0xff]  ;;  %v525_v56 = vld [vmem:[%s6722_s25 + $0x11c0] sm:$0xff] }
  0x6d   : > { %522 = vst [vmem:[%s6727_s26 + $0x5b0] sm:$0xff] %v521_v54  ;;  %v527_v57 = vld [vmem:[%s6722_s25 + $0x11c8] sm:$0xff]  ;;  %524 = vst [vmem:[%s6727_s26 + $0x5b8] sm:$0xff] %v523_v55  ;;  %v529_v58 = vld [vmem:[%s6722_s25 + $0x11d0] sm:$0xff] }
  0x6e   : > { %526 = vst [vmem:[%s6727_s26 + $0x5c0] sm:$0xff] %v525_v56  ;;  %528 = vst [vmem:[%s6727_s26 + $0x5c8] sm:$0xff] %v527_v57  ;;  %v531_v59 = vld [vmem:[%s6722_s25 + $0x11d8] sm:$0xff]  ;;  %v533_v60 = vld [vmem:[%s6722_s25 + $0x11e0] sm:$0xff] }
  0x6f   : > { %530 = vst [vmem:[%s6727_s26 + $0x5d0] sm:$0xff] %v529_v58  ;;  %532 = vst [vmem:[%s6727_s26 + $0x5d8] sm:$0xff] %v531_v59  ;;  %v535_v61 = vld [vmem:[%s6722_s25 + $0x11e8] sm:$0xff]  ;;  %v537_v62 = vld [vmem:[%s6722_s25 + $0x11f0] sm:$0xff] }
  0x70   : > { %534 = vst [vmem:[%s6727_s26 + $0x5e0] sm:$0xff] %v533_v60  ;;  %v539_v63 = vld [vmem:[%s6722_s25 + $0x11f8] sm:$0xff]  ;;  %536 = vst [vmem:[%s6727_s26 + $0x5e8] sm:$0xff] %v535_v61  ;;  %v541_v0 = vld [vmem:[%s6722_s25 + $0x1200] sm:$0xff] }
  0x71   : > { %538 = vst [vmem:[%s6727_s26 + $0x5f0] sm:$0xff] %v537_v62  ;;  %540 = vst [vmem:[%s6727_s26 + $0x5f8] sm:$0xff] %v539_v63  ;;  %v543_v1 = vld [vmem:[%s6722_s25 + $0x1208] sm:$0xff]  ;;  %v545_v2 = vld [vmem:[%s6722_s25 + $0x1210] sm:$0xff] }
  0x72   : > { %542 = vst [vmem:[%s6727_s26 + $0x600] sm:$0xff] %v541_v0  ;;  %544 = vst [vmem:[%s6727_s26 + $0x608] sm:$0xff] %v543_v1  ;;  %v547_v3 = vld [vmem:[%s6722_s25 + $0x1218] sm:$0xff]  ;;  %v549_v4 = vld [vmem:[%s6722_s25 + $0x1220] sm:$0xff] }
  0x73   : > { %546 = vst [vmem:[%s6727_s26 + $0x610] sm:$0xff] %v545_v2  ;;  %v551_v5 = vld [vmem:[%s6722_s25 + $0x1228] sm:$0xff]  ;;  %548 = vst [vmem:[%s6727_s26 + $0x618] sm:$0xff] %v547_v3  ;;  %v553_v6 = vld [vmem:[%s6722_s25 + $0x1230] sm:$0xff] }
  0x74   : > { %550 = vst [vmem:[%s6727_s26 + $0x620] sm:$0xff] %v549_v4  ;;  %552 = vst [vmem:[%s6727_s26 + $0x628] sm:$0xff] %v551_v5  ;;  %v555_v7 = vld [vmem:[%s6722_s25 + $0x1238] sm:$0xff]  ;;  %v557_v8 = vld [vmem:[%s6722_s25 + $0x1240] sm:$0xff] }
  0x75   : > { %554 = vst [vmem:[%s6727_s26 + $0x630] sm:$0xff] %v553_v6  ;;  %556 = vst [vmem:[%s6727_s26 + $0x638] sm:$0xff] %v555_v7  ;;  %v559_v9 = vld [vmem:[%s6722_s25 + $0x1248] sm:$0xff]  ;;  %v561_v10 = vld [vmem:[%s6722_s25 + $0x1250] sm:$0xff] }
  0x76   : > { %558 = vst [vmem:[%s6727_s26 + $0x640] sm:$0xff] %v557_v8  ;;  %v563_v11 = vld [vmem:[%s6722_s25 + $0x1258] sm:$0xff]  ;;  %560 = vst [vmem:[%s6727_s26 + $0x648] sm:$0xff] %v559_v9  ;;  %v565_v12 = vld [vmem:[%s6722_s25 + $0x1260] sm:$0xff] }
  0x77   : > { %562 = vst [vmem:[%s6727_s26 + $0x650] sm:$0xff] %v561_v10  ;;  %564 = vst [vmem:[%s6727_s26 + $0x658] sm:$0xff] %v563_v11  ;;  %v567_v13 = vld [vmem:[%s6722_s25 + $0x1268] sm:$0xff]  ;;  %v569_v14 = vld [vmem:[%s6722_s25 + $0x1270] sm:$0xff] }
  0x78   : > { %566 = vst [vmem:[%s6727_s26 + $0x660] sm:$0xff] %v565_v12  ;;  %568 = vst [vmem:[%s6727_s26 + $0x668] sm:$0xff] %v567_v13  ;;  %v571_v15 = vld [vmem:[%s6722_s25 + $0x1278] sm:$0xff]  ;;  %v573_v16 = vld [vmem:[%s6722_s25 + $0x1280] sm:$0xff] }
  0x79   : > { %570 = vst [vmem:[%s6727_s26 + $0x670] sm:$0xff] %v569_v14  ;;  %v575_v17 = vld [vmem:[%s6722_s25 + $0x1288] sm:$0xff]  ;;  %572 = vst [vmem:[%s6727_s26 + $0x678] sm:$0xff] %v571_v15  ;;  %v577_v18 = vld [vmem:[%s6722_s25 + $0x1290] sm:$0xff] }
  0x7a   : > { %574 = vst [vmem:[%s6727_s26 + $0x680] sm:$0xff] %v573_v16  ;;  %576 = vst [vmem:[%s6727_s26 + $0x688] sm:$0xff] %v575_v17  ;;  %v579_v19 = vld [vmem:[%s6722_s25 + $0x1298] sm:$0xff]  ;;  %v581_v20 = vld [vmem:[%s6722_s25 + $0x12a0] sm:$0xff] }
  0x7b   : > { %578 = vst [vmem:[%s6727_s26 + $0x690] sm:$0xff] %v577_v18  ;;  %580 = vst [vmem:[%s6727_s26 + $0x698] sm:$0xff] %v579_v19  ;;  %v583_v21 = vld [vmem:[%s6722_s25 + $0x12a8] sm:$0xff]  ;;  %v585_v22 = vld [vmem:[%s6722_s25 + $0x12b0] sm:$0xff] }
  0x7c   : > { %582 = vst [vmem:[%s6727_s26 + $0x6a0] sm:$0xff] %v581_v20  ;;  %v587_v23 = vld [vmem:[%s6722_s25 + $0x12b8] sm:$0xff]  ;;  %584 = vst [vmem:[%s6727_s26 + $0x6a8] sm:$0xff] %v583_v21  ;;  %v589_v24 = vld [vmem:[%s6722_s25 + $0x12c0] sm:$0xff] }
  0x7d   : > { %586 = vst [vmem:[%s6727_s26 + $0x6b0] sm:$0xff] %v585_v22  ;;  %588 = vst [vmem:[%s6727_s26 + $0x6b8] sm:$0xff] %v587_v23  ;;  %v591_v25 = vld [vmem:[%s6722_s25 + $0x12c8] sm:$0xff]  ;;  %v593_v26 = vld [vmem:[%s6722_s25 + $0x12d0] sm:$0xff] }
  0x7e   : > { %590 = vst [vmem:[%s6727_s26 + $0x6c0] sm:$0xff] %v589_v24  ;;  %592 = vst [vmem:[%s6727_s26 + $0x6c8] sm:$0xff] %v591_v25  ;;  %v595_v27 = vld [vmem:[%s6722_s25 + $0x12d8] sm:$0xff]  ;;  %v597_v28 = vld [vmem:[%s6722_s25 + $0x12e0] sm:$0xff] }
  0x7f   : > { %594 = vst [vmem:[%s6727_s26 + $0x6d0] sm:$0xff] %v593_v26  ;;  %v599_v29 = vld [vmem:[%s6722_s25 + $0x12e8] sm:$0xff]  ;;  %596 = vst [vmem:[%s6727_s26 + $0x6d8] sm:$0xff] %v595_v27  ;;  %v601_v30 = vld [vmem:[%s6722_s25 + $0x12f0] sm:$0xff] }
  0x80   : > { %598 = vst [vmem:[%s6727_s26 + $0x6e0] sm:$0xff] %v597_v28  ;;  %600 = vst [vmem:[%s6727_s26 + $0x6e8] sm:$0xff] %v599_v29  ;;  %v603_v31 = vld [vmem:[%s6722_s25 + $0x12f8] sm:$0xff]  ;;  %v605_v32 = vld [vmem:[%s6722_s25 + $0x1300] sm:$0xff] }
  0x81   : > { %602 = vst [vmem:[%s6727_s26 + $0x6f0] sm:$0xff] %v601_v30  ;;  %604 = vst [vmem:[%s6727_s26 + $0x6f8] sm:$0xff] %v603_v31  ;;  %v607_v33 = vld [vmem:[%s6722_s25 + $0x1308] sm:$0xff]  ;;  %v609_v34 = vld [vmem:[%s6722_s25 + $0x1310] sm:$0xff] }
  0x82   : > { %606 = vst [vmem:[%s6727_s26 + $0x700] sm:$0xff] %v605_v32  ;;  %v611_v35 = vld [vmem:[%s6722_s25 + $0x1318] sm:$0xff]  ;;  %608 = vst [vmem:[%s6727_s26 + $0x708] sm:$0xff] %v607_v33  ;;  %v613_v36 = vld [vmem:[%s6722_s25 + $0x1320] sm:$0xff] }
  0x83   : > { %610 = vst [vmem:[%s6727_s26 + $0x710] sm:$0xff] %v609_v34  ;;  %612 = vst [vmem:[%s6727_s26 + $0x718] sm:$0xff] %v611_v35  ;;  %v615_v37 = vld [vmem:[%s6722_s25 + $0x1328] sm:$0xff]  ;;  %v617_v38 = vld [vmem:[%s6722_s25 + $0x1330] sm:$0xff] }
  0x84   : > { %614 = vst [vmem:[%s6727_s26 + $0x720] sm:$0xff] %v613_v36  ;;  %616 = vst [vmem:[%s6727_s26 + $0x728] sm:$0xff] %v615_v37  ;;  %v619_v39 = vld [vmem:[%s6722_s25 + $0x1338] sm:$0xff]  ;;  %v621_v40 = vld [vmem:[%s6722_s25 + $0x1340] sm:$0xff] }
  0x85   : > { %618 = vst [vmem:[%s6727_s26 + $0x730] sm:$0xff] %v617_v38  ;;  %v623_v41 = vld [vmem:[%s6722_s25 + $0x1348] sm:$0xff]  ;;  %620 = vst [vmem:[%s6727_s26 + $0x738] sm:$0xff] %v619_v39  ;;  %v625_v42 = vld [vmem:[%s6722_s25 + $0x1350] sm:$0xff] }
  0x86   : > { %622 = vst [vmem:[%s6727_s26 + $0x740] sm:$0xff] %v621_v40  ;;  %624 = vst [vmem:[%s6727_s26 + $0x748] sm:$0xff] %v623_v41  ;;  %v627_v43 = vld [vmem:[%s6722_s25 + $0x1358] sm:$0xff]  ;;  %v629_v44 = vld [vmem:[%s6722_s25 + $0x1360] sm:$0xff] }
  0x87   : > { %626 = vst [vmem:[%s6727_s26 + $0x750] sm:$0xff] %v625_v42  ;;  %628 = vst [vmem:[%s6727_s26 + $0x758] sm:$0xff] %v627_v43  ;;  %v631_v45 = vld [vmem:[%s6722_s25 + $0x1368] sm:$0xff]  ;;  %v633_v46 = vld [vmem:[%s6722_s25 + $0x1370] sm:$0xff] }
  0x88   : > { %630 = vst [vmem:[%s6727_s26 + $0x760] sm:$0xff] %v629_v44  ;;  %v635_v47 = vld [vmem:[%s6722_s25 + $0x1378] sm:$0xff]  ;;  %632 = vst [vmem:[%s6727_s26 + $0x768] sm:$0xff] %v631_v45  ;;  %v637_v48 = vld [vmem:[%s6722_s25 + $0x1380] sm:$0xff] }
  0x89   : > { %634 = vst [vmem:[%s6727_s26 + $0x770] sm:$0xff] %v633_v46  ;;  %636 = vst [vmem:[%s6727_s26 + $0x778] sm:$0xff] %v635_v47  ;;  %v639_v49 = vld [vmem:[%s6722_s25 + $0x1388] sm:$0xff]  ;;  %v641_v50 = vld [vmem:[%s6722_s25 + $0x1390] sm:$0xff] }
  0x8a   : > { %638 = vst [vmem:[%s6727_s26 + $0x780] sm:$0xff] %v637_v48  ;;  %640 = vst [vmem:[%s6727_s26 + $0x788] sm:$0xff] %v639_v49  ;;  %v643_v51 = vld [vmem:[%s6722_s25 + $0x1398] sm:$0xff]  ;;  %v645_v52 = vld [vmem:[%s6722_s25 + $0x13a0] sm:$0xff] }
  0x8b   : > { %642 = vst [vmem:[%s6727_s26 + $0x790] sm:$0xff] %v641_v50  ;;  %v647_v53 = vld [vmem:[%s6722_s25 + $0x13a8] sm:$0xff]  ;;  %644 = vst [vmem:[%s6727_s26 + $0x798] sm:$0xff] %v643_v51  ;;  %v649_v54 = vld [vmem:[%s6722_s25 + $0x13b0] sm:$0xff] }
  0x8c   : > { %646 = vst [vmem:[%s6727_s26 + $0x7a0] sm:$0xff] %v645_v52  ;;  %648 = vst [vmem:[%s6727_s26 + $0x7a8] sm:$0xff] %v647_v53  ;;  %v651_v55 = vld [vmem:[%s6722_s25 + $0x13b8] sm:$0xff]  ;;  %v653_v56 = vld [vmem:[%s6722_s25 + $0x13c0] sm:$0xff] }
  0x8d   : > { %650 = vst [vmem:[%s6727_s26 + $0x7b0] sm:$0xff] %v649_v54  ;;  %652 = vst [vmem:[%s6727_s26 + $0x7b8] sm:$0xff] %v651_v55  ;;  %v655_v57 = vld [vmem:[%s6722_s25 + $0x13c8] sm:$0xff]  ;;  %v657_v58 = vld [vmem:[%s6722_s25 + $0x13d0] sm:$0xff] }
  0x8e   : > { %654 = vst [vmem:[%s6727_s26 + $0x7c0] sm:$0xff] %v653_v56  ;;  %v659_v59 = vld [vmem:[%s6722_s25 + $0x13d8] sm:$0xff]  ;;  %656 = vst [vmem:[%s6727_s26 + $0x7c8] sm:$0xff] %v655_v57  ;;  %v661_v60 = vld [vmem:[%s6722_s25 + $0x13e0] sm:$0xff] }
  0x8f   : > { %658 = vst [vmem:[%s6727_s26 + $0x7d0] sm:$0xff] %v657_v58  ;;  %660 = vst [vmem:[%s6727_s26 + $0x7d8] sm:$0xff] %v659_v59  ;;  %v663_v61 = vld [vmem:[%s6722_s25 + $0x13e8] sm:$0xff]  ;;  %v665_v62 = vld [vmem:[%s6722_s25 + $0x13f0] sm:$0xff] }
  0x90   : > { %662 = vst [vmem:[%s6727_s26 + $0x7e0] sm:$0xff] %v661_v60  ;;  %664 = vst [vmem:[%s6727_s26 + $0x7e8] sm:$0xff] %v663_v61  ;;  %v667_v63 = vld [vmem:[%s6722_s25 + $0x13f8] sm:$0xff] }
  0x91   : > { %666 = vst [vmem:[%s6727_s26 + $0x7f0] sm:$0xff] %v665_v62  ;;  %668 = vst [vmem:[%s6727_s26 + $0x7f8] sm:$0xff] %v667_v63 }
  0x92 PF: > { %p6276_p5 = scmp.ge.s32.totalorder %s6661_s14, 1  ;;  %p673_p6 = scmp.lt.s32.totalorder %s6661_s14, 5 }
  0x94   : > { %p674_p7 = pnand %p6276_p5, %p673_p6 }
  0x95   : > { %s680_s27 = sand.u32 (!%p674_p7), 1, %s6653_s12   ;;  %s6278_s28 = sshll.u32 (!%p674_p7), %s6702_s15, 7 }
  0x96   : > { %677 = sbr.rel (%p674_p7) target bundleno = 678 (0x2a6), region = 51  ;;  %s6277_s29 = sshll.u32 (!%p674_p7), %s680_s27, 11 }
  0x97   : > { %p704_p8 = scmp.lt.s32.totalorder (!%p674_p7), %s6278_s28, 511  ;;  %s7247_s7 = scalar_lea.vmem (!%p674_p7), [#allocation3], %s6277_s29 }
  0x98   : > { %p6280_p9 = scmp.ne.s32.totalorder (!%p674_p7), %s6702_s15, 0 }
  0x9d   : > { %s7649_s28 = smov (!%p704_p8, %s6278_s28), 511  ;;  %713 = sbr.rel (%p6280_p9) target bundleno = 164 (0xa4), region = 59 }
  0x9e   : > { %s6279_s30 = sshll.u32 %s7649_s28, 1  ;;  %vm714_vm0 = vcmask (!%p6280_p9), 74752   ;;  %v6663_v0 = vmov (!%p6280_p9), 0.0  }
  0x9f   : > { %s7245_s6 = scalar_lea.vmem %s7641_s0, %s6279_s30  ;;  %715 = vst.msk [vmem:[#allocation2] sm:$0x3] (!%p6280_p9), %vm714_vm0, %v6663_v0 }
  0xa4 PF: > { %v750_v1 = vld [vmem:[%s7247_s7 + $0x8] sm:$0xff]  ;;  %v749_v3 = vld [vmem:[%s7247_s7] sm:$0xff]  ;;  %v1041_v4 = vlaneseq  ;;  %v752_v7 = vld [vmem:[%s7247_s7 + $0x18] sm:$0xff]  ;;  %v6664_v9 = vmov 1983009808   ;;  %vm6190_vm1 = vcmask 74752  }
  0xa5   : > { %v878_v2 = vld [vmem:[%s7247_s7 + $0x408] sm:$0x3]  ;;  %v877_v6 = vld [vmem:[%s7247_s7 + $0x400] sm:$0x3]  ;;  %v880_v8 = vld [vmem:[%s7247_s7 + $0x418] sm:$0x3]  ;;  %v1039_v10 = vunpack.c.l.s4 %v6664_v9 }
  0xa6   : > { %v6288_v5 = vpack.c.bf16 %v878_v2, %v750_v1  ;;  %v6290_v11 = vpack.c.bf16 %v877_v6, %v749_v3  ;;  %v6292_v12 = vpack.c.bf16 %v880_v8, %v752_v7  ;;  %v751_v13 = vld [vmem:[%s7247_s7 + $0x10] sm:$0xff]  ;;  %v717_v15 = vld [vmem:[%s7245_s6] sm:$0xff]  ;;  %v1042_v16 = vshrl.u32 %v1041_v4, 7  ;;  %v754_v20 = vld [vmem:[%s7247_s7 + $0x28] sm:$0xff]  ;;  %p6281_p10 = scmp.ne.s32.totalorder %s6702_s15, 3 }
  0xa7   : > { %v879_v14 = vld [vmem:[%s7247_s7 + $0x410] sm:$0x3]  ;;  %v1040_v18 = vunpack.c.0.s8 %v1039_v10  ;;  %v1037_v19 = vcombine.high %v717_v15, %v717_v15  ;;  %v882_v21 = vld [vmem:[%s7247_s7 + $0x428] sm:$0x3]  ;;  %v756_v23 = vld [vmem:[%s7247_s7 + $0x38] sm:$0xff] }
  0xa8   : > { %6289 = vmatprep.subr.bf16.mxu0 %v6288_v5  ;;  %v6294_v17 = vpack.c.bf16 %v879_v14, %v751_v13  ;;  %6293 = vmatprep.subr.bf16.mxu1 %v6292_v12  ;;  %v6296_v22 = vpack.c.bf16 %v882_v21, %v754_v20  ;;  %v884_v24 = vld [vmem:[%s7247_s7 + $0x438] sm:$0x3]  ;;  %v753_v26 = vld [vmem:[%s7247_s7 + $0x20] sm:$0xff]  ;;  %v755_v30 = vld [vmem:[%s7247_s7 + $0x30] sm:$0xff] }
  0xa9   : > { %6291 = vmatpush1.bf16.xpose.msra.mxu0 %v6290_v11  ;;  %v7263_v25 = vsub.s32 %v1040_v18, %v1042_v16  ;;  %v6300_v27 = vpack.c.bf16 %v884_v24, %v756_v23  ;;  %v718_v28 = vld [vmem:[%s7245_s6 + $0x8] sm:$0xff]  ;;  %v881_v29 = vld [vmem:[%s7247_s7 + $0x420] sm:$0x3]  ;;  %v883_v31 = vld [vmem:[%s7247_s7 + $0x430] sm:$0x3] }
  0xaa   : > { %6295 = vmatpush1.bf16.xpose.msra.mxu1 %v6294_v17  ;;  %6297 = vmatprep.subr.bf16.mxu0 %v6296_v22  ;;  %v1054_v32 = vcombine.high %v718_v28, %v718_v28  ;;  %v758_v36 = vld [vmem:[%s7247_s7 + $0x48] sm:$0xff]  ;;  %v760_v39 = vld [vmem:[%s7247_s7 + $0x58] sm:$0xff]  ;;  %v6298_v44 = vpack.c.bf16 %v881_v29, %v753_v26  ;;  %v6302_v45 = vpack.c.bf16 %v883_v31, %v755_v30  ;;  %v757_v51 = vld [vmem:[%s7247_s7 + $0x40] sm:$0xff] }
  0xab   : > { %v1044_v33 = vrot.slane %v717_v15, %v7263_v25  ;;  %v1051_v34 = vrot.slane %v1037_v19, %v7263_v25  ;;  %6301 = vmatprep.subr.bf16.mxu1 %v6300_v27  ;;  %v1061_v35 = vrot.slane %v718_v28, %v7263_v25  ;;  %v886_v37 = vld [vmem:[%s7247_s7 + $0x448] sm:$0x3]  ;;  %v888_v40 = vld [vmem:[%s7247_s7 + $0x458] sm:$0x3]  ;;  %v719_v41 = vld [vmem:[%s7245_s6 + $0x10] sm:$0xff] }
  0xac   : > { %v1068_v38 = vrot.slane %v1054_v32, %v7263_v25  ;;  %v6304_v47 = vpack.c.bf16 %v886_v37, %v758_v36  ;;  %v6308_v49 = vpack.c.bf16 %v888_v40, %v760_v39  ;;  %v1071_v50 = vcombine.high %v719_v41, %v719_v41  ;;  %v885_v52 = vld [vmem:[%s7247_s7 + $0x440] sm:$0x3]  ;;  %v759_v53 = vld [vmem:[%s7247_s7 + $0x50] sm:$0xff]  ;;  %v762_v56 = vld [vmem:[%s7247_s7 + $0x68] sm:$0xff] }
  0xad   : > { %v1052_v42 = vcombine.high %v1044_v33, %v1044_v33  ;;  %v1053_v43 = vcombine.high %v1051_v34, %v1051_v34  ;;  %v1069_v46 = vcombine.high %v1061_v35, %v1061_v35  ;;  %v887_v54 = vld [vmem:[%s7247_s7 + $0x450] sm:$0x3]  ;;  %v1078_v55 = vrot.slane %v719_v41, %v7263_v25  ;;  %v890_v57 = vld [vmem:[%s7247_s7 + $0x468] sm:$0x3]  ;;  %v764_v59 = vld [vmem:[%s7247_s7 + $0x78] sm:$0xff] }
  0xae   : > { %v1070_v48 = vcombine.high %v1068_v38, %v1068_v38  ;;  %v1085_v58 = vrot.slane %v1071_v50, %v7263_v25  ;;  %v892_v60 = vld [vmem:[%s7247_s7 + $0x478] sm:$0x3]  ;;  %v6306_v62 = vpack.c.bf16 %v885_v52, %v757_v51  ;;  %v6310_v63 = vpack.c.bf16 %v887_v54, %v759_v53  ;;  %v761_v5 = vld [vmem:[%s7247_s7 + $0x60] sm:$0xff]  ;;  %v763_v7 = vld [vmem:[%s7247_s7 + $0x70] sm:$0xff] }
  0xaf   : > { %1773 = vmatprep.mubr.f32.mxu0 %v1052_v42  ;;  %1843 = vmatprep.mubr.f32.mxu1 %v1053_v43  ;;  %v720_v61 = vld [vmem:[%s7245_s6 + $0x18] sm:$0xff]  ;;  %v1086_v0 = vcombine.high %v1078_v55, %v1078_v55  ;;  %v6312_v1 = vpack.c.bf16 %v890_v57, %v762_v56  ;;  %v6316_v3 = vpack.c.bf16 %v892_v60, %v764_v59  ;;  %v889_v6 = vld [vmem:[%s7247_s7 + $0x460] sm:$0x3]  ;;  %v891_v8 = vld [vmem:[%s7247_s7 + $0x470] sm:$0x3] }
  0xb0   : > { %1774 = vmatmul.mubr.f32.vlgmr.msra.gmra.mrb[0].mxu0 %v1044_v33  ;;  %v1087_v2 = vcombine.high %v1085_v58, %v1085_v58  ;;  %v1088_v4 = vcombine.high %v720_v61, %v720_v61  ;;  %v1095_v9 = vrot.slane %v720_v61, %v7263_v25  ;;  %v766_v10 = vld [vmem:[%s7247_s7 + $0x88] sm:$0xff]  ;;  %v768_v13 = vld [vmem:[%s7247_s7 + $0x98] sm:$0xff]  ;;  %v6314_v16 = vpack.c.bf16 %v889_v6, %v761_v5  ;;  %v765_v23 = vld [vmem:[%s7247_s7 + $0x80] sm:$0xff] }
  0xb1   : > { %1844 = vmatmul.mubr.f32.vlgmr.msra.gmra.mrb[0].mxu1 %v1051_v34  ;;  %6299 = vmatpush1.bf16.xpose.msra.mxu0 %v6298_v44  ;;  %v894_v11 = vld [vmem:[%s7247_s7 + $0x488] sm:$0x3]  ;;  %v896_v14 = vld [vmem:[%s7247_s7 + $0x498] sm:$0x3]  ;;  %v721_v15 = vld [vmem:[%s7245_s6 + $0x20] sm:$0xff]  ;;  %v6318_v17 = vpack.c.bf16 %v891_v8, %v763_v7 }
  0xb2   : > { %6303 = vmatpush1.bf16.xpose.msra.mxu1 %v6302_v45  ;;  %1913 = vmatprep.mubr.f32.mxu0 %v1069_v46  ;;  %v1102_v12 = vrot.slane %v1088_v4, %v7263_v25  ;;  %v1103_v18 = vcombine.high %v1095_v9, %v1095_v9  ;;  %v6320_v19 = vpack.c.bf16 %v894_v11, %v766_v10  ;;  %v893_v24 = vld [vmem:[%s7247_s7 + $0x480] sm:$0x3]  ;;  %v767_v26 = vld [vmem:[%s7247_s7 + $0x90] sm:$0xff]  ;;  %v770_v29 = vld [vmem:[%s7247_s7 + $0xa8] sm:$0xff] }
  0xb3   : > { %6305 = vmatprep.subr.bf16.mxu0 %v6304_v47  ;;  %1983 = vmatprep.mubr.f32.mxu1 %v1070_v48  ;;  %v6324_v21 = vpack.c.bf16 %v896_v14, %v768_v13  ;;  %v1105_v22 = vcombine.high %v721_v15, %v721_v15  ;;  %v895_v27 = vld [vmem:[%s7247_s7 + $0x490] sm:$0x3]  ;;  %v1112_v28 = vrot.slane %v721_v15, %v7263_v25  ;;  %v898_v30 = vld [vmem:[%s7247_s7 + $0x4a8] sm:$0x3]  ;;  %v772_v32 = vld [vmem:[%s7247_s7 + $0xb8] sm:$0xff] }
  0xb4   : > { %6309 = vmatprep.subr.bf16.mxu1 %v6308_v49  ;;  %v1104_v20 = vcombine.high %v1102_v12, %v1102_v12  ;;  %v900_v33 = vld [vmem:[%s7247_s7 + $0x4b8] sm:$0x3]  ;;  %v722_v34 = vld [vmem:[%s7245_s6 + $0x28] sm:$0xff]  ;;  %v6326_v36 = vpack.c.bf16 %v895_v27, %v767_v26  ;;  %v897_v43 = vld [vmem:[%s7247_s7 + $0x4a0] sm:$0x3] }
  0xb5   : > { %v1119_v31 = vrot.slane %v1105_v22, %v7263_v25  ;;  %v1120_v37 = vcombine.high %v1112_v28, %v1112_v28  ;;  %v6332_v40 = vpack.c.bf16 %v900_v33, %v772_v32  ;;  %v1122_v41 = vcombine.high %v722_v34, %v722_v34  ;;  %v769_v42 = vld [vmem:[%s7247_s7 + $0xa0] sm:$0xff]  ;;  %v771_v44 = vld [vmem:[%s7247_s7 + $0xb0] sm:$0xff]  ;;  %v774_v47 = vld [vmem:[%s7247_s7 + $0xc8] sm:$0xff] }
  0xb6   : > { %v899_v45 = vld [vmem:[%s7247_s7 + $0x4b0] sm:$0x3]  ;;  %v1129_v46 = vrot.slane %v722_v34, %v7263_v25  ;;  %v902_v48 = vld [vmem:[%s7247_s7 + $0x4c8] sm:$0x3]  ;;  %v776_v50 = vld [vmem:[%s7247_s7 + $0xd8] sm:$0xff]  ;;  %v6330_v53 = vpack.c.bf16 %v897_v43, %v769_v42 }
  0xb7   : > { %v1121_v39 = vcombine.high %v1119_v31, %v1119_v31  ;;  %v1136_v49 = vrot.slane %v1122_v41, %v7263_v25  ;;  %v904_v51 = vld [vmem:[%s7247_s7 + $0x4d8] sm:$0x3]  ;;  %v723_v52 = vld [vmem:[%s7245_s6 + $0x30] sm:$0xff]  ;;  %v6334_v54 = vpack.c.bf16 %v899_v45, %v771_v44  ;;  %v6336_v56 = vpack.c.bf16 %v902_v48, %v774_v47  ;;  %v773_v60 = vld [vmem:[%s7247_s7 + $0xc0] sm:$0xff] }
  0xb8   : > { %1914 = vmatmul.mubr.f32.vlgmr.msra.gmra.mrb[2].mxu0 %v1061_v35  ;;  %v6322_v35 = vpack.c.bf16 %v893_v24, %v765_v23  ;;  %v1139_v59 = vcombine.high %v723_v52, %v723_v52  ;;  %v901_v61 = vld [vmem:[%s7247_s7 + $0x4c0] sm:$0x3]  ;;  %v780_v4 = vld [vmem:[%s7247_s7 + $0xf8] sm:$0xff]  ;;  %v726_v43 = vld [vmem:[%s7245_s6 + $0x48] sm:$0xff] }
  0xb9   : > { %1984 = vmatmul.mubr.f32.vlgmr.msra.gmra.mrb[2].mxu1 %v1068_v38  ;;  %6307 = vmatpush1.bf16.xpose.msra.mxu0 %v6306_v62  ;;  %v6328_v38 = vpack.c.bf16 %v898_v30, %v770_v29  ;;  %v1138_v57 = vcombine.high %v1136_v49, %v1136_v49  ;;  %v775_v62 = vld [vmem:[%s7247_s7 + $0xd0] sm:$0xff]  ;;  %v908_v5 = vld [vmem:[%s7247_s7 + $0x4f8] sm:$0x3]  ;;  %v6338_v7 = vpack.c.bf16 %v901_v61, %v773_v60  ;;  %v777_v14 = vld [vmem:[%s7247_s7 + $0xe0] sm:$0xff] }
  0xba   : > { %6311 = vmatpush1.bf16.xpose.msra.mxu1 %v6310_v63  ;;  %2053 = vmatprep.mubr.f32.mxu0 %v1086_v0  ;;  %v903_v63 = vld [vmem:[%s7247_s7 + $0x4d0] sm:$0x3]  ;;  %v1146_v0 = vrot.slane %v723_v52, %v7263_v25  ;;  %v724_v6 = vld [vmem:[%s7245_s6 + $0x38] sm:$0xff]  ;;  %v905_v15 = vld [vmem:[%s7247_s7 + $0x4e0] sm:$0x3] }
  0xbb   : > { %6313 = vmatprep.subr.bf16.mxu0 %v6312_v1  ;;  %2123 = vmatprep.mubr.f32.mxu1 %v1087_v2  ;;  %v778_v1 = vld [vmem:[%s7247_s7 + $0xe8] sm:$0xff]  ;;  %v6342_v8 = vpack.c.bf16 %v903_v63, %v775_v62  ;;  %v1156_v13 = vcombine.high %v724_v6, %v724_v6  ;;  %v784_v22 = vld [vmem:[%s7247_s7 + $0x118] sm:$0xff]  ;;  %v6346_v26 = vpack.c.bf16 %v905_v15, %v777_v14  ;;  %v781_v33 = vld [vmem:[%s7247_s7 + $0x100] sm:$0xff] }
  0xbc   : > { %6317 = vmatprep.subr.bf16.mxu1 %v6316_v3  ;;  %v906_v2 = vld [vmem:[%s7247_s7 + $0x4e8] sm:$0x3]  ;;  %v1153_v3 = vrot.slane %v1139_v59, %v7263_v25  ;;  %v912_v23 = vld [vmem:[%s7247_s7 + $0x518] sm:$0x3]  ;;  %v725_v24 = vld [vmem:[%s7245_s6 + $0x40] sm:$0xff] }
  0xbd   : > { %v6344_v10 = vpack.c.bf16 %v906_v2, %v778_v1  ;;  %v1173_v32 = vcombine.high %v725_v24, %v725_v24  ;;  %v909_v34 = vld [vmem:[%s7247_s7 + $0x500] sm:$0x3]  ;;  %v788_v41 = vld [vmem:[%s7247_s7 + $0x138] sm:$0xff]  ;;  %v727_v61 = vld [vmem:[%s7245_s6 + $0x50] sm:$0xff] }
  0xbe   : > { %v1155_v11 = vcombine.high %v1153_v3, %v1153_v3  ;;  %v916_v42 = vld [vmem:[%s7247_s7 + $0x538] sm:$0x3]  ;;  %v6354_v44 = vpack.c.bf16 %v909_v34, %v781_v33  ;;  %v913_v52 = vld [vmem:[%s7247_s7 + $0x520] sm:$0x3] }
  0xbf   : > { %v792_v59 = vld [vmem:[%s7247_s7 + $0x158] sm:$0xff] }
  0xc0   : > { %2054 = vmatmul.mubr.f32.vlgmr.msra.gmra.mrb[4].mxu0 %v1078_v55  ;;  %v1137_v55 = vcombine.high %v1129_v46, %v1129_v46  ;;  %v920_v60 = vld [vmem:[%s7247_s7 + $0x558] sm:$0x3]  ;;  %v729_v34 = vld [vmem:[%s7245_s6 + $0x60] sm:$0xff] }
  0xc1   : > { %2124 = vmatmul.mubr.f32.vlgmr.msra.gmra.mrb[4].mxu1 %v1085_v58  ;;  %6315 = vmatpush1.bf16.xpose.msra.mxu0 %v6314_v16  ;;  %v6340_v58 = vpack.c.bf16 %v904_v51, %v776_v50  ;;  %v779_v16 = vld [vmem:[%s7247_s7 + $0xf0] sm:$0xff]  ;;  %v1190_v50 = vcombine.high %v726_v43, %v726_v43  ;;  %v785_v51 = vld [vmem:[%s7247_s7 + $0x120] sm:$0xff]  ;;  %v924_v14 = vld [vmem:[%s7247_s7 + $0x578] sm:$0x3] }
  0xc2   : > { %6319 = vmatpush1.bf16.xpose.msra.mxu1 %v6318_v17  ;;  %2193 = vmatprep.mubr.f32.mxu0 %v1103_v18  ;;  %v907_v17 = vld [vmem:[%s7247_s7 + $0x4f0] sm:$0x3]  ;;  %v1163_v18 = vrot.slane %v724_v6, %v7263_v25  ;;  %v6362_v62 = vpack.c.bf16 %v913_v52, %v785_v51  ;;  %v917_v6 = vld [vmem:[%s7247_s7 + $0x540] sm:$0x3]  ;;  %v728_v15 = vld [vmem:[%s7245_s6 + $0x58] sm:$0xff] }
  0xc3   : > { %6321 = vmatprep.subr.bf16.mxu0 %v6320_v19  ;;  %2263 = vmatprep.mubr.f32.mxu1 %v1104_v20  ;;  %v782_v19 = vld [vmem:[%s7247_s7 + $0x108] sm:$0xff]  ;;  %v6350_v27 = vpack.c.bf16 %v907_v17, %v779_v16  ;;  %v928_v33 = vld [vmem:[%s7247_s7 + $0x598] sm:$0x3] }
  0xc4   : > { %6325 = vmatprep.subr.bf16.mxu1 %v6324_v21  ;;  %v910_v20 = vld [vmem:[%s7247_s7 + $0x508] sm:$0x3]  ;;  %v1170_v21 = vrot.slane %v1156_v13, %v7263_v25  ;;  %v796_v13 = vld [vmem:[%s7247_s7 + $0x178] sm:$0xff] }
  0xc5   : > { %v6352_v29 = vpack.c.bf16 %v910_v20, %v782_v19  ;;  %v932_v51 = vld [vmem:[%s7247_s7 + $0x5b8] sm:$0x3]  ;;  %v730_v52 = vld [vmem:[%s7245_s6 + $0x68] sm:$0xff] }
  0xc6   : > { %v1172_v30 = vcombine.high %v1170_v21, %v1170_v21 }
  0xc8   : > { %2194 = vmatmul.mubr.f32.vlgmr.msra.gmra.mrb[6].mxu0 %v1095_v9  ;;  %v1154_v9 = vcombine.high %v1146_v0, %v1146_v0 }
  0xc9   : > { %2264 = vmatmul.mubr.f32.vlgmr.msra.gmra.mrb[6].mxu1 %v1102_v12  ;;  %6323 = vmatpush1.bf16.xpose.msra.mxu0 %v6322_v35  ;;  %v6348_v12 = vpack.c.bf16 %v908_v5, %v780_v4  ;;  %v783_v35 = vld [vmem:[%s7247_s7 + $0x110] sm:$0xff]  ;;  %v1207_v4 = vcombine.high %v727_v61, %v727_v61  ;;  %v789_v5 = vld [vmem:[%s7247_s7 + $0x140] sm:$0xff] }
  0xca   : > { %6327 = vmatpush1.bf16.xpose.msra.mxu1 %v6326_v36  ;;  %2333 = vmatprep.mubr.f32.mxu0 %v1120_v37  ;;  %v911_v36 = vld [vmem:[%s7247_s7 + $0x510] sm:$0x3]  ;;  %v1180_v37 = vrot.slane %v725_v24, %v7263_v25  ;;  %v6370_v16 = vpack.c.bf16 %v917_v6, %v789_v5  ;;  %v921_v24 = vld [vmem:[%s7247_s7 + $0x560] sm:$0x3]  ;;  %v936_v5 = vld [vmem:[%s7247_s7 + $0x5d8] sm:$0x3] }
  0xcb   : > { %6329 = vmatprep.subr.bf16.mxu0 %v6328_v38  ;;  %2403 = vmatprep.mubr.f32.mxu1 %v1121_v39  ;;  %v786_v38 = vld [vmem:[%s7247_s7 + $0x128] sm:$0xff]  ;;  %v6358_v45 = vpack.c.bf16 %v911_v36, %v783_v35 }
  0xcc   : > { %6333 = vmatprep.subr.bf16.mxu1 %v6332_v40  ;;  %v914_v39 = vld [vmem:[%s7247_s7 + $0x528] sm:$0x3]  ;;  %v1187_v40 = vrot.slane %v1173_v32, %v7263_v25  ;;  %v800_v32 = vld [vmem:[%s7247_s7 + $0x198] sm:$0xff]  ;;  %v731_v6 = vld [vmem:[%s7245_s6 + $0x70] sm:$0xff] }
  0xcd   : > { %v6360_v47 = vpack.c.bf16 %v914_v39, %v786_v38 }
  0xce   : > { %v1189_v48 = vcombine.high %v1187_v40, %v1187_v40 }
  0xd0   : > { %2334 = vmatmul.mubr.f32.vlgmr.msra.gmra.mrb[8].mxu0 %v1112_v28  ;;  %v1171_v28 = vcombine.high %v1163_v18, %v1163_v18 }
  0xd1   : > { %2404 = vmatmul.mubr.f32.vlgmr.msra.gmra.mrb[8].mxu1 %v1119_v31  ;;  %6331 = vmatpush1.bf16.xpose.msra.mxu0 %v6330_v53  ;;  %v6356_v31 = vpack.c.bf16 %v912_v23, %v784_v22  ;;  %v787_v53 = vld [vmem:[%s7247_s7 + $0x130] sm:$0xff]  ;;  %v1224_v22 = vcombine.high %v728_v15, %v728_v15  ;;  %v793_v23 = vld [vmem:[%s7247_s7 + $0x160] sm:$0xff] }
  0xd2   : > { %6335 = vmatpush1.bf16.xpose.msra.mxu1 %v6334_v54  ;;  %2473 = vmatprep.mubr.f32.mxu0 %v1137_v55  ;;  %v915_v54 = vld [vmem:[%s7247_s7 + $0x530] sm:$0x3]  ;;  %v1197_v55 = vrot.slane %v726_v43, %v7263_v25  ;;  %v6378_v35 = vpack.c.bf16 %v921_v24, %v793_v23  ;;  %v925_v43 = vld [vmem:[%s7247_s7 + $0x580] sm:$0x3]  ;;  %v940_v23 = vld [vmem:[%s7247_s7 + $0x5f8] sm:$0x3] }
  0xd3   : > { %6337 = vmatprep.subr.bf16.mxu0 %v6336_v56  ;;  %2543 = vmatprep.mubr.f32.mxu1 %v1138_v57  ;;  %v790_v56 = vld [vmem:[%s7247_s7 + $0x148] sm:$0xff]  ;;  %v6366_v63 = vpack.c.bf16 %v915_v54, %v787_v53  ;;  %v732_v24 = vld [vmem:[%s7245_s6 + $0x78] sm:$0xff] }
  0xd4   : > { %6341 = vmatprep.subr.bf16.mxu1 %v6340_v58  ;;  %v918_v57 = vld [vmem:[%s7247_s7 + $0x548] sm:$0x3]  ;;  %v1204_v58 = vrot.slane %v1190_v50, %v7263_v25  ;;  %v804_v50 = vld [vmem:[%s7247_s7 + $0x1b8] sm:$0xff] }
  0xd5   : > { %v6368_v1 = vpack.c.bf16 %v918_v57, %v790_v56 }
  0xd6   : > { %v1206_v2 = vcombine.high %v1204_v58, %v1204_v58 }
  0xd8   : > { %2474 = vmatmul.mubr.f32.vlgmr.msra.gmra.mrb[10].mxu0 %v1129_v46  ;;  %v1188_v46 = vcombine.high %v1180_v37, %v1180_v37 }
  0xd9   : > { %2544 = vmatmul.mubr.f32.vlgmr.msra.gmra.mrb[10].mxu1 %v1136_v49  ;;  %6339 = vmatpush1.bf16.xpose.msra.mxu0 %v6338_v7  ;;  %v6364_v49 = vpack.c.bf16 %v916_v42, %v788_v41  ;;  %v791_v7 = vld [vmem:[%s7247_s7 + $0x150] sm:$0xff]  ;;  %v1241_v41 = vcombine.high %v729_v34, %v729_v34  ;;  %v797_v42 = vld [vmem:[%s7247_s7 + $0x180] sm:$0xff] }
  0xda   : > { %6343 = vmatpush1.bf16.xpose.msra.mxu1 %v6342_v8  ;;  %2613 = vmatprep.mubr.f32.mxu0 %v1154_v9  ;;  %v919_v8 = vld [vmem:[%s7247_s7 + $0x550] sm:$0x3]  ;;  %v1214_v9 = vrot.slane %v727_v61, %v7263_v25  ;;  %v6386_v53 = vpack.c.bf16 %v925_v43, %v797_v42  ;;  %v929_v61 = vld [vmem:[%s7247_s7 + $0x5a0] sm:$0x3]  ;;  %v944_v42 = vld [vmem:[%s7247_s7 + $0x618] sm:$0x3] }
  0xdb   : > { %6345 = vmatprep.subr.bf16.mxu0 %v6344_v10  ;;  %2683 = vmatprep.mubr.f32.mxu1 %v1155_v11  ;;  %v794_v10 = vld [vmem:[%s7247_s7 + $0x168] sm:$0xff]  ;;  %v6374_v17 = vpack.c.bf16 %v919_v8, %v791_v7  ;;  %v733_v43 = vld [vmem:[%s7245_s6 + $0x80] sm:$0xff] }
  0xdc   : > { %6349 = vmatprep.subr.bf16.mxu1 %v6348_v12  ;;  %v922_v11 = vld [vmem:[%s7247_s7 + $0x568] sm:$0x3]  ;;  %v1221_v12 = vrot.slane %v1207_v4, %v7263_v25  ;;  %v808_v4 = vld [vmem:[%s7247_s7 + $0x1d8] sm:$0xff] }
  0xdd   : > { %v6376_v19 = vpack.c.bf16 %v922_v11, %v794_v10 }
  0xde   : > { %v1223_v20 = vcombine.high %v1221_v12, %v1221_v12 }
  0xe0   : > { %2614 = vmatmul.mubr.f32.vlgmr.msra.gmra.mrb[12].mxu0 %v1146_v0  ;;  %v1205_v0 = vcombine.high %v1197_v55, %v1197_v55 }
  0xe1   : > { %2684 = vmatmul.mubr.f32.vlgmr.msra.gmra.mrb[12].mxu1 %v1153_v3  ;;  %6347 = vmatpush1.bf16.xpose.msra.mxu0 %v6346_v26  ;;  %v6372_v3 = vpack.c.bf16 %v920_v60, %v792_v59  ;;  %v795_v26 = vld [vmem:[%s7247_s7 + $0x170] sm:$0xff]  ;;  %v1258_v59 = vcombine.high %v730_v52, %v730_v52  ;;  %v801_v60 = vld [vmem:[%s7247_s7 + $0x1a0] sm:$0xff] }
  0xe2   : > { %6351 = vmatpush1.bf16.xpose.msra.mxu1 %v6350_v27  ;;  %2753 = vmatprep.mubr.f32.mxu0 %v1171_v28  ;;  %v923_v27 = vld [vmem:[%s7247_s7 + $0x570] sm:$0x3]  ;;  %v1231_v28 = vrot.slane %v728_v15, %v7263_v25  ;;  %v6394_v7 = vpack.c.bf16 %v929_v61, %v801_v60  ;;  %v933_v15 = vld [vmem:[%s7247_s7 + $0x5c0] sm:$0x3]  ;;  %v948_v60 = vld [vmem:[%s7247_s7 + $0x638] sm:$0x3] }
  0xe3   : > { %6353 = vmatprep.subr.bf16.mxu0 %v6352_v29  ;;  %2823 = vmatprep.mubr.f32.mxu1 %v1172_v30  ;;  %v798_v29 = vld [vmem:[%s7247_s7 + $0x188] sm:$0xff]  ;;  %v6382_v36 = vpack.c.bf16 %v923_v27, %v795_v26 }
  0xe4   : > { %6357 = vmatprep.subr.bf16.mxu1 %v6356_v31  ;;  %v926_v30 = vld [vmem:[%s7247_s7 + $0x588] sm:$0x3]  ;;  %v1238_v31 = vrot.slane %v1224_v22, %v7263_v25  ;;  %v812_v22 = vld [vmem:[%s7247_s7 + $0x1f8] sm:$0xff] }
  0xe5   : > { %v6384_v38 = vpack.c.bf16 %v926_v30, %v798_v29  ;;  %v734_v61 = vld [vmem:[%s7245_s6 + $0x88] sm:$0xff] }
  0xe6   : > { %v1240_v39 = vcombine.high %v1238_v31, %v1238_v31 }
  0xe8   : > { %2754 = vmatmul.mubr.f32.vlgmr.msra.gmra.mrb[14].mxu0 %v1163_v18  ;;  %v1222_v18 = vcombine.high %v1214_v9, %v1214_v9 }
  0xe9   : > { %2824 = vmatmul.mubr.f32.vlgmr.msra.gmra.mrb[14].mxu1 %v1170_v21  ;;  %6355 = vmatpush1.bf16.xpose.msra.mxu0 %v6354_v44  ;;  %v6380_v21 = vpack.c.bf16 %v924_v14, %v796_v13  ;;  %v799_v44 = vld [vmem:[%s7247_s7 + $0x190] sm:$0xff]  ;;  %v1275_v13 = vcombine.high %v731_v6, %v731_v6  ;;  %v805_v14 = vld [vmem:[%s7247_s7 + $0x1c0] sm:$0xff] }
  0xea   : > { %6359 = vmatpush1.bf16.xpose.msra.mxu1 %v6358_v45  ;;  %2893 = vmatprep.mubr.f32.mxu0 %v1188_v46  ;;  %v927_v45 = vld [vmem:[%s7247_s7 + $0x590] sm:$0x3]  ;;  %v1248_v46 = vrot.slane %v729_v34, %v7263_v25  ;;  %v6402_v26 = vpack.c.bf16 %v933_v15, %v805_v14  ;;  %v937_v34 = vld [vmem:[%s7247_s7 + $0x5e0] sm:$0x3]  ;;  %v952_v14 = vld [vmem:[%s7247_s7 + $0x658] sm:$0x3] }
  0xeb   : > { %6361 = vmatprep.subr.bf16.mxu0 %v6360_v47  ;;  %2963 = vmatprep.mubr.f32.mxu1 %v1189_v48  ;;  %v802_v47 = vld [vmem:[%s7247_s7 + $0x1a8] sm:$0xff]  ;;  %v6390_v54 = vpack.c.bf16 %v927_v45, %v799_v44 }
  0xec   : > { %6365 = vmatprep.subr.bf16.mxu1 %v6364_v49  ;;  %v930_v48 = vld [vmem:[%s7247_s7 + $0x5a8] sm:$0x3]  ;;  %v1255_v49 = vrot.slane %v1241_v41, %v7263_v25  ;;  %v816_v41 = vld [vmem:[%s7247_s7 + $0x218] sm:$0xff]  ;;  %v735_v15 = vld [vmem:[%s7245_s6 + $0x90] sm:$0xff] }
  0xed   : > { %v6392_v56 = vpack.c.bf16 %v930_v48, %v802_v47 }
  0xee   : > { %v1257_v57 = vcombine.high %v1255_v49, %v1255_v49 }
  0xf0   : > { %2894 = vmatmul.mubr.f32.vlgmr.msra.gmra.mrb[16].mxu0 %v1180_v37  ;;  %v1239_v37 = vcombine.high %v1231_v28, %v1231_v28 }
  0xf1   : > { %2964 = vmatmul.mubr.f32.vlgmr.msra.gmra.mrb[16].mxu1 %v1187_v40  ;;  %6363 = vmatpush1.bf16.xpose.msra.mxu0 %v6362_v62  ;;  %v6388_v40 = vpack.c.bf16 %v928_v33, %v800_v32  ;;  %v803_v62 = vld [vmem:[%s7247_s7 + $0x1b0] sm:$0xff]  ;;  %v1292_v32 = vcombine.high %v732_v24, %v732_v24  ;;  %v809_v33 = vld [vmem:[%s7247_s7 + $0x1e0] sm:$0xff] }
  0xf2   : > { %6367 = vmatpush1.bf16.xpose.msra.mxu1 %v6366_v63  ;;  %3033 = vmatprep.mubr.f32.mxu0 %v1205_v0  ;;  %v931_v63 = vld [vmem:[%s7247_s7 + $0x5b0] sm:$0x3]  ;;  %v1265_v0 = vrot.slane %v730_v52, %v7263_v25  ;;  %v6410_v44 = vpack.c.bf16 %v937_v34, %v809_v33  ;;  %v941_v52 = vld [vmem:[%s7247_s7 + $0x600] sm:$0x3]  ;;  %v956_v33 = vld [vmem:[%s7247_s7 + $0x678] sm:$0x3] }
  0xf3   : > { %6369 = vmatprep.subr.bf16.mxu0 %v6368_v1  ;;  %3103 = vmatprep.mubr.f32.mxu1 %v1206_v2  ;;  %v806_v1 = vld [vmem:[%s7247_s7 + $0x1c8] sm:$0xff]  ;;  %v6398_v8 = vpack.c.bf16 %v931_v63, %v803_v62  ;;  %v736_v34 = vld [vmem:[%s7245_s6 + $0x98] sm:$0xff] }
  0xf4   : > { %6373 = vmatprep.subr.bf16.mxu1 %v6372_v3  ;;  %v934_v2 = vld [vmem:[%s7247_s7 + $0x5c8] sm:$0x3]  ;;  %v1272_v3 = vrot.slane %v1258_v59, %v7263_v25  ;;  %v820_v59 = vld [vmem:[%s7247_s7 + $0x238] sm:$0xff] }
  0xf5   : > { %v6400_v10 = vpack.c.bf16 %v934_v2, %v806_v1 }
  0xf6   : > { %v1274_v11 = vcombine.high %v1272_v3, %v1272_v3 }
  0xf8   : > { %3034 = vmatmul.mubr.f32.vlgmr.msra.gmra.mrb[18].mxu0 %v1197_v55  ;;  %v1256_v55 = vcombine.high %v1248_v46, %v1248_v46 }
  0xf9   : > { %3104 = vmatmul.mubr.f32.vlgmr.msra.gmra.mrb[18].mxu1 %v1204_v58  ;;  %6371 = vmatpush1.bf16.xpose.msra.mxu0 %v6370_v16  ;;  %v6396_v58 = vpack.c.bf16 %v932_v51, %v804_v50  ;;  %v807_v16 = vld [vmem:[%s7247_s7 + $0x1d0] sm:$0xff]  ;;  %v1309_v50 = vcombine.high %v733_v43, %v733_v43  ;;  %v813_v51 = vld [vmem:[%s7247_s7 + $0x200] sm:$0xff] }
  0xfa   : > { %6375 = vmatpush1.bf16.xpose.msra.mxu1 %v6374_v17  ;;  %3173 = vmatprep.mubr.f32.mxu0 %v1222_v18  ;;  %v935_v17 = vld [vmem:[%s7247_s7 + $0x5d0] sm:$0x3]  ;;  %v1282_v18 = vrot.slane %v731_v6, %v7263_v25  ;;  %v6418_v62 = vpack.c.bf16 %v941_v52, %v813_v51  ;;  %v945_v6 = vld [vmem:[%s7247_s7 + $0x620] sm:$0x3]  ;;  %v960_v51 = vld [vmem:[%s7247_s7 + $0x698] sm:$0x3] }
  0xfb   : > { %6377 = vmatprep.subr.bf16.mxu0 %v6376_v19  ;;  %3243 = vmatprep.mubr.f32.mxu1 %v1223_v20  ;;  %v810_v19 = vld [vmem:[%s7247_s7 + $0x1e8] sm:$0xff]  ;;  %v6406_v27 = vpack.c.bf16 %v935_v17, %v807_v16  ;;  %v737_v52 = vld [vmem:[%s7245_s6 + $0xa0] sm:$0xff] }
  0xfc   : > { %6381 = vmatprep.subr.bf16.mxu1 %v6380_v21  ;;  %v938_v20 = vld [vmem:[%s7247_s7 + $0x5e8] sm:$0x3]  ;;  %v1289_v21 = vrot.slane %v1275_v13, %v7263_v25  ;;  %v824_v13 = vld [vmem:[%s7247_s7 + $0x258] sm:$0xff] }
  0xfd   : > { %v6408_v29 = vpack.c.bf16 %v938_v20, %v810_v19 }
  0xfe   : > { %v1291_v30 = vcombine.high %v1289_v21, %v1289_v21 }
 0x100   : > { %3174 = vmatmul.mubr.f32.vlgmr.msra.gmra.mrb[20].mxu0 %v1214_v9  ;;  %v1273_v9 = vcombine.high %v1265_v0, %v1265_v0 }
 0x101   : > { %3244 = vmatmul.mubr.f32.vlgmr.msra.gmra.mrb[20].mxu1 %v1221_v12  ;;  %6379 = vmatpush1.bf16.xpose.msra.mxu0 %v6378_v35  ;;  %v6404_v12 = vpack.c.bf16 %v936_v5, %v808_v4  ;;  %v811_v35 = vld [vmem:[%s7247_s7 + $0x1f0] sm:$0xff]  ;;  %v1326_v4 = vcombine.high %v734_v61, %v734_v61  ;;  %v817_v5 = vld [vmem:[%s7247_s7 + $0x220] sm:$0xff] }
 0x102   : > { %6383 = vmatpush1.bf16.xpose.msra.mxu1 %v6382_v36  ;;  %3313 = vmatprep.mubr.f32.mxu0 %v1239_v37  ;;  %v939_v36 = vld [vmem:[%s7247_s7 + $0x5f0] sm:$0x3]  ;;  %v1299_v37 = vrot.slane %v732_v24, %v7263_v25  ;;  %v6426_v16 = vpack.c.bf16 %v945_v6, %v817_v5  ;;  %v949_v24 = vld [vmem:[%s7247_s7 + $0x640] sm:$0x3]  ;;  %v964_v5 = vld [vmem:[%s7247_s7 + $0x6b8] sm:$0x3] }
 0x103   : > { %6385 = vmatprep.subr.bf16.mxu0 %v6384_v38  ;;  %3383 = vmatprep.mubr.f32.mxu1 %v1240_v39  ;;  %v814_v38 = vld [vmem:[%s7247_s7 + $0x208] sm:$0xff]  ;;  %v6414_v45 = vpack.c.bf16 %v939_v36, %v811_v35 }
 0x104   : > { %6389 = vmatprep.subr.bf16.mxu1 %v6388_v40  ;;  %v942_v39 = vld [vmem:[%s7247_s7 + $0x608] sm:$0x3]  ;;  %v1306_v40 = vrot.slane %v1292_v32, %v7263_v25  ;;  %v828_v32 = vld [vmem:[%s7247_s7 + $0x278] sm:$0xff] }
 0x105   : > { %v6416_v47 = vpack.c.bf16 %v942_v39, %v814_v38  ;;  %v738_v6 = vld [vmem:[%s7245_s6 + $0xa8] sm:$0xff] }
 0x106   : > { %v1308_v48 = vcombine.high %v1306_v40, %v1306_v40 }
 0x108   : > { %3314 = vmatmul.mubr.f32.vlgmr.msra.gmra.mrb[22].mxu0 %v1231_v28  ;;  %v1290_v28 = vcombine.high %v1282_v18, %v1282_v18 }
 0x109   : > { %3384 = vmatmul.mubr.f32.vlgmr.msra.gmra.mrb[22].mxu1 %v1238_v31  ;;  %6387 = vmatpush1.bf16.xpose.msra.mxu0 %v6386_v53  ;;  %v6412_v31 = vpack.c.bf16 %v940_v23, %v812_v22  ;;  %v815_v53 = vld [vmem:[%s7247_s7 + $0x210] sm:$0xff]  ;;  %v1343_v22 = vcombine.high %v735_v15, %v735_v15  ;;  %v821_v23 = vld [vmem:[%s7247_s7 + $0x240] sm:$0xff] }
 0x10a   : > { %6391 = vmatpush1.bf16.xpose.msra.mxu1 %v6390_v54  ;;  %3453 = vmatprep.mubr.f32.mxu0 %v1256_v55  ;;  %v943_v54 = vld [vmem:[%s7247_s7 + $0x610] sm:$0x3]  ;;  %v1316_v55 = vrot.slane %v733_v43, %v7263_v25  ;;  %v6434_v35 = vpack.c.bf16 %v949_v24, %v821_v23  ;;  %v953_v43 = vld [vmem:[%s7247_s7 + $0x660] sm:$0x3]  ;;  %v968_v23 = vld [vmem:[%s7247_s7 + $0x6d8] sm:$0x3] }
 0x10b   : > { %6393 = vmatprep.subr.bf16.mxu0 %v6392_v56  ;;  %3523 = vmatprep.mubr.f32.mxu1 %v1257_v57  ;;  %v818_v56 = vld [vmem:[%s7247_s7 + $0x228] sm:$0xff]  ;;  %v6422_v63 = vpack.c.bf16 %v943_v54, %v815_v53 }
 0x10c   : > { %6397 = vmatprep.subr.bf16.mxu1 %v6396_v58  ;;  %v946_v57 = vld [vmem:[%s7247_s7 + $0x628] sm:$0x3]  ;;  %v1323_v58 = vrot.slane %v1309_v50, %v7263_v25  ;;  %v832_v50 = vld [vmem:[%s7247_s7 + $0x298] sm:$0xff]  ;;  %v739_v24 = vld [vmem:[%s7245_s6 + $0xb0] sm:$0xff] }
 0x10d   : > { %v6424_v1 = vpack.c.bf16 %v946_v57, %v818_v56 }
 0x10e   : > { %v1325_v2 = vcombine.high %v1323_v58, %v1323_v58 }
 0x110   : > { %3454 = vmatmul.mubr.f32.vlgmr.msra.gmra.mrb[24].mxu0 %v1248_v46  ;;  %v1307_v46 = vcombine.high %v1299_v37, %v1299_v37 }
 0x111   : > { %3524 = vmatmul.mubr.f32.vlgmr.msra.gmra.mrb[24].mxu1 %v1255_v49  ;;  %6395 = vmatpush1.bf16.xpose.msra.mxu0 %v6394_v7  ;;  %v6420_v49 = vpack.c.bf16 %v944_v42, %v816_v41  ;;  %v819_v7 = vld [vmem:[%s7247_s7 + $0x230] sm:$0xff]  ;;  %v1360_v41 = vcombine.high %v736_v34, %v736_v34  ;;  %v825_v42 = vld [vmem:[%s7247_s7 + $0x260] sm:$0xff] }
 0x112   : > { %6399 = vmatpush1.bf16.xpose.msra.mxu1 %v6398_v8  ;;  %3593 = vmatprep.mubr.f32.mxu0 %v1273_v9  ;;  %v947_v8 = vld [vmem:[%s7247_s7 + $0x630] sm:$0x3]  ;;  %v1333_v9 = vrot.slane %v734_v61, %v7263_v25  ;;  %v6442_v53 = vpack.c.bf16 %v953_v43, %v825_v42  ;;  %v957_v61 = vld [vmem:[%s7247_s7 + $0x680] sm:$0x3]  ;;  %v972_v42 = vld [vmem:[%s7247_s7 + $0x6f8] sm:$0x3] }
 0x113   : > { %6401 = vmatprep.subr.bf16.mxu0 %v6400_v10  ;;  %3663 = vmatprep.mubr.f32.mxu1 %v1274_v11  ;;  %v822_v10 = vld [vmem:[%s7247_s7 + $0x248] sm:$0xff]  ;;  %v6430_v17 = vpack.c.bf16 %v947_v8, %v819_v7  ;;  %v740_v43 = vld [vmem:[%s7245_s6 + $0xb8] sm:$0xff] }
 0x114   : > { %6405 = vmatprep.subr.bf16.mxu1 %v6404_v12  ;;  %v950_v11 = vld [vmem:[%s7247_s7 + $0x648] sm:$0x3]  ;;  %v1340_v12 = vrot.slane %v1326_v4, %v7263_v25  ;;  %v836_v4 = vld [vmem:[%s7247_s7 + $0x2b8] sm:$0xff] }
 0x115   : > { %v6432_v19 = vpack.c.bf16 %v950_v11, %v822_v10 }
 0x116   : > { %v1342_v20 = vcombine.high %v1340_v12, %v1340_v12 }
 0x118   : > { %3594 = vmatmul.mubr.f32.vlgmr.msra.gmra.mrb[26].mxu0 %v1265_v0  ;;  %v1324_v0 = vcombine.high %v1316_v55, %v1316_v55 }
 0x119   : > { %3664 = vmatmul.mubr.f32.vlgmr.msra.gmra.mrb[26].mxu1 %v1272_v3  ;;  %6403 = vmatpush1.bf16.xpose.msra.mxu0 %v6402_v26  ;;  %v6428_v3 = vpack.c.bf16 %v948_v60, %v820_v59  ;;  %v823_v26 = vld [vmem:[%s7247_s7 + $0x250] sm:$0xff]  ;;  %v1377_v59 = vcombine.high %v737_v52, %v737_v52  ;;  %v829_v60 = vld [vmem:[%s7247_s7 + $0x280] sm:$0xff] }
 0x11a   : > { %6407 = vmatpush1.bf16.xpose.msra.mxu1 %v6406_v27  ;;  %3733 = vmatprep.mubr.f32.mxu0 %v1290_v28  ;;  %v951_v27 = vld [vmem:[%s7247_s7 + $0x650] sm:$0x3]  ;;  %v1350_v28 = vrot.slane %v735_v15, %v7263_v25  ;;  %v6450_v7 = vpack.c.bf16 %v957_v61, %v829_v60  ;;  %v961_v15 = vld [vmem:[%s7247_s7 + $0x6a0] sm:$0x3]  ;;  %v976_v60 = vld [vmem:[%s7247_s7 + $0x718] sm:$0x3] }
 0x11b   : > { %6409 = vmatprep.subr.bf16.mxu0 %v6408_v29  ;;  %3803 = vmatprep.mubr.f32.mxu1 %v1291_v30  ;;  %v826_v29 = vld [vmem:[%s7247_s7 + $0x268] sm:$0xff]  ;;  %v6438_v36 = vpack.c.bf16 %v951_v27, %v823_v26  ;;  %v741_v61 = vld [vmem:[%s7245_s6 + $0xc0] sm:$0xff] }
 0x11c   : > { %6413 = vmatprep.subr.bf16.mxu1 %v6412_v31  ;;  %v954_v30 = vld [vmem:[%s7247_s7 + $0x668] sm:$0x3]  ;;  %v1357_v31 = vrot.slane %v1343_v22, %v7263_v25  ;;  %v840_v22 = vld [vmem:[%s7247_s7 + $0x2d8] sm:$0xff] }
 0x11d   : > { %v6440_v38 = vpack.c.bf16 %v954_v30, %v826_v29 }
 0x11e   : > { %v1359_v39 = vcombine.high %v1357_v31, %v1357_v31 }
 0x120   : > { %3734 = vmatmul.mubr.f32.vlgmr.msra.gmra.mrb[28].mxu0 %v1282_v18  ;;  %v1341_v18 = vcombine.high %v1333_v9, %v1333_v9 }
 0x121   : > { %3804 = vmatmul.mubr.f32.vlgmr.msra.gmra.mrb[28].mxu1 %v1289_v21  ;;  %6411 = vmatpush1.bf16.xpose.msra.mxu0 %v6410_v44  ;;  %v6436_v21 = vpack.c.bf16 %v952_v14, %v824_v13  ;;  %v827_v44 = vld [vmem:[%s7247_s7 + $0x270] sm:$0xff]  ;;  %v1394_v13 = vcombine.high %v738_v6, %v738_v6  ;;  %v833_v14 = vld [vmem:[%s7247_s7 + $0x2a0] sm:$0xff] }
 0x122   : > { %6415 = vmatpush1.bf16.xpose.msra.mxu1 %v6414_v45  ;;  %3873 = vmatprep.mubr.f32.mxu0 %v1307_v46  ;;  %v955_v45 = vld [vmem:[%s7247_s7 + $0x670] sm:$0x3]  ;;  %v1367_v46 = vrot.slane %v736_v34, %v7263_v25  ;;  %v6458_v26 = vpack.c.bf16 %v961_v15, %v833_v14  ;;  %v965_v34 = vld [vmem:[%s7247_s7 + $0x6c0] sm:$0x3]  ;;  %v980_v14 = vld [vmem:[%s7247_s7 + $0x738] sm:$0x3] }
 0x123   : > { %6417 = vmatprep.subr.bf16.mxu0 %v6416_v47  ;;  %3943 = vmatprep.mubr.f32.mxu1 %v1308_v48  ;;  %v830_v47 = vld [vmem:[%s7247_s7 + $0x288] sm:$0xff]  ;;  %v6446_v54 = vpack.c.bf16 %v955_v45, %v827_v44 }
 0x124   : > { %6421 = vmatprep.subr.bf16.mxu1 %v6420_v49  ;;  %v958_v48 = vld [vmem:[%s7247_s7 + $0x688] sm:$0x3]  ;;  %v1374_v49 = vrot.slane %v1360_v41, %v7263_v25  ;;  %v844_v41 = vld [vmem:[%s7247_s7 + $0x2f8] sm:$0xff] }
 0x125   : > { %v6448_v56 = vpack.c.bf16 %v958_v48, %v830_v47  ;;  %v742_v15 = vld [vmem:[%s7245_s6 + $0xc8] sm:$0xff] }
 0x126   : > { %v1376_v57 = vcombine.high %v1374_v49, %v1374_v49 }
 0x128   : > { %3874 = vmatmul.mubr.f32.vlgmr.msra.gmra.mrb[30].mxu0 %v1299_v37  ;;  %v1358_v37 = vcombine.high %v1350_v28, %v1350_v28 }
 0x129   : > { %3944 = vmatmul.mubr.f32.vlgmr.msra.gmra.mrb[30].mxu1 %v1306_v40  ;;  %6419 = vmatpush1.bf16.xpose.msra.mxu0 %v6418_v62  ;;  %v6444_v40 = vpack.c.bf16 %v956_v33, %v828_v32  ;;  %v831_v62 = vld [vmem:[%s7247_s7 + $0x290] sm:$0xff]  ;;  %v1411_v32 = vcombine.high %v739_v24, %v739_v24  ;;  %v837_v33 = vld [vmem:[%s7247_s7 + $0x2c0] sm:$0xff] }
 0x12a   : > { %6423 = vmatpush1.bf16.xpose.msra.mxu1 %v6422_v63  ;;  %4013 = vmatprep.mubr.f32.mxu0 %v1324_v0  ;;  %v959_v63 = vld [vmem:[%s7247_s7 + $0x690] sm:$0x3]  ;;  %v1384_v0 = vrot.slane %v737_v52, %v7263_v25  ;;  %v6466_v44 = vpack.c.bf16 %v965_v34, %v837_v33  ;;  %v969_v52 = vld [vmem:[%s7247_s7 + $0x6e0] sm:$0x3]  ;;  %v984_v33 = vld [vmem:[%s7247_s7 + $0x758] sm:$0x3] }
 0x12b   : > { %6425 = vmatprep.subr.bf16.mxu0 %v6424_v1  ;;  %4083 = vmatprep.mubr.f32.mxu1 %v1325_v2  ;;  %v834_v1 = vld [vmem:[%s7247_s7 + $0x2a8] sm:$0xff]  ;;  %v6454_v8 = vpack.c.bf16 %v959_v63, %v831_v62 }
 0x12c   : > { %6429 = vmatprep.subr.bf16.mxu1 %v6428_v3  ;;  %v962_v2 = vld [vmem:[%s7247_s7 + $0x6a8] sm:$0x3]  ;;  %v1391_v3 = vrot.slane %v1377_v59, %v7263_v25  ;;  %v848_v59 = vld [vmem:[%s7247_s7 + $0x318] sm:$0xff]  ;;  %v743_v34 = vld [vmem:[%s7245_s6 + $0xd0] sm:$0xff] }
 0x12d   : > { %v6456_v10 = vpack.c.bf16 %v962_v2, %v834_v1 }
 0x12e   : > { %v1393_v11 = vcombine.high %v1391_v3, %v1391_v3 }
 0x130   : > { %4014 = vmatmul.mubr.f32.vlgmr.msra.gmra.mrb[32].mxu0 %v1316_v55  ;;  %v1375_v55 = vcombine.high %v1367_v46, %v1367_v46 }
 0x131   : > { %4084 = vmatmul.mubr.f32.vlgmr.msra.gmra.mrb[32].mxu1 %v1323_v58  ;;  %6427 = vmatpush1.bf16.xpose.msra.mxu0 %v6426_v16  ;;  %v6452_v58 = vpack.c.bf16 %v960_v51, %v832_v50  ;;  %v835_v16 = vld [vmem:[%s7247_s7 + $0x2b0] sm:$0xff]  ;;  %v1428_v50 = vcombine.high %v740_v43, %v740_v43  ;;  %v841_v51 = vld [vmem:[%s7247_s7 + $0x2e0] sm:$0xff] }
 0x132   : > { %6431 = vmatpush1.bf16.xpose.msra.mxu1 %v6430_v17  ;;  %4153 = vmatprep.mubr.f32.mxu0 %v1341_v18  ;;  %v963_v17 = vld [vmem:[%s7247_s7 + $0x6b0] sm:$0x3]  ;;  %v1401_v18 = vrot.slane %v738_v6, %v7263_v25  ;;  %v6474_v62 = vpack.c.bf16 %v969_v52, %v841_v51  ;;  %v973_v6 = vld [vmem:[%s7247_s7 + $0x700] sm:$0x3]  ;;  %v988_v51 = vld [vmem:[%s7247_s7 + $0x778] sm:$0x3] }
 0x133   : > { %6433 = vmatprep.subr.bf16.mxu0 %v6432_v19  ;;  %4223 = vmatprep.mubr.f32.mxu1 %v1342_v20  ;;  %v838_v19 = vld [vmem:[%s7247_s7 + $0x2c8] sm:$0xff]  ;;  %v6462_v27 = vpack.c.bf16 %v963_v17, %v835_v16  ;;  %v744_v52 = vld [vmem:[%s7245_s6 + $0xd8] sm:$0xff] }
 0x134   : > { %6437 = vmatprep.subr.bf16.mxu1 %v6436_v21  ;;  %v966_v20 = vld [vmem:[%s7247_s7 + $0x6c8] sm:$0x3]  ;;  %v1408_v21 = vrot.slane %v1394_v13, %v7263_v25  ;;  %v852_v13 = vld [vmem:[%s7247_s7 + $0x338] sm:$0xff] }
 0x135   : > { %v6464_v29 = vpack.c.bf16 %v966_v20, %v838_v19 }
 0x136   : > { %v1410_v30 = vcombine.high %v1408_v21, %v1408_v21 }
 0x138   : > { %4154 = vmatmul.mubr.f32.vlgmr.msra.gmra.mrb[34].mxu0 %v1333_v9  ;;  %v1392_v9 = vcombine.high %v1384_v0, %v1384_v0 }
 0x139   : > { %4224 = vmatmul.mubr.f32.vlgmr.msra.gmra.mrb[34].mxu1 %v1340_v12  ;;  %6435 = vmatpush1.bf16.xpose.msra.mxu0 %v6434_v35  ;;  %v6460_v12 = vpack.c.bf16 %v964_v5, %v836_v4  ;;  %v839_v35 = vld [vmem:[%s7247_s7 + $0x2d0] sm:$0xff]  ;;  %v1445_v4 = vcombine.high %v741_v61, %v741_v61  ;;  %v845_v5 = vld [vmem:[%s7247_s7 + $0x300] sm:$0xff] }
 0x13a   : > { %6439 = vmatpush1.bf16.xpose.msra.mxu1 %v6438_v36  ;;  %4293 = vmatprep.mubr.f32.mxu0 %v1358_v37  ;;  %v967_v36 = vld [vmem:[%s7247_s7 + $0x6d0] sm:$0x3]  ;;  %v1418_v37 = vrot.slane %v739_v24, %v7263_v25  ;;  %v6482_v16 = vpack.c.bf16 %v973_v6, %v845_v5  ;;  %v977_v24 = vld [vmem:[%s7247_s7 + $0x720] sm:$0x3]  ;;  %v992_v5 = vld [vmem:[%s7247_s7 + $0x798] sm:$0x3] }
 0x13b   : > { %6441 = vmatprep.subr.bf16.mxu0 %v6440_v38  ;;  %4363 = vmatprep.mubr.f32.mxu1 %v1359_v39  ;;  %v842_v38 = vld [vmem:[%s7247_s7 + $0x2e8] sm:$0xff]  ;;  %v6470_v45 = vpack.c.bf16 %v967_v36, %v839_v35  ;;  %v745_v6 = vld [vmem:[%s7245_s6 + $0xe0] sm:$0xff] }
 0x13c   : > { %6445 = vmatprep.subr.bf16.mxu1 %v6444_v40  ;;  %v970_v39 = vld [vmem:[%s7247_s7 + $0x6e8] sm:$0x3]  ;;  %v1425_v40 = vrot.slane %v1411_v32, %v7263_v25  ;;  %v856_v32 = vld [vmem:[%s7247_s7 + $0x358] sm:$0xff] }
 0x13d   : > { %v6472_v47 = vpack.c.bf16 %v970_v39, %v842_v38 }
 0x13e   : > { %v1427_v48 = vcombine.high %v1425_v40, %v1425_v40 }
 0x140   : > { %4294 = vmatmul.mubr.f32.vlgmr.msra.gmra.mrb[36].mxu0 %v1350_v28  ;;  %v1409_v28 = vcombine.high %v1401_v18, %v1401_v18 }
 0x141   : > { %4364 = vmatmul.mubr.f32.vlgmr.msra.gmra.mrb[36].mxu1 %v1357_v31  ;;  %6443 = vmatpush1.bf16.xpose.msra.mxu0 %v6442_v53  ;;  %v6468_v31 = vpack.c.bf16 %v968_v23, %v840_v22  ;;  %v843_v53 = vld [vmem:[%s7247_s7 + $0x2f0] sm:$0xff]  ;;  %v1462_v22 = vcombine.high %v742_v15, %v742_v15  ;;  %v849_v23 = vld [vmem:[%s7247_s7 + $0x320] sm:$0xff] }
 0x142   : > { %6447 = vmatpush1.bf16.xpose.msra.mxu1 %v6446_v54  ;;  %4433 = vmatprep.mubr.f32.mxu0 %v1375_v55  ;;  %v971_v54 = vld [vmem:[%s7247_s7 + $0x6f0] sm:$0x3]  ;;  %v1435_v55 = vrot.slane %v740_v43, %v7263_v25  ;;  %v6490_v35 = vpack.c.bf16 %v977_v24, %v849_v23  ;;  %v981_v43 = vld [vmem:[%s7247_s7 + $0x740] sm:$0x3] }
 0x143   : > { %6449 = vmatprep.subr.bf16.mxu0 %v6448_v56  ;;  %4503 = vmatprep.mubr.f32.mxu1 %v1376_v57  ;;  %v846_v56 = vld [vmem:[%s7247_s7 + $0x308] sm:$0xff]  ;;  %v6478_v63 = vpack.c.bf16 %v971_v54, %v843_v53 }
 0x144   : > { %6453 = vmatprep.subr.bf16.mxu1 %v6452_v58  ;;  %v974_v57 = vld [vmem:[%s7247_s7 + $0x708] sm:$0x3]  ;;  %v1442_v58 = vrot.slane %v1428_v50, %v7263_v25  ;;  %v860_v50 = vld [vmem:[%s7247_s7 + $0x378] sm:$0xff] }
 0x145   : > { %v6480_v1 = vpack.c.bf16 %v974_v57, %v846_v56 }
 0x146   : > { %v1444_v2 = vcombine.high %v1442_v58, %v1442_v58 }
 0x148   : > { %4434 = vmatmul.mubr.f32.vlgmr.msra.gmra.mrb[38].mxu0 %v1367_v46  ;;  %v1426_v46 = vcombine.high %v1418_v37, %v1418_v37 }
 0x149   : > { %4504 = vmatmul.mubr.f32.vlgmr.msra.gmra.mrb[38].mxu1 %v1374_v49  ;;  %6451 = vmatpush1.bf16.xpose.msra.mxu0 %v6450_v7  ;;  %v6476_v49 = vpack.c.bf16 %v972_v42, %v844_v41  ;;  %v847_v7 = vld [vmem:[%s7247_s7 + $0x310] sm:$0xff]  ;;  %v1479_v41 = vcombine.high %v743_v34, %v743_v34  ;;  %v853_v42 = vld [vmem:[%s7247_s7 + $0x340] sm:$0xff] }
 0x14a   : > { %6455 = vmatpush1.bf16.xpose.msra.mxu1 %v6454_v8  ;;  %4573 = vmatprep.mubr.f32.mxu0 %v1392_v9  ;;  %v975_v8 = vld [vmem:[%s7247_s7 + $0x710] sm:$0x3]  ;;  %v1452_v9 = vrot.slane %v741_v61, %v7263_v25  ;;  %v6498_v53 = vpack.c.bf16 %v981_v43, %v853_v42  ;;  %v985_v61 = vld [vmem:[%s7247_s7 + $0x760] sm:$0x3] }
 0x14b   : > { %6457 = vmatprep.subr.bf16.mxu0 %v6456_v10  ;;  %4643 = vmatprep.mubr.f32.mxu1 %v1393_v11  ;;  %v850_v10 = vld [vmem:[%s7247_s7 + $0x328] sm:$0xff]  ;;  %v6486_v17 = vpack.c.bf16 %v975_v8, %v847_v7 }
 0x14c   : > { %6461 = vmatprep.subr.bf16.mxu1 %v6460_v12  ;;  %v978_v11 = vld [vmem:[%s7247_s7 + $0x728] sm:$0x3]  ;;  %v1459_v12 = vrot.slane %v1445_v4, %v7263_v25  ;;  %v864_v4 = vld [vmem:[%s7247_s7 + $0x398] sm:$0xff] }
 0x14d   : > { %v6488_v19 = vpack.c.bf16 %v978_v11, %v850_v10 }
 0x14e   : > { %v1461_v20 = vcombine.high %v1459_v12, %v1459_v12 }
 0x150   : > { %4574 = vmatmul.mubr.f32.vlgmr.msra.gmra.mrb[40].mxu0 %v1384_v0  ;;  %v1443_v0 = vcombine.high %v1435_v55, %v1435_v55 }
 0x151   : > { %4644 = vmatmul.mubr.f32.vlgmr.msra.gmra.mrb[40].mxu1 %v1391_v3  ;;  %6459 = vmatpush1.bf16.xpose.msra.mxu0 %v6458_v26  ;;  %v6484_v3 = vpack.c.bf16 %v976_v60, %v848_v59  ;;  %v851_v26 = vld [vmem:[%s7247_s7 + $0x330] sm:$0xff]  ;;  %v1496_v59 = vcombine.high %v744_v52, %v744_v52  ;;  %v857_v60 = vld [vmem:[%s7247_s7 + $0x360] sm:$0xff] }
 0x152   : > { %6463 = vmatpush1.bf16.xpose.msra.mxu1 %v6462_v27  ;;  %4713 = vmatprep.mubr.f32.mxu0 %v1409_v28  ;;  %v979_v27 = vld [vmem:[%s7247_s7 + $0x730] sm:$0x3]  ;;  %v1469_v28 = vrot.slane %v742_v15, %v7263_v25  ;;  %v6506_v7 = vpack.c.bf16 %v985_v61, %v857_v60  ;;  %v989_v15 = vld [vmem:[%s7247_s7 + $0x780] sm:$0x3] }
 0x153   : > { %6465 = vmatprep.subr.bf16.mxu0 %v6464_v29  ;;  %4783 = vmatprep.mubr.f32.mxu1 %v1410_v30  ;;  %v854_v29 = vld [vmem:[%s7247_s7 + $0x348] sm:$0xff]  ;;  %v6494_v36 = vpack.c.bf16 %v979_v27, %v851_v26 }
 0x154   : > { %6469 = vmatprep.subr.bf16.mxu1 %v6468_v31  ;;  %v982_v30 = vld [vmem:[%s7247_s7 + $0x748] sm:$0x3]  ;;  %v1476_v31 = vrot.slane %v1462_v22, %v7263_v25 }
 0x155   : > { %v6496_v38 = vpack.c.bf16 %v982_v30, %v854_v29  ;;  %v994_v22 = vld [vmem:[%s7247_s7 + $0x7a8] sm:$0x3]  ;;  %v996_v29 = vld [vmem:[%s7247_s7 + $0x7b8] sm:$0x3] }
 0x156   : > { %v1478_v39 = vcombine.high %v1476_v31, %v1476_v31  ;;  %v746_v30 = vld [vmem:[%s7245_s6 + $0xe8] sm:$0xff] }
 0x157   : > { %v1537_v42 = vrot.slane %v746_v30, %v7263_v25 }
 0x158   : > { %4714 = vmatmul.mubr.f32.vlgmr.msra.gmra.mrb[42].mxu0 %v1401_v18  ;;  %v1460_v18 = vcombine.high %v1452_v9, %v1452_v9 }
 0x159   : > { %4784 = vmatmul.mubr.f32.vlgmr.msra.gmra.mrb[42].mxu1 %v1408_v21  ;;  %6467 = vmatpush1.bf16.xpose.msra.mxu0 %v6466_v44  ;;  %v6492_v21 = vpack.c.bf16 %v980_v14, %v852_v13  ;;  %v855_v44 = vld [vmem:[%s7247_s7 + $0x350] sm:$0xff]  ;;  %v1513_v13 = vcombine.high %v745_v6, %v745_v6  ;;  %v861_v14 = vld [vmem:[%s7247_s7 + $0x380] sm:$0xff] }
 0x15a   : > { %6471 = vmatpush1.bf16.xpose.msra.mxu1 %v6470_v45  ;;  %4853 = vmatprep.mubr.f32.mxu0 %v1426_v46  ;;  %v983_v45 = vld [vmem:[%s7247_s7 + $0x750] sm:$0x3]  ;;  %v1486_v46 = vrot.slane %v743_v34, %v7263_v25 }
 0x15b   : > { %6473 = vmatprep.subr.bf16.mxu0 %v6472_v47  ;;  %4923 = vmatprep.mubr.f32.mxu1 %v1427_v48  ;;  %v858_v47 = vld [vmem:[%s7247_s7 + $0x368] sm:$0xff]  ;;  %v6502_v54 = vpack.c.bf16 %v983_v45, %v855_v44  ;;  %v1527_v23 = vrot.slane %v1513_v13, %v7263_v25  ;;  %v1004_v13 = vld [vmem:[%s7247_s7 + $0x7f8] sm:$0x3] }
 0x15c   : > { %6477 = vmatprep.subr.bf16.mxu1 %v6476_v49  ;;  %v986_v48 = vld [vmem:[%s7247_s7 + $0x768] sm:$0x3]  ;;  %v1493_v49 = vrot.slane %v1479_v41, %v7263_v25  ;;  %v995_v41 = vld [vmem:[%s7247_s7 + $0x7b0] sm:$0x3] }
 0x15d   : > { %v6504_v56 = vpack.c.bf16 %v986_v48, %v858_v47  ;;  %v870_v45 = vld [vmem:[%s7247_s7 + $0x3c8] sm:$0xff] }
 0x15e   : > { %v1495_v57 = vcombine.high %v1493_v49, %v1493_v49 }
 0x160   : > { %4854 = vmatmul.mubr.f32.vlgmr.msra.gmra.mrb[44].mxu0 %v1418_v37  ;;  %v1477_v37 = vcombine.high %v1469_v28, %v1469_v28 }
 0x161   : > { %4924 = vmatmul.mubr.f32.vlgmr.msra.gmra.mrb[44].mxu1 %v1425_v40  ;;  %6475 = vmatpush1.bf16.xpose.msra.mxu0 %v6474_v62  ;;  %v6500_v40 = vpack.c.bf16 %v984_v33, %v856_v32  ;;  %v859_v62 = vld [vmem:[%s7247_s7 + $0x370] sm:$0xff] }
 0x162   : > { %6479 = vmatpush1.bf16.xpose.msra.mxu1 %v6478_v63  ;;  %4993 = vmatprep.mubr.f32.mxu0 %v1443_v0  ;;  %v987_v63 = vld [vmem:[%s7247_s7 + $0x770] sm:$0x3]  ;;  %v1503_v0 = vrot.slane %v744_v52, %v7263_v25  ;;  %v1000_v52 = vld [vmem:[%s7247_s7 + $0x7d8] sm:$0x3] }
 0x163   : > { %6481 = vmatprep.subr.bf16.mxu0 %v6480_v1  ;;  %5063 = vmatprep.mubr.f32.mxu1 %v1444_v2  ;;  %v862_v1 = vld [vmem:[%s7247_s7 + $0x388] sm:$0xff]  ;;  %v6510_v8 = vpack.c.bf16 %v987_v63, %v859_v62  ;;  %v869_v62 = vld [vmem:[%s7247_s7 + $0x3c0] sm:$0xff] }
 0x164   : > { %6485 = vmatprep.subr.bf16.mxu1 %v6484_v3  ;;  %v990_v2 = vld [vmem:[%s7247_s7 + $0x788] sm:$0x3]  ;;  %v1510_v3 = vrot.slane %v1496_v59, %v7263_v25  ;;  %v997_v63 = vld [vmem:[%s7247_s7 + $0x7c0] sm:$0x3] }
 0x165   : > { %v6512_v10 = vpack.c.bf16 %v990_v2, %v862_v1  ;;  %v999_v1 = vld [vmem:[%s7247_s7 + $0x7d0] sm:$0x3] }
 0x166   : > { %v1512_v11 = vcombine.high %v1510_v3, %v1510_v3 }
 0x168   : > { %4994 = vmatmul.mubr.f32.vlgmr.msra.gmra.mrb[46].mxu0 %v1435_v55  ;;  %v1494_v55 = vcombine.high %v1486_v46, %v1486_v46 }
 0x169   : > { %5064 = vmatmul.mubr.f32.vlgmr.msra.gmra.mrb[46].mxu1 %v1442_v58  ;;  %6483 = vmatpush1.bf16.xpose.msra.mxu0 %v6482_v16  ;;  %v6508_v58 = vpack.c.bf16 %v988_v51, %v860_v50  ;;  %v863_v16 = vld [vmem:[%s7247_s7 + $0x390] sm:$0xff]  ;;  %v872_v51 = vld [vmem:[%s7247_s7 + $0x3d8] sm:$0xff] }
 0x16a   : > { %6487 = vmatpush1.bf16.xpose.msra.mxu1 %v6486_v17  ;;  %5133 = vmatprep.mubr.f32.mxu0 %v1460_v18  ;;  %v991_v17 = vld [vmem:[%s7247_s7 + $0x790] sm:$0x3]  ;;  %v1520_v18 = vrot.slane %v745_v6, %v7263_v25  ;;  %v6532_v60 = vpack.c.bf16 %v1000_v52, %v872_v51  ;;  %v1002_v6 = vld [vmem:[%s7247_s7 + $0x7e8] sm:$0x3] }
 0x16b   : > { %6489 = vmatprep.subr.bf16.mxu0 %v6488_v19  ;;  %5203 = vmatprep.mubr.f32.mxu1 %v1461_v20  ;;  %v6518_v32 = vpack.c.bf16 %v991_v17, %v863_v16 }
 0x16c   : > { %6493 = vmatprep.subr.bf16.mxu1 %v6492_v21  ;;  %v866_v21 = vld [vmem:[%s7247_s7 + $0x3a8] sm:$0xff]  ;;  %v1528_v33 = vcombine.high %v1520_v18, %v1520_v18 }
 0x16d   : > { %v6520_v34 = vpack.c.bf16 %v994_v22, %v866_v21  ;;  %v873_v22 = vld [vmem:[%s7247_s7 + $0x3e0] sm:$0xff] }
 0x170   : > { %5134 = vmatmul.mubr.f32.vlgmr.msra.gmra.mrb[48].mxu0 %v1452_v9  ;;  %v1511_v9 = vcombine.high %v1503_v0, %v1503_v0 }
 0x171   : > { %5204 = vmatmul.mubr.f32.vlgmr.msra.gmra.mrb[48].mxu1 %v1459_v12  ;;  %6491 = vmatpush1.bf16.xpose.msra.mxu0 %v6490_v35  ;;  %v6516_v12 = vpack.c.bf16 %v992_v5, %v864_v4  ;;  %v1529_v35 = vcombine.high %v1527_v23, %v1527_v23  ;;  %v874_v5 = vld [vmem:[%s7247_s7 + $0x3e8] sm:$0xff] }
 0x172   : > { %6495 = vmatpush1.bf16.xpose.msra.mxu1 %v6494_v36  ;;  %5273 = vmatprep.mubr.f32.mxu0 %v1477_v37  ;;  %v1530_v37 = vcombine.high %v746_v30, %v746_v30 }
 0x173   : > { %6497 = vmatprep.subr.bf16.mxu0 %v6496_v38  ;;  %5343 = vmatprep.mubr.f32.mxu1 %v1478_v39  ;;  %v865_v38 = vld [vmem:[%s7247_s7 + $0x3a0] sm:$0xff] }
 0x174   : > { %6501 = vmatprep.subr.bf16.mxu1 %v6500_v40  ;;  %v993_v39 = vld [vmem:[%s7247_s7 + $0x7a0] sm:$0x3]  ;;  %v867_v40 = vld [vmem:[%s7247_s7 + $0x3b0] sm:$0xff]  ;;  %v1544_v47 = vrot.slane %v1530_v37, %v7263_v25 }
 0x176   : > { %v1546_v59 = vcombine.high %v1544_v47, %v1544_v47 }
 0x178   : > { %5274 = vmatmul.mubr.f32.vlgmr.msra.gmra.mrb[50].mxu0 %v1469_v28  ;;  %v868_v28 = vld [vmem:[%s7247_s7 + $0x3b8] sm:$0xff] }
 0x179   : > { %5344 = vmatmul.mubr.f32.vlgmr.msra.gmra.mrb[50].mxu1 %v1476_v31  ;;  %6499 = vmatpush1.bf16.xpose.msra.mxu0 %v6498_v53  ;;  %v6514_v31 = vpack.c.bf16 %v989_v15, %v861_v14  ;;  %v6524_v36 = vpack.c.bf16 %v996_v29, %v868_v28  ;;  %v747_v53 = vld [vmem:[%s7245_s6 + $0xf0] sm:$0xff]  ;;  %v6530_v14 = vpack.c.bf16 %v997_v63, %v869_v62 }
 0x17a   : > { %6503 = vmatpush1.bf16.xpose.msra.mxu1 %v6502_v54  ;;  %5413 = vmatprep.mubr.f32.mxu0 %v1494_v55  ;;  %v6522_v54 = vpack.c.bf16 %v993_v39, %v865_v38  ;;  %v6526_v55 = vpack.c.bf16 %v995_v41, %v867_v40  ;;  %v1547_v61 = vcombine.high %v747_v53, %v747_v53 }
 0x17b   : > { %6505 = vmatprep.subr.bf16.mxu0 %v6504_v56  ;;  %5483 = vmatprep.mubr.f32.mxu1 %v1495_v57  ;;  %v1545_v57 = vcombine.high %v1537_v42, %v1537_v42  ;;  %v1554_v2 = vrot.slane %v747_v53, %v7263_v25 }
 0x17c   : > { %6509 = vmatprep.subr.bf16.mxu1 %v6508_v58 }
 0x17d   : > { %v1562_v17 = vcombine.high %v1554_v2, %v1554_v2 }
 0x180   : > { %5414 = vmatmul.mubr.f32.vlgmr.msra.gmra.mrb[52].mxu0 %v1486_v46  ;;  %v998_v46 = vld [vmem:[%s7247_s7 + $0x7c8] sm:$0x3] }
 0x181   : > { %5484 = vmatmul.mubr.f32.vlgmr.msra.gmra.mrb[52].mxu1 %v1493_v49  ;;  %6507 = vmatpush1.bf16.xpose.msra.mxu0 %v6506_v7  ;;  %v6528_v58 = vpack.c.bf16 %v998_v46, %v870_v45  ;;  %v1561_v7 = vrot.slane %v1547_v61, %v7263_v25 }
 0x182   : > { %6511 = vmatpush1.bf16.xpose.msra.mxu1 %v6510_v8  ;;  %5553 = vmatprep.mubr.f32.mxu0 %v1511_v9  ;;  %v748_v8 = vld [vmem:[%s7245_s6 + $0xf8] sm:$0xff] }
 0x183   : > { %6513 = vmatprep.subr.bf16.mxu0 %v6512_v10  ;;  %v1775_v19 = vpop.f32.mrb[0].mxu0  ;;  %5623 = vmatprep.mubr.f32.mxu1 %v1512_v11 }
 0x184   : > { %v1845_v20 = vpop.f32.mrb[0].mxu1  ;;  %6517 = vmatprep.subr.bf16.mxu1 %v6516_v12  ;;  %v1777_v26 = vpop.f32.mrb[1].mxu0  ;;  %v876_v12 = vld [vmem:[%s7247_s7 + $0x3f8] sm:$0xff] }
 0x185   : > { %v1846_v24 = vadd.f32 %v1845_v20, %v1775_v19  ;;  %v1847_v27 = vpop.f32.mrb[1].mxu1  ;;  %v1564_v19 = vcombine.high %v748_v8, %v748_v8  ;;  %v1563_v20 = vcombine.high %v1561_v7, %v1561_v7  ;;  %v6540_v21 = vpack.c.bf16 %v1004_v13, %v876_v12  ;;  %v1003_v26 = vld [vmem:[%s7247_s7 + $0x7f0] sm:$0x3] }
 0x186   : > { %v1571_v27 = vrot.slane %v748_v8, %v7263_v25 }
 0x187   : > { %v1578_v28 = vrot.slane %v1564_v19, %v7263_v25 }
 0x188   : > { %5554 = vmatmul.mubr.f32.vlgmr.msra.gmra.mrb[54].mxu0 %v1503_v0  ;;  %v871_v0 = vld [vmem:[%s7247_s7 + $0x3d0] sm:$0xff]  ;;  %v1579_v37 = vcombine.high %v1571_v27, %v1571_v27 }
 0x189   : > { %5624 = vmatmul.mubr.f32.vlgmr.msra.gmra.mrb[54].mxu1 %v1510_v3  ;;  %6515 = vmatpush1.bf16.xpose.msra.mxu0 %v6514_v31  ;;  %v6534_v15 = vpack.c.bf16 %v999_v1, %v871_v0  ;;  %v1580_v38 = vcombine.high %v1578_v28, %v1578_v28 }
 0x18a   : > { %6519 = vmatpush1.bf16.xpose.msra.mxu1 %v6518_v32  ;;  %5693 = vmatprep.mubr.f32.mxu0 %v1528_v33 }
 0x18b   : > { %6521 = vmatprep.subr.bf16.mxu0 %v6520_v34  ;;  %v1915_v43 = vpop.f32.mrb[2].mxu0  ;;  %5763 = vmatprep.mubr.f32.mxu1 %v1529_v35 }
 0x18c   : > { %v1985_v44 = vpop.f32.mrb[2].mxu1  ;;  %6525 = vmatprep.subr.bf16.mxu1 %v6524_v36  ;;  %v1916_v48 = vadd.f32 %v1915_v43, %v1846_v24  ;;  %v1917_v49 = vpop.f32.mrb[3].mxu0  ;;  %v875_v24 = vld [vmem:[%s7247_s7 + $0x3f0] sm:$0xff] }
 0x18d   : > { %v1987_v50 = vpop.f32.mrb[3].mxu1  ;;  %v6542_v35 = vpack.c.bf16 %v1003_v26, %v875_v24 }
 0x18e   : > { %v1986_v56 = vadd.f32 %v1985_v44, %v1916_v48 }
 0x190   : > { %5694 = vmatmul.mubr.f32.vlgmr.msra.gmra.mrb[56].mxu0 %v1520_v18  ;;  %v6536_v18 = vpack.c.bf16 %v1002_v6, %v874_v5 }
 0x191   : > { %5764 = vmatmul.mubr.f32.vlgmr.msra.gmra.mrb[56].mxu1 %v1527_v23  ;;  %6523 = vmatpush1.bf16.xpose.msra.mxu0 %v6522_v54  ;;  %v1001_v23 = vld [vmem:[%s7247_s7 + $0x7e0] sm:$0x3] }
 0x192   : > { %6527 = vmatpush1.bf16.xpose.msra.mxu1 %v6526_v55  ;;  %5833 = vmatprep.mubr.f32.mxu0 %v1545_v57  ;;  %v6538_v34 = vpack.c.bf16 %v1001_v23, %v873_v22 }
 0x193   : > { %6529 = vmatprep.subr.bf16.mxu0 %v6528_v58  ;;  %v2055_v3 = vpop.f32.mrb[4].mxu0  ;;  %5903 = vmatprep.mubr.f32.mxu1 %v1546_v59 }
 0x194   : > { %v2125_v4 = vpop.f32.mrb[4].mxu1  ;;  %6533 = vmatprep.subr.bf16.mxu1 %v6532_v60  ;;  %v2056_v9 = vadd.f32 %v2055_v3, %v1986_v56  ;;  %v2057_v10 = vpop.f32.mrb[5].mxu0 }
 0x195   : > { %v2127_v11 = vpop.f32.mrb[5].mxu1 }
 0x196   : > { %v2126_v16 = vadd.f32 %v2125_v4, %v2056_v9 }
 0x198   : > { %5834 = vmatmul.mubr.f32.vlgmr.msra.gmra.mrb[58].mxu0 %v1537_v42 }
 0x199   : > { %5904 = vmatmul.mubr.f32.vlgmr.msra.gmra.mrb[58].mxu1 %v1544_v47  ;;  %6531 = vmatpush1.bf16.xpose.msra.mxu0 %v6530_v14 }
 0x19a   : > { %6535 = vmatpush1.bf16.xpose.msra.mxu1 %v6534_v15  ;;  %5973 = vmatprep.mubr.f32.mxu0 %v1562_v17 }
 0x19b   : > { %6537 = vmatprep.subr.bf16.mxu0 %v6536_v18  ;;  %v2195_v29 = vpop.f32.mrb[6].mxu0  ;;  %6043 = vmatprep.mubr.f32.mxu1 %v1563_v20 }
 0x19c   : > { %v2265_v30 = vpop.f32.mrb[6].mxu1  ;;  %6541 = vmatprep.subr.bf16.mxu1 %v6540_v21  ;;  %v2196_v31 = vadd.f32 %v2195_v29, %v2126_v16  ;;  %v2197_v32 = vpop.f32.mrb[7].mxu0 }
 0x19d   : > { %v2267_v33 = vpop.f32.mrb[7].mxu1 }
 0x19e   : > { %v2266_v36 = vadd.f32 %v2265_v30, %v2196_v31 }
 0x1a0   : > { %5974 = vmatmul.mubr.f32.vlgmr.msra.gmra.mrb[60].mxu0 %v1554_v2 }
 0x1a1   : > { %6044 = vmatmul.mubr.f32.vlgmr.msra.gmra.mrb[60].mxu1 %v1561_v7  ;;  %6539 = vmatpush1.bf16.xpose.msra.mxu0 %v6538_v34 }
 0x1a2   : > { %6543 = vmatpush1.bf16.xpose.msra.mxu1 %v6542_v35  ;;  %6113 = vmatprep.mubr.f32.mxu0 %v1579_v37 }
 0x1a3   : > { %6183 = vmatprep.mubr.f32.mxu1 %v1580_v38  ;;  %v2335_v39 = vpop.f32.mrb[8].mxu0 }
 0x1a4   : > { %v2405_v25 = vpop.f32.mrb[8].mxu1  ;;  %v2336_v40 = vadd.f32 %v2335_v39, %v2266_v36  ;;  %v2337_v41 = vpop.f32.mrb[9].mxu0 }
 0x1a5   : > { %v2407_v42 = vpop.f32.mrb[9].mxu1 }
 0x1a6   : > { %v2406_v43 = vadd.f32 %v2405_v25, %v2336_v40 }
 0x1a8   : > { %6114 = vmatmul.mubr.f32.vlgmr.msra.gmra.mrb[62].mxu0 %v1571_v27 }
 0x1a9   : > { %6184 = vmatmul.mubr.f32.vlgmr.msra.gmra.mrb[62].mxu1 %v1578_v28 }
 0x1ab   : > { %v2475_v44 = vpop.f32.mrb[10].mxu0 }
 0x1ac   : > { %v2545_v45 = vpop.f32.mrb[10].mxu1  ;;  %v2476_v46 = vadd.f32 %v2475_v44, %v2406_v43  ;;  %v2477_v47 = vpop.f32.mrb[11].mxu0 }
 0x1ad   : > { %v2547_v48 = vpop.f32.mrb[11].mxu1 }
 0x1ae   : > { %v2546_v49 = vadd.f32 %v2545_v45, %v2476_v46 }
 0x1b3   : > { %v2615_v50 = vpop.f32.mrb[12].mxu0 }
 0x1b4   : > { %v2685_v51 = vpop.f32.mrb[12].mxu1  ;;  %v2616_v52 = vadd.f32 %v2615_v50, %v2546_v49  ;;  %v2617_v53 = vpop.f32.mrb[13].mxu0 }
 0x1b5   : > { %v2687_v54 = vpop.f32.mrb[13].mxu1 }
 0x1b6   : > { %v2686_v55 = vadd.f32 %v2685_v51, %v2616_v52 }
 0x1bb   : > { %v2755_v56 = vpop.f32.mrb[14].mxu0 }
 0x1bc   : > { %v2825_v57 = vpop.f32.mrb[14].mxu1  ;;  %v2756_v58 = vadd.f32 %v2755_v56, %v2686_v55  ;;  %v2757_v59 = vpop.f32.mrb[15].mxu0 }
 0x1bd   : > { %v2827_v60 = vpop.f32.mrb[15].mxu1 }
 0x1be   : > { %v2826_v61 = vadd.f32 %v2825_v57, %v2756_v58 }
 0x1c3   : > { %v2895_v62 = vpop.f32.mrb[16].mxu0 }
 0x1c4   : > { %v2965_v63 = vpop.f32.mrb[16].mxu1  ;;  %v2896_v0 = vadd.f32 %v2895_v62, %v2826_v61  ;;  %v2897_v1 = vpop.f32.mrb[17].mxu0 }
 0x1c5   : > { %v2967_v2 = vpop.f32.mrb[17].mxu1 }
 0x1c6   : > { %v2966_v3 = vadd.f32 %v2965_v63, %v2896_v0 }
 0x1cb   : > { %v3035_v4 = vpop.f32.mrb[18].mxu0 }
 0x1cc   : > { %v3105_v5 = vpop.f32.mrb[18].mxu1  ;;  %v3036_v6 = vadd.f32 %v3035_v4, %v2966_v3  ;;  %v3037_v7 = vpop.f32.mrb[19].mxu0 }
 0x1cd   : > { %v3107_v8 = vpop.f32.mrb[19].mxu1 }
 0x1ce   : > { %v3106_v9 = vadd.f32 %v3105_v5, %v3036_v6 }
 0x1d3   : > { %v3175_v10 = vpop.f32.mrb[20].mxu0 }
 0x1d4   : > { %v3245_v11 = vpop.f32.mrb[20].mxu1  ;;  %v3176_v12 = vadd.f32 %v3175_v10, %v3106_v9  ;;  %v3177_v13 = vpop.f32.mrb[21].mxu0 }
 0x1d5   : > { %v3247_v14 = vpop.f32.mrb[21].mxu1 }
 0x1d6   : > { %v3246_v15 = vadd.f32 %v3245_v11, %v3176_v12 }
 0x1db   : > { %v3315_v16 = vpop.f32.mrb[22].mxu0 }
 0x1dc   : > { %v3385_v17 = vpop.f32.mrb[22].mxu1  ;;  %v3316_v18 = vadd.f32 %v3315_v16, %v3246_v15  ;;  %v3317_v19 = vpop.f32.mrb[23].mxu0 }
 0x1dd   : > { %v3387_v20 = vpop.f32.mrb[23].mxu1 }
 0x1de   : > { %v3386_v21 = vadd.f32 %v3385_v17, %v3316_v18 }
 0x1e3   : > { %v3455_v22 = vpop.f32.mrb[24].mxu0 }
 0x1e4   : > { %v3525_v23 = vpop.f32.mrb[24].mxu1  ;;  %v3456_v24 = vadd.f32 %v3455_v22, %v3386_v21  ;;  %v3457_v26 = vpop.f32.mrb[25].mxu0 }
 0x1e5   : > { %v3527_v27 = vpop.f32.mrb[25].mxu1 }
 0x1e6   : > { %v3526_v28 = vadd.f32 %v3525_v23, %v3456_v24 }
 0x1eb   : > { %v3595_v29 = vpop.f32.mrb[26].mxu0 }
 0x1ec   : > { %v3665_v30 = vpop.f32.mrb[26].mxu1  ;;  %v3596_v31 = vadd.f32 %v3595_v29, %v3526_v28  ;;  %v3597_v32 = vpop.f32.mrb[27].mxu0 }
 0x1ed   : > { %v3667_v33 = vpop.f32.mrb[27].mxu1 }
 0x1ee   : > { %v3666_v34 = vadd.f32 %v3665_v30, %v3596_v31 }
 0x1f3   : > { %v3735_v35 = vpop.f32.mrb[28].mxu0 }
 0x1f4   : > { %v3805_v36 = vpop.f32.mrb[28].mxu1  ;;  %v3736_v37 = vadd.f32 %v3735_v35, %v3666_v34  ;;  %v3737_v38 = vpop.f32.mrb[29].mxu0 }
 0x1f5   : > { %v3807_v39 = vpop.f32.mrb[29].mxu1 }
 0x1f6   : > { %v3806_v25 = vadd.f32 %v3805_v36, %v3736_v37 }
 0x1fb   : > { %v3875_v40 = vpop.f32.mrb[30].mxu0 }
 0x1fc   : > { %v3945_v41 = vpop.f32.mrb[30].mxu1  ;;  %v3876_v42 = vadd.f32 %v3875_v40, %v3806_v25  ;;  %v3877_v43 = vpop.f32.mrb[31].mxu0 }
 0x1fd   : > { %v3947_v44 = vpop.f32.mrb[31].mxu1 }
 0x1fe   : > { %v3946_v45 = vadd.f32 %v3945_v41, %v3876_v42 }
 0x203   : > { %v4015_v46 = vpop.f32.mrb[32].mxu0 }
 0x204   : > { %v4085_v47 = vpop.f32.mrb[32].mxu1  ;;  %v4016_v48 = vadd.f32 %v4015_v46, %v3946_v45  ;;  %v4017_v49 = vpop.f32.mrb[33].mxu0 }
 0x205   : > { %v4087_v50 = vpop.f32.mrb[33].mxu1 }
 0x206   : > { %v4086_v51 = vadd.f32 %v4085_v47, %v4016_v48 }
 0x20b   : > { %v4155_v52 = vpop.f32.mrb[34].mxu0 }
 0x20c   : > { %v4225_v53 = vpop.f32.mrb[34].mxu1  ;;  %v4156_v54 = vadd.f32 %v4155_v52, %v4086_v51  ;;  %v4157_v55 = vpop.f32.mrb[35].mxu0 }
 0x20d   : > { %v4227_v56 = vpop.f32.mrb[35].mxu1 }
 0x20e   : > { %v4226_v57 = vadd.f32 %v4225_v53, %v4156_v54 }
 0x213   : > { %v4295_v58 = vpop.f32.mrb[36].mxu0 }
 0x214   : > { %v4365_v59 = vpop.f32.mrb[36].mxu1  ;;  %v4296_v60 = vadd.f32 %v4295_v58, %v4226_v57  ;;  %v4297_v61 = vpop.f32.mrb[37].mxu0 }
 0x215   : > { %v4367_v62 = vpop.f32.mrb[37].mxu1 }
 0x216   : > { %v4366_v63 = vadd.f32 %v4365_v59, %v4296_v60 }
 0x21b   : > { %v4435_v0 = vpop.f32.mrb[38].mxu0 }
 0x21c   : > { %v4505_v1 = vpop.f32.mrb[38].mxu1  ;;  %v4436_v2 = vadd.f32 %v4435_v0, %v4366_v63  ;;  %v4437_v3 = vpop.f32.mrb[39].mxu0 }
 0x21d   : > { %v4507_v4 = vpop.f32.mrb[39].mxu1 }
 0x21e   : > { %v4506_v5 = vadd.f32 %v4505_v1, %v4436_v2 }
 0x223   : > { %v4575_v6 = vpop.f32.mrb[40].mxu0 }
 0x224   : > { %v4645_v7 = vpop.f32.mrb[40].mxu1  ;;  %v4576_v8 = vadd.f32 %v4575_v6, %v4506_v5  ;;  %v4577_v9 = vpop.f32.mrb[41].mxu0 }
 0x225   : > { %v4647_v10 = vpop.f32.mrb[41].mxu1 }
 0x226   : > { %v4646_v11 = vadd.f32 %v4645_v7, %v4576_v8 }
 0x22b   : > { %v4715_v12 = vpop.f32.mrb[42].mxu0 }
 0x22c   : > { %v4785_v13 = vpop.f32.mrb[42].mxu1  ;;  %v4716_v14 = vadd.f32 %v4715_v12, %v4646_v11  ;;  %v4717_v15 = vpop.f32.mrb[43].mxu0 }
 0x22d   : > { %v4787_v16 = vpop.f32.mrb[43].mxu1 }
 0x22e   : > { %v4786_v17 = vadd.f32 %v4785_v13, %v4716_v14  ;;  %v716_v13 = vld [vmem:[#allocation2] sm:$0x3] }
 0x233   : > { %v4855_v18 = vpop.f32.mrb[44].mxu0 }
 0x234   : > { %v4925_v19 = vpop.f32.mrb[44].mxu1  ;;  %v4856_v20 = vadd.f32 %v4855_v18, %v4786_v17  ;;  %v4857_v21 = vpop.f32.mrb[45].mxu0  ;;  %v6282_v17 = vld [vmem:[%s7643_s2] ss:$0 sm:$0xff] (!%p6281_p10) }
 0x235   : > { %v4927_v22 = vpop.f32.mrb[45].mxu1 }
 0x236   : > { %v4926_v23 = vadd.f32 %v4925_v19, %v4856_v20 }
 0x23b   : > { %v4995_v24 = vpop.f32.mrb[46].mxu0 }
 0x23c   : > { %v5065_v26 = vpop.f32.mrb[46].mxu1  ;;  %v4996_v27 = vadd.f32 %v4995_v24, %v4926_v23  ;;  %v4997_v28 = vpop.f32.mrb[47].mxu0 }
 0x23d   : > { %v5067_v29 = vpop.f32.mrb[47].mxu1 }
 0x23e   : > { %v5066_v30 = vadd.f32 %v5065_v26, %v4996_v27 }
 0x243   : > { %v5135_v31 = vpop.f32.mrb[48].mxu0 }
 0x244   : > { %v5205_v32 = vpop.f32.mrb[48].mxu1  ;;  %v5136_v33 = vadd.f32 %v5135_v31, %v5066_v30  ;;  %v5137_v34 = vpop.f32.mrb[49].mxu0 }
 0x245   : > { %v5207_v35 = vpop.f32.mrb[49].mxu1 }
 0x246   : > { %v5206_v36 = vadd.f32 %v5205_v32, %v5136_v33 }
 0x24b   : > { %v5275_v37 = vpop.f32.mrb[50].mxu0 }
 0x24c   : > { %v5345_v38 = vpop.f32.mrb[50].mxu1  ;;  %v5276_v39 = vadd.f32 %v5275_v37, %v5206_v36  ;;  %v5277_v25 = vpop.f32.mrb[51].mxu0 }
 0x24d   : > { %v5347_v40 = vpop.f32.mrb[51].mxu1 }
 0x24e   : > { %v5346_v41 = vadd.f32 %v5345_v38, %v5276_v39 }
 0x253   : > { %v5415_v42 = vpop.f32.mrb[52].mxu0 }
 0x254   : > { %v5485_v43 = vpop.f32.mrb[52].mxu1  ;;  %v5416_v44 = vadd.f32 %v5415_v42, %v5346_v41  ;;  %v5417_v45 = vpop.f32.mrb[53].mxu0 }
 0x255   : > { %v5487_v46 = vpop.f32.mrb[53].mxu1 }
 0x256   : > { %v5486_v47 = vadd.f32 %v5485_v43, %v5416_v44 }
 0x25b   : > { %v5555_v48 = vpop.f32.mrb[54].mxu0 }
 0x25c   : > { %v5625_v49 = vpop.f32.mrb[54].mxu1  ;;  %v5556_v50 = vadd.f32 %v5555_v48, %v5486_v47  ;;  %v5557_v51 = vpop.f32.mrb[55].mxu0 }
 0x25d   : > { %v5627_v52 = vpop.f32.mrb[55].mxu1 }
 0x25e   : > { %v5626_v53 = vadd.f32 %v5625_v49, %v5556_v50 }
 0x263   : > { %v5695_v54 = vpop.f32.mrb[56].mxu0 }
 0x264   : > { %v5765_v55 = vpop.f32.mrb[56].mxu1  ;;  %v5696_v56 = vadd.f32 %v5695_v54, %v5626_v53  ;;  %v5697_v57 = vpop.f32.mrb[57].mxu0 }
 0x265   : > { %v5767_v58 = vpop.f32.mrb[57].mxu1 }
 0x266   : > { %v5766_v59 = vadd.f32 %v5765_v55, %v5696_v56 }
 0x26b   : > { %v5835_v60 = vpop.f32.mrb[58].mxu0 }
 0x26c   : > { %v5905_v61 = vpop.f32.mrb[58].mxu1  ;;  %v5836_v62 = vadd.f32 %v5835_v60, %v5766_v59  ;;  %v5837_v63 = vpop.f32.mrb[59].mxu0 }
 0x26d   : > { %v5907_v0 = vpop.f32.mrb[59].mxu1 }
 0x26e   : > { %v5906_v1 = vadd.f32 %v5905_v61, %v5836_v62 }
 0x273   : > { %v5975_v2 = vpop.f32.mrb[60].mxu0 }
 0x274   : > { %v6045_v3 = vpop.f32.mrb[60].mxu1  ;;  %v5976_v4 = vadd.f32 %v5975_v2, %v5906_v1  ;;  %v5977_v5 = vpop.f32.mrb[61].mxu0 }
 0x275   : > { %v6047_v6 = vpop.f32.mrb[61].mxu1 }
 0x276   : > { %v6046_v7 = vadd.f32 %v6045_v3, %v5976_v4 }
 0x27b   : > { %v6115_v8 = vpop.f32.mrb[62].mxu0 }
 0x27c   : > { %v6185_v9 = vpop.f32.mrb[62].mxu1  ;;  %v6116_v10 = vadd.f32 %v6115_v8, %v6046_v7  ;;  %v6117_v11 = vpop.f32.mrb[63].mxu0  ;;  %6195 = sbr.rel (%p6281_p10) target bundleno = 653 (0x28d), region = 63 }
 0x27d   : > { %v6187_v12 = vpop.f32.mrb[63].mxu1 }
 0x27e   : > { %v6186_v14 = vadd.f32 %v6185_v9, %v6116_v10 }
 0x280   : > { %v6189_v15 = vadd.f32 %v6186_v14, %v716_v13 }
 0x282   : > { %6191 = vst.msk [vmem:[#allocation2] sm:$0x3] %vm6190_vm1, %v6189_v15 }
 0x289   : > { %v6196_v16 = vld [vmem:[#allocation2] sm:$0x3] }
 0x28a   : > { %v6204_v18 = vadd.f32 %v6282_v17, %v6196_v16 }
 0x28c   : > { %6205 = vst.msk [vmem:[#allocation4] sm:$0x3] %vm6190_vm1, %v6204_v18 }
 0x28d PF: > { %p6548_p11 = scmp.eq.s32.totalorder %s6702_s15, 3  ;;  %s6665_s10 = smov [#allocation4]  }
 0x28e   : > { %s6213_s11 = sshll.u32 %s6665_s10, 4  ;;  %s6214_s11 = int_to_ptr.vmem [resolvable:$true] %s6213_s11 }
 0x28f   : > { %s6609_s12 = scalar_lea.vmem %s6214_s11, 32  ;;  %p6616_p1 = scmp.lt.s32.totalorder %s6214_s11, %s6214_s11 }
 0x290   : > { %p6610_p12 = scmp.ne.s32.totalorder %s6214_s11, %s6609_s12  ;;  %p6617_p2 = scmp.lt.s32.totalorder %s6609_s12, %s6609_s12 }
 0x292   : > { %p6611_p13 = pnand %p6610_p12, %p6548_p11  ;;  %p6618_p3 = por %p6617_p2, %p6616_p1 }
 0x294   : > { %p6612_p0 = pneg %p6611_p13 }
 0x296   : > { %p6619_p4 = pnand %p6618_p3, %p6612_p0 }
 0x298   : > { %6622 = shalt.err (!%p6619_p4)
}
 0x299   : > { %s6623_s18 = scalar_lea.hbm %s7644_s3, 32 }
 0x29a   : > { %p6624_p5 = scmp.ne.s32.totalorder %s7644_s3, %s6623_s18  ;;  %p6629_p8 = scmp.lt.u32.totalorder %s6623_s18, %s7644_s3 }
 0x29c   : > { %p6625_p6 = pnand %p6624_p5, %p6548_p11 }
 0x29e   : > { %p6626_p7 = pneg %p6625_p6 }
 0x2a0   : > { %p6631_p9 = pnand %p6629_p8, %p6626_p7 }
 0x2a2   : > { %6634 = shalt.err (!%p6631_p9)
}
 0x2a3   : > { %6545 = dma.vmem_to_hbm [thread:$0]  (%p6548_p11), %s6214_s11, 32, %s7644_s3, [#allocation5]  }
 0x2a4   : > { %6648 = dma.done.wait (%p6548_p11), [#allocation5], 32  }
 0x2a5   : > { %6650 = vsyncadd (%p6548_p11), [#allocation5], 4294967264 }
 0x2a6 PF: > { %p11_p10 = scmp.ge.s32.totalorder %s6705_s16, 6   ;;  %s7645_s12 = smov %s6657_s13 }
 0x2a7   : > { %s7646_s13 = smov %s6714_s19  ;;  %s7647_s14 = smov %s6705_s16 }
 0x2a8   :  { %13 = sbr.rel (!%p11_p10) target bundleno = 2 (0x2), region = 98 }
 0x2af   :  { %6226 = vsyncpa [#allocation5], 1 }
 0x2b0   :  { %6228 = vsyncpa [#allocation5 + $0x1], 1 }

</bundles_post_ra>
